<compile_context>
chip_gen: v7x
topology: tpu7x:2x2x1
jax: 0.10.0
libtpu: 0.0.40
codegen_flags: <defaults>
</compile_context>

<pallas_src>
import jax
import jax.numpy as jnp
import numpy as np
from jax.experimental import pallas as pl
from jax.experimental.pallas import tpu as pltpu


# ---------------------------------------------------------------------------
# Fused encoder kernel (all layers, both directions, full sequence, mu head)
# ---------------------------------------------------------------------------
def _make_encoder_kernel(L, T, Bp, B, H, In, latent):
    has_rest = L > 1
    f32 = jnp.float32

    def kernel(*refs):
        it = iter(refs)
        x_ref = next(it)                                  # (T*Bp, In)
        h0_ref = next(it)                                 # (2L, Bp, H)
        wih0_ref = next(it)                               # (2, In, 3H)
        wihr_ref = next(it) if has_rest else None         # (L-1, 2, 2H, 3H)
        whh_ref = next(it)                                # (L, 2, H, 3H)
        bin_ref = next(it)                                # (L, 2, 1, 3H)
        bhn_ref = next(it)                                # (L, 2, 1, H)
        sel_ref = next(it)                                # (2, B, 2*Bp)
        muw_ref = next(it)                                # (2H, latent)
        mub_ref = next(it)                                # (1, latent)
        mu_ref = next(it)                                 # OUT (B, latent)
        gi_f = next(it)                                   # scratch (T*Bp, 3H)
        gi_b = next(it)                                   # scratch (T*Bp, 3H)
        seq = next(it)                                    # scratch (T*Bp, 2H)
        hf = next(it)                                     # scratch (Bp, H)
        hb = next(it)                                     # scratch (Bp, H)

        for l in range(L):
            # ---- hoisted, gate-fused input projection: 1 dot per direction ----
            # (r/z hidden biases already folded into bin in the wrapper)
            if l == 0:
                xin = x_ref[...]
                gi_f[...] = (jnp.dot(xin, wih0_ref[0],
                                     preferred_element_type=f32) + bin_ref[l, 0])
                gi_b[...] = (jnp.dot(xin, wih0_ref[1],
                                     preferred_element_type=f32) + bin_ref[l, 1])
            else:
                prev = seq[...]                           # (T*Bp, 2H) = [fwd | bwd]
                gi_f[...] = (jnp.dot(prev, wihr_ref[l - 1, 0],
                                     preferred_element_type=f32) + bin_ref[l, 0])
                gi_b[...] = (jnp.dot(prev, wihr_ref[l - 1, 1],
                                     preferred_element_type=f32) + bin_ref[l, 1])

            # per-layer weights / biases: loaded once, reused across the unroll
            whh_f = whh_ref[l, 0]                         # (H, 3H), cols [r|z|n]
            whh_b = whh_ref[l, 1]
            bhn_f = jnp.broadcast_to(bhn_ref[l, 0], (Bp, H))   # hoisted broadcast
            bhn_b = jnp.broadcast_to(bhn_ref[l, 1], (Bp, H))

            hf[...] = h0_ref[2 * l]
            hb[...] = h0_ref[2 * l + 1]

            write_seq = l < (L - 1)   # last layer: only h_n is needed

            # ---- fully-unrolled recurrence over time, both directions ----
            # TODO(synk): for large T switch to @pl.loop(..., unroll=4..8) and
            #             chunk gi_*/seq over time windows (v7x: 64 MiB VMEM).
            for t in range(T):
                rt = T - 1 - t
                rf0, rf1 = t * Bp, (t + 1) * Bp           # 8-aligned row windows
                rb0, rb1 = rt * Bp, (rt + 1) * Bp

                # -- forward direction consumes timestep t --
                h_prev = hf[...]
                gh = jnp.dot(h_prev, whh_f, preferred_element_type=f32)  # (Bp,3H)
                gi = gi_f[rf0:rf1, :]                                    # (Bp,3H)
                rz = jax.nn.sigmoid(gi[:, :2 * H] + gh[:, :2 * H])
                r, z = rz[:, :H], rz[:, H:2 * H]
                n = jnp.tanh(gi[:, 2 * H:] + r * (gh[:, 2 * H:] + bhn_f))
                h_new = n + z * (h_prev - n)              # == (1-z)*n + z*h_prev
                hf[...] = h_new

                # -- backward direction consumes timestep T-1-t --
                hb_prev = hb[...]
                ghb = jnp.dot(hb_prev, whh_b, preferred_element_type=f32)
                gib = gi_b[rb0:rb1, :]
                rzb = jax.nn.sigmoid(gib[:, :2 * H] + ghb[:, :2 * H])
                rb_, zb = rzb[:, :H], rzb[:, H:2 * H]
                nb = jnp.tanh(gib[:, 2 * H:] + rb_ * (ghb[:, 2 * H:] + bhn_b))
                hb_new = nb + zb * (hb_prev - nb)
                hb[...] = hb_new

                if write_seq:
                    seq[rf0:rf1, :H] = h_new              # fwd features -> lanes [0:H]
                    seq[rb0:rb1, H:] = hb_new             # bwd features -> lanes [H:2H]

        # ---- fused epilogue: PyTorch h_n.view(...) quirk + mu Linear ----
        # h_n[-2:] (2,B,H) row-major-reshaped to (B,2H) mixes batch rows:
        # out[i] = [h_all[2i], h_all[2i+1]] with h_all = [fwd; bwd].  Reproduce
        # it with constant 0/1 selection matmuls (no reshape / strided gather).
        h_all = jnp.concatenate([hf[...], hb[...]], axis=0)         # (2*Bp, H)
        h_even = jnp.dot(sel_ref[0], h_all, preferred_element_type=f32)  # rows 2i
        h_odd = jnp.dot(sel_ref[1], h_all, preferred_element_type=f32)   # rows 2i+1
        muw = muw_ref[...]
        mu_ref[...] = (jnp.dot(h_even, muw[:H, :], preferred_element_type=f32)
                       + jnp.dot(h_odd, muw[H:, :], preferred_element_type=f32)
                       + mub_ref[...])

    return kernel


# ---------------------------------------------------------------------------
# Wrapper helpers
# ---------------------------------------------------------------------------
def _make_sel(B, Bp):
    """Constant selection matrices implementing the h_n.view() row pairing."""
    sel = np.zeros((2, B, 2 * Bp), np.float32)
    for i in range(B):
        for parity in (0, 1):
            g = 2 * i + parity                 # row in the [fwd; bwd] (2B,H) stack
            col = g if g < B else Bp + (g - B)  # padded position of that row
            sel[parity, i, col] = 1.0
    return jnp.asarray(sel)


def pack_params(params):
    """Convert torch-layout nn.GRU / nn.Linear params to the fused kernel layout."""
    L, H = params["num_layers"], params["hidden_size"]
    wih0, wihr, whh, b_in, b_hn = None, [], [], [], []
    for l in range(L):
        wih_l, whh_l, bin_l, bhn_l = [], [], [], []
        for d in range(2):                               # 0 = fwd, 1 = reverse
            w_ih, w_hh, b_ih, b_hh = params["gru"][l][d]  # (3H,In_l),(3H,H),(3H,),(3H,)
            wih_l.append(w_ih.T)                          # (In_l, 3H), cols [r|z|n]
            whh_l.append(w_hh.T)                          # (H, 3H)
            # fold b_hr / b_hz into the input-projection bias; b_hn stays separate
            b_fold = b_ih + jnp.concatenate(
                [b_hh[:2 * H], jnp.zeros((H,), jnp.float32)])
            bin_l.append(b_fold.reshape(1, 3 * H))
            bhn_l.append(b_hh[2 * H:].reshape(1, H))
        if l == 0:
            wih0 = jnp.stack(wih_l)                       # (2, In, 3H)
        else:
            wihr.append(jnp.stack(wih_l))                 # (2, 2H, 3H)
        whh.append(jnp.stack(whh_l))
        b_in.append(jnp.stack(bin_l))
        b_hn.append(jnp.stack(bhn_l))
    return {
        "num_layers": L, "hidden_size": H, "latent_size": params["latent_size"],
        "wih0": wih0,                                     # (2, In, 3H)
        "wihr": jnp.stack(wihr) if L > 1 else None,       # (L-1, 2, 2H, 3H)
        "whh": jnp.stack(whh),                            # (L, 2, H, 3H)
        "b_in": jnp.stack(b_in),                          # (L, 2, 1, 3H)
        "b_hn": jnp.stack(b_hn),                          # (L, 2, 1, H)
        "mu_w_t": params["mu_w"].T,                       # (2H, latent)
        "mu_b": params["mu_b"].reshape(1, -1),            # (1, latent)
    }


def bigru_fixed_sigma_encoder_forward(x, h0, packed):
    """Reproduces BiGRU_fixed_sigma_Encoder.forward (eval-mode dropout).

    x: (T, B, input_size)   h0: (num_layers*2, B, H)
    returns (mu (B, latent), sigma (1,))."""
    T, B, In = x.shape
    L = packed["num_layers"]
    H = packed["hidden_size"]
    latent = packed["latent_size"]
    Bp = ((B + 7) // 8) * 8                               # pad batch to sublane tile

    x_pad = jnp.zeros((T, Bp, In), jnp.float32).at[:, :B, :].set(
        x.astype(jnp.float32))
    x2d = x_pad.reshape(T * Bp, In)
    h0_pad = jnp.zeros((2 * L, Bp, H), jnp.float32).at[:, :B, :].set(
        h0.astype(jnp.float32))

    sel = _make_sel(B, Bp)                                # trace-time constant

    args = [x2d, h0_pad, packed["wih0"]]
    if L > 1:
        args.append(packed["wihr"])
    args += [packed["whh"], packed["b_in"], packed["b_hn"], sel,
             packed["mu_w_t"], packed["mu_b"]]

    vspec = pl.BlockSpec(memory_space=pltpu.MemorySpace.VMEM)

    mu = pl.pallas_call(
        _make_encoder_kernel(L, T, Bp, B, H, In, latent),
        out_shape=jax.ShapeDtypeStruct((B, latent), jnp.float32),
        in_specs=[vspec] * len(args),
        out_specs=vspec,
        scratch_shapes=[
            pltpu.VMEM((T * Bp, 3 * H), jnp.float32),     # gi fwd (gate-fused proj)
            pltpu.VMEM((T * Bp, 3 * H), jnp.float32),     # gi bwd
            pltpu.VMEM((T * Bp, 2 * H), jnp.float32),     # inter-layer seq [fwd|bwd]
            pltpu.VMEM((Bp, H), jnp.float32),             # hidden state fwd
            pltpu.VMEM((Bp, H), jnp.float32),             # hidden state bwd
        ],
    )(*args)

    # TODO(synk): nn.Dropout(p=0.5, inplace=True) on mu is identity in eval mode;
    #             the stochastic training-mode path is not implemented.
    sigma = jnp.array([1.0], dtype=jnp.float32)
    return mu, sigma


# ---------------------------------------------------------------------------
# Pure-JAX reference (torch-layout params, scan-based) for correctness check
# ---------------------------------------------------------------------------
def _gru_layer_ref(x_seq, h0, w_ih, w_hh, b_ih, b_hh, H):
    hp = jax.lax.Precision.HIGHEST

    def step(h, x_t):
        gi = jnp.dot(x_t, w_ih.T, precision=hp) + b_ih
        gh = jnp.dot(h, w_hh.T, precision=hp) + b_hh
        r = jax.nn.sigmoid(gi[:, :H] + gh[:, :H])
        z = jax.nn.sigmoid(gi[:, H:2 * H] + gh[:, H:2 * H])
        n = jnp.tanh(gi[:, 2 * H:] + r * gh[:, 2 * H:])
        h = (1.0 - z) * n + z * h
        return h, h

    h_last, hs = jax.lax.scan(step, h0, x_seq)
    return hs, h_last


def _forward_ref(x, h0, params):
    T, B, _ = x.shape
    L, H = params["num_layers"], params["hidden_size"]
    layer_in = x
    h_f = h_b = None
    for l in range(L):
        pf, pb = params["gru"][l][0], params["gru"][l][1]
        out_f, h_f = _gru_layer_ref(layer_in, h0[2 * l], *pf, H)
        out_b_rev, h_b = _gru_layer_ref(layer_in[::-1], h0[2 * l + 1], *pb, H)
        layer_in = jnp.concatenate([out_f, out_b_rev[::-1]], axis=-1)
    h_cat = jnp.stack([h_f, h_b], axis=0).reshape(B, 2 * H)   # PyTorch view quirk
    return (jnp.dot(h_cat, params["mu_w"].T,
                    precision=jax.lax.Precision.HIGHEST) + params["mu_b"])


# ---------------------------------------------------------------------------
# Deterministic parameter init (shapes follow nn.GRU / nn.Linear exactly)
# ---------------------------------------------------------------------------
def make_params(key, input_size, hidden_size, latent_size, num_layers):
    H = hidden_size
    k_gru = 1.0 / np.sqrt(H)
    params = {"num_layers": num_layers, "hidden_size": H,
              "latent_size": latent_size, "gru": []}
    for layer in range(num_layers):
        in_w = input_size if layer == 0 else 2 * H
        dirs = []
        for _ in range(2):                                # fwd, reverse
            key, k1, k2, k3, k4 = jax.random.split(key, 5)
            w_ih = jax.random.uniform(k1, (3 * H, in_w), jnp.float32, -k_gru, k_gru)
            w_hh = jax.random.uniform(k2, (3 * H, H), jnp.float32, -k_gru, k_gru)
            b_ih = jax.random.uniform(k3, (3 * H,), jnp.float32, -k_gru, k_gru)
            b_hh = jax.random.uniform(k4, (3 * H,), jnp.float32, -k_gru, k_gru)
            dirs.append((w_ih, w_hh, b_ih, b_hh))
        params["gru"].append(dirs)
    k_lin = 1.0 / np.sqrt(2 * H)
    key, k1, k2 = jax.random.split(key, 3)
    params["mu_w"] = jax.random.uniform(k1, (latent_size, 2 * H), jnp.float32,
                                        -k_lin, k_lin)
    params["mu_b"] = jax.random.uniform(k2, (latent_size,), jnp.float32,
                                        -k_lin, k_lin)
    return params


# ---------------------------------------------------------------------------
if __name__ == "__main__":
    # Small shapes consistent with the module's forward signature.
    T, B = 8, 4
    input_size, hidden_size, latent_size, num_layers = 16, 32, 16, 2

    key = jax.random.PRNGKey(0)
    k_x, k_p = jax.random.split(key)
    x = jax.random.normal(k_x, (T, B, input_size), jnp.float32)
    h0 = jnp.zeros((num_layers * 2, B, hidden_size), jnp.float32)   # init_hidden
    params = make_params(k_p, input_size, hidden_size, latent_size, num_layers)
    packed = pack_params(params)    # one-time weight repack (gate-fused layout)

    forward = jax.jit(lambda xx, hh: bigru_fixed_sigma_encoder_forward(xx, hh, packed))
    mu, sigma = forward(x, h0)
    mu = jax.block_until_ready(mu)
    sigma = jax.block_until_ready(sigma)

    # Sanity check against a pure-JAX reference (includes the h_n.view quirk).
    mu_ref = _forward_ref(x, h0, params)
    np.testing.assert_allclose(np.asarray(mu), np.asarray(mu_ref),
                               rtol=1e-3, atol=1e-3)
    assert mu.shape == (B, latent_size) and sigma.shape == (1,)

    print("KERNEL_OK")
</pallas_src>

<mosaic_0001>
module attributes {stable_mosaic.version = 11 : i64} {
  func.func @kernel(%arg0: memref<64x16xf32, #tpu.memory_space<vmem>>, %arg1: memref<4x8x32xf32, #tpu.memory_space<vmem>>, %arg2: memref<2x16x96xf32, #tpu.memory_space<vmem>>, %arg3: memref<1x2x64x96xf32, #tpu.memory_space<vmem>>, %arg4: memref<2x2x32x96xf32, #tpu.memory_space<vmem>>, %arg5: memref<2x2x1x96xf32, #tpu.memory_space<vmem>>, %arg6: memref<2x2x1x32xf32, #tpu.memory_space<vmem>>, %arg7: memref<2x4x16xf32, #tpu.memory_space<vmem>>, %arg8: memref<64x16xf32, #tpu.memory_space<vmem>>, %arg9: memref<1x16xf32, #tpu.memory_space<vmem>>, %arg10: memref<4x16xf32, #tpu.memory_space<vmem>>, %arg11: memref<64x96xf32, #tpu.memory_space<vmem>>, %arg12: memref<64x96xf32, #tpu.memory_space<vmem>>, %arg13: memref<64x64xf32, #tpu.memory_space<vmem>>, %arg14: memref<8x32xf32, #tpu.memory_space<vmem>>, %arg15: memref<8x32xf32, #tpu.memory_space<vmem>>) attributes {dimension_semantics = [], scalar_prefetch = 0 : i64, scratch_operands = 5 : i64, tpu.core_type = #tpu.core_type<tc>} {
    %c0 = arith.constant 0 : index
    %c0_0 = arith.constant 0 : index
    %0 = vector.load %arg0[%c0, %c0_0] : memref<64x16xf32, #tpu.memory_space<vmem>>, vector<64x16xf32>
    %c0_1 = arith.constant 0 : index
    %c0_2 = arith.constant 0 : index
    %c0_3 = arith.constant 0 : index
    %1 = vector.load %arg2[%c0_1, %c0_2, %c0_3] : memref<2x16x96xf32, #tpu.memory_space<vmem>>, vector<1x16x96xf32>
    %2 = vector.shape_cast %1 : vector<1x16x96xf32> to vector<16x96xf32>
    %cst = arith.constant dense<0.000000e+00> : vector<64x96xf32>
    %3 = tpu.matmul %0, %2, %cst {dimension_numbers = #tpu.dot_dimension_numbers<[1], [0], [0], [1], [0, 0, 1, 1], [], []>} : vector<64x16xf32>, vector<16x96xf32>, vector<64x96xf32> -> vector<64x96xf32>
    %c0_4 = arith.constant 0 : index
    %c0_5 = arith.constant 0 : index
    %c0_6 = arith.constant 0 : index
    %c0_7 = arith.constant 0 : index
    %4 = vector.load %arg5[%c0_4, %c0_5, %c0_6, %c0_7] : memref<2x2x1x96xf32, #tpu.memory_space<vmem>>, vector<1x1x1x96xf32>
    %5 = vector.shape_cast %4 : vector<1x1x1x96xf32> to vector<1x96xf32>
    %6 = vector.broadcast %5 : vector<1x96xf32> to vector<64x96xf32>
    %7 = arith.addf %3, %6 : vector<64x96xf32>
    %c0_8 = arith.constant 0 : index
    %c0_9 = arith.constant 0 : index
    %8 = vector.load %arg11[%c0_8, %c0_9] : memref<64x96xf32, #tpu.memory_space<vmem>>, vector<64x96xf32>
    tpu.vector_store %arg11[%c0_8, %c0_9], %7 {strides = array<i32>} : memref<64x96xf32, #tpu.memory_space<vmem>>, vector<64x96xf32>,
    %c1 = arith.constant 1 : index
    %c0_10 = arith.constant 0 : index
    %c0_11 = arith.constant 0 : index
    %9 = vector.load %arg2[%c1, %c0_10, %c0_11] : memref<2x16x96xf32, #tpu.memory_space<vmem>>, vector<1x16x96xf32>
    %10 = vector.shape_cast %9 : vector<1x16x96xf32> to vector<16x96xf32>
    %cst_12 = arith.constant dense<0.000000e+00> : vector<64x96xf32>
    %11 = tpu.matmul %0, %10, %cst_12 {dimension_numbers = #tpu.dot_dimension_numbers<[1], [0], [0], [1], [0, 0, 1, 1], [], []>} : vector<64x16xf32>, vector<16x96xf32>, vector<64x96xf32> -> vector<64x96xf32>
    %c0_13 = arith.constant 0 : index
    %c1_14 = arith.constant 1 : index
    %c0_15 = arith.constant 0 : index
    %c0_16 = arith.constant 0 : index
    %12 = vector.load %arg5[%c0_13, %c1_14, %c0_15, %c0_16] : memref<2x2x1x96xf32, #tpu.memory_space<vmem>>, vector<1x1x1x96xf32>
    %13 = vector.shape_cast %12 : vector<1x1x1x96xf32> to vector<1x96xf32>
    %14 = vector.broadcast %13 : vector<1x96xf32> to vector<64x96xf32>
    %15 = arith.addf %11, %14 : vector<64x96xf32>
    %c0_17 = arith.constant 0 : index
    %c0_18 = arith.constant 0 : index
    %16 = vector.load %arg12[%c0_17, %c0_18] : memref<64x96xf32, #tpu.memory_space<vmem>>, vector<64x96xf32>
    tpu.vector_store %arg12[%c0_17, %c0_18], %15 {strides = array<i32>} : memref<64x96xf32, #tpu.memory_space<vmem>>, vector<64x96xf32>,
    %c0_19 = arith.constant 0 : index
    %c0_20 = arith.constant 0 : index
    %c0_21 = arith.constant 0 : index
    %c0_22 = arith.constant 0 : index
    %17 = vector.load %arg4[%c0_19, %c0_20, %c0_21, %c0_22] : memref<2x2x32x96xf32, #tpu.memory_space<vmem>>, vector<1x1x32x96xf32>
    %18 = vector.shape_cast %17 : vector<1x1x32x96xf32> to vector<32x96xf32>
    %c0_23 = arith.constant 0 : index
    %c1_24 = arith.constant 1 : index
    %c0_25 = arith.constant 0 : index
    %c0_26 = arith.constant 0 : index
    %19 = vector.load %arg4[%c0_23, %c1_24, %c0_25, %c0_26] : memref<2x2x32x96xf32, #tpu.memory_space<vmem>>, vector<1x1x32x96xf32>
    %20 = vector.shape_cast %19 : vector<1x1x32x96xf32> to vector<32x96xf32>
    %c0_27 = arith.constant 0 : index
    %c0_28 = arith.constant 0 : index
    %c0_29 = arith.constant 0 : index
    %c0_30 = arith.constant 0 : index
    %21 = vector.load %arg6[%c0_27, %c0_28, %c0_29, %c0_30] : memref<2x2x1x32xf32, #tpu.memory_space<vmem>>, vector<1x1x1x32xf32>
    %22 = vector.shape_cast %21 : vector<1x1x1x32xf32> to vector<1x32xf32>
    %23 = vector.shape_cast %22 : vector<1x32xf32> to vector<1x32xf32>
    %24 = vector.broadcast %23 : vector<1x32xf32> to vector<8x32xf32>
    %c0_31 = arith.constant 0 : index
    %c1_32 = arith.constant 1 : index
    %c0_33 = arith.constant 0 : index
    %c0_34 = arith.constant 0 : index
    %25 = vector.load %arg6[%c0_31, %c1_32, %c0_33, %c0_34] : memref<2x2x1x32xf32, #tpu.memory_space<vmem>>, vector<1x1x1x32xf32>
    %26 = vector.shape_cast %25 : vector<1x1x1x32xf32> to vector<1x32xf32>
    %27 = vector.shape_cast %26 : vector<1x32xf32> to vector<1x32xf32>
    %28 = vector.broadcast %27 : vector<1x32xf32> to vector<8x32xf32>
    %c0_35 = arith.constant 0 : index
    %c0_36 = arith.constant 0 : index
    %c0_37 = arith.constant 0 : index
    %29 = vector.load %arg1[%c0_35, %c0_36, %c0_37] : memref<4x8x32xf32, #tpu.memory_space<vmem>>, vector<1x8x32xf32>
    %30 = vector.shape_cast %29 : vector<1x8x32xf32> to vector<8x32xf32>
    %c0_38 = arith.constant 0 : index
    %c0_39 = arith.constant 0 : index
    %31 = vector.load %arg14[%c0_38, %c0_39] : memref<8x32xf32, #tpu.memory_space<vmem>>, vector<8x32xf32>
    tpu.vector_store %arg14[%c0_38, %c0_39], %30 {strides = array<i32>} : memref<8x32xf32, #tpu.memory_space<vmem>>, vector<8x32xf32>,
    %c1_40 = arith.constant 1 : index
    %c0_41 = arith.constant 0 : index
    %c0_42 = arith.constant 0 : index
    %32 = vector.load %arg1[%c1_40, %c0_41, %c0_42] : memref<4x8x32xf32, #tpu.memory_space<vmem>>, vector<1x8x32xf32>
    %33 = vector.shape_cast %32 : vector<1x8x32xf32> to vector<8x32xf32>
    %c0_43 = arith.constant 0 : index
    %c0_44 = arith.constant 0 : index
    %34 = vector.load %arg15[%c0_43, %c0_44] : memref<8x32xf32, #tpu.memory_space<vmem>>, vector<8x32xf32>
    tpu.vector_store %arg15[%c0_43, %c0_44], %33 {strides = array<i32>} : memref<8x32xf32, #tpu.memory_space<vmem>>, vector<8x32xf32>,
    %c0_45 = arith.constant 0 : index
    %c0_46 = arith.constant 0 : index
    %35 = vector.load %arg14[%c0_45, %c0_46] : memref<8x32xf32, #tpu.memory_space<vmem>>, vector<8x32xf32>
    %cst_47 = arith.constant dense<0.000000e+00> : vector<8x96xf32>
    %36 = tpu.matmul %35, %18, %cst_47 {dimension_numbers = #tpu.dot_dimension_numbers<[1], [0], [0], [1], [0, 0, 1, 1], [], []>} : vector<8x32xf32>, vector<32x96xf32>, vector<8x96xf32> -> vector<8x96xf32>
    %c0_48 = arith.constant 0 : index
    %c0_49 = arith.constant 0 : index
    %37 = vector.load %arg11[%c0_48, %c0_49] : memref<64x96xf32, #tpu.memory_space<vmem>>, vector<8x96xf32>
    %38 = vector.extract_strided_slice %37 {offsets = [0, 0], sizes = [8, 64], strides = [1, 1]} : vector<8x96xf32> to vector<8x64xf32>
    %39 = vector.extract_strided_slice %36 {offsets = [0, 0], sizes = [8, 64], strides = [1, 1]} : vector<8x96xf32> to vector<8x64xf32>
    %40 = arith.addf %38, %39 : vector<8x64xf32>
    %41 = arith.negf %40 : vector<8x64xf32>
    %42 = math.exp %41 : vector<8x64xf32>
    %cst_50 = arith.constant 1.000000e+00 : f32
    %43 = vector.broadcast %cst_50 : f32 to vector<8x64xf32>
    %44 = arith.addf %43, %42 : vector<8x64xf32>
    %45 = arith.divf %43, %44 : vector<8x64xf32>
    %46 = vector.extract_strided_slice %45 {offsets = [0, 0], sizes = [8, 32], strides = [1, 1]} : vector<8x64xf32> to vector<8x32xf32>
    %47 = vector.extract_strided_slice %45 {offsets = [0, 32], sizes = [8, 32], strides = [1, 1]} : vector<8x64xf32> to vector<8x32xf32>
    %48 = vector.extract_strided_slice %37 {offsets = [0, 64], sizes = [8, 32], strides = [1, 1]} : vector<8x96xf32> to vector<8x32xf32>
    %49 = vector.extract_strided_slice %36 {offsets = [0, 64], sizes = [8, 32], strides = [1, 1]} : vector<8x96xf32> to vector<8x32xf32>
    %50 = arith.addf %49, %24 : vector<8x32xf32>
    %51 = arith.mulf %46, %50 : vector<8x32xf32>
    %52 = arith.addf %48, %51 : vector<8x32xf32>
    %53 = math.tanh %52 : vector<8x32xf32>
    %54 = arith.subf %35, %53 : vector<8x32xf32>
    %55 = arith.mulf %47, %54 : vector<8x32xf32>
    %56 = arith.addf %53, %55 : vector<8x32xf32>
    %c0_51 = arith.constant 0 : index
    %c0_52 = arith.constant 0 : index
    %57 = vector.load %arg14[%c0_51, %c0_52] : memref<8x32xf32, #tpu.memory_space<vmem>>, vector<8x32xf32>
    tpu.vector_store %arg14[%c0_51, %c0_52], %56 {strides = array<i32>} : memref<8x32xf32, #tpu.memory_space<vmem>>, vector<8x32xf32>,
    %c0_53 = arith.constant 0 : index
    %c0_54 = arith.constant 0 : index
    %58 = vector.load %arg15[%c0_53, %c0_54] : memref<8x32xf32, #tpu.memory_space<vmem>>, vector<8x32xf32>
    %cst_55 = arith.constant dense<0.000000e+00> : vector<8x96xf32>
    %59 = tpu.matmul %58, %20, %cst_55 {dimension_numbers = #tpu.dot_dimension_numbers<[1], [0], [0], [1], [0, 0, 1, 1], [], []>} : vector<8x32xf32>, vector<32x96xf32>, vector<8x96xf32> -> vector<8x96xf32>
    %c56 = arith.constant 56 : index
    %c0_56 = arith.constant 0 : index
    %60 = vector.load %arg12[%c56, %c0_56] : memref<64x96xf32, #tpu.memory_space<vmem>>, vector<8x96xf32>
    %61 = vector.extract_strided_slice %60 {offsets = [0, 0], sizes = [8, 64], strides = [1, 1]} : vector<8x96xf32> to vector<8x64xf32>
    %62 = vector.extract_strided_slice %59 {offsets = [0, 0], sizes = [8, 64], strides = [1, 1]} : vector<8x96xf32> to vector<8x64xf32>
    %63 = arith.addf %61, %62 : vector<8x64xf32>
    %64 = arith.negf %63 : vector<8x64xf32>
    %65 = math.exp %64 : vector<8x64xf32>
    %cst_57 = arith.constant 1.000000e+00 : f32
    %66 = vector.broadcast %cst_57 : f32 to vector<8x64xf32>
    %67 = arith.addf %66, %65 : vector<8x64xf32>
    %68 = arith.divf %66, %67 : vector<8x64xf32>
    %69 = vector.extract_strided_slice %68 {offsets = [0, 0], sizes = [8, 32], strides = [1, 1]} : vector<8x64xf32> to vector<8x32xf32>
    %70 = vector.extract_strided_slice %68 {offsets = [0, 32], sizes = [8, 32], strides = [1, 1]} : vector<8x64xf32> to vector<8x32xf32>
    %71 = vector.extract_strided_slice %60 {offsets = [0, 64], sizes = [8, 32], strides = [1, 1]} : vector<8x96xf32> to vector<8x32xf32>
    %72 = vector.extract_strided_slice %59 {offsets = [0, 64], sizes = [8, 32], strides = [1, 1]} : vector<8x96xf32> to vector<8x32xf32>
    %73 = arith.addf %72, %28 : vector<8x32xf32>
    %74 = arith.mulf %69, %73 : vector<8x32xf32>
    %75 = arith.addf %71, %74 : vector<8x32xf32>
    %76 = math.tanh %75 : vector<8x32xf32>
    %77 = arith.subf %58, %76 : vector<8x32xf32>
    %78 = arith.mulf %70, %77 : vector<8x32xf32>
    %79 = arith.addf %76, %78 : vector<8x32xf32>
    %c0_58 = arith.constant 0 : index
    %c0_59 = arith.constant 0 : index
    %80 = vector.load %arg15[%c0_58, %c0_59] : memref<8x32xf32, #tpu.memory_space<vmem>>, vector<8x32xf32>
    tpu.vector_store %arg15[%c0_58, %c0_59], %79 {strides = array<i32>} : memref<8x32xf32, #tpu.memory_space<vmem>>, vector<8x32xf32>,
    %c0_60 = arith.constant 0 : index
    %c0_61 = arith.constant 0 : index
    %81 = vector.load %arg13[%c0_60, %c0_61] : memref<64x64xf32, #tpu.memory_space<vmem>>, vector<8x32xf32>
    tpu.vector_store %arg13[%c0_60, %c0_61], %56 {strides = array<i32>} : memref<64x64xf32, #tpu.memory_space<vmem>>, vector<8x32xf32>,
    %c56_62 = arith.constant 56 : index
    %c32 = arith.constant 32 : index
    %82 = vector.load %arg13[%c56_62, %c32] : memref<64x64xf32, #tpu.memory_space<vmem>>, vector<8x32xf32>
    tpu.vector_store %arg13[%c56_62, %c32], %79 {strides = array<i32>} : memref<64x64xf32, #tpu.memory_space<vmem>>, vector<8x32xf32>,
    %c0_63 = arith.constant 0 : index
    %c0_64 = arith.constant 0 : index
    %83 = vector.load %arg14[%c0_63, %c0_64] : memref<8x32xf32, #tpu.memory_space<vmem>>, vector<8x32xf32>
    %cst_65 = arith.constant dense<0.000000e+00> : vector<8x96xf32>
    %84 = tpu.matmul %83, %18, %cst_65 {dimension_numbers = #tpu.dot_dimension_numbers<[1], [0], [0], [1], [0, 0, 1, 1], [], []>} : vector<8x32xf32>, vector<32x96xf32>, vector<8x96xf32> -> vector<8x96xf32>
    %c8 = arith.constant 8 : index
    %c0_66 = arith.constant 0 : index
    %85 = vector.load %arg11[%c8, %c0_66] : memref<64x96xf32, #tpu.memory_space<vmem>>, vector<8x96xf32>
    %86 = vector.extract_strided_slice %85 {offsets = [0, 0], sizes = [8, 64], strides = [1, 1]} : vector<8x96xf32> to vector<8x64xf32>
    %87 = vector.extract_strided_slice %84 {offsets = [0, 0], sizes = [8, 64], strides = [1, 1]} : vector<8x96xf32> to vector<8x64xf32>
    %88 = arith.addf %86, %87 : vector<8x64xf32>
    %89 = arith.negf %88 : vector<8x64xf32>
    %90 = math.exp %89 : vector<8x64xf32>
    %cst_67 = arith.constant 1.000000e+00 : f32
    %91 = vector.broadcast %cst_67 : f32 to vector<8x64xf32>
    %92 = arith.addf %91, %90 : vector<8x64xf32>
    %93 = arith.divf %91, %92 : vector<8x64xf32>
    %94 = vector.extract_strided_slice %93 {offsets = [0, 0], sizes = [8, 32], strides = [1, 1]} : vector<8x64xf32> to vector<8x32xf32>
    %95 = vector.extract_strided_slice %93 {offsets = [0, 32], sizes = [8, 32], strides = [1, 1]} : vector<8x64xf32> to vector<8x32xf32>
    %96 = vector.extract_strided_slice %85 {offsets = [0, 64], sizes = [8, 32], strides = [1, 1]} : vector<8x96xf32> to vector<8x32xf32>
    %97 = vector.extract_strided_slice %84 {offsets = [0, 64], sizes = [8, 32], strides = [1, 1]} : vector<8x96xf32> to vector<8x32xf32>
    %98 = arith.addf %97, %24 : vector<8x32xf32>
    %99 = arith.mulf %94, %98 : vector<8x32xf32>
    %100 = arith.addf %96, %99 : vector<8x32xf32>
    %101 = math.tanh %100 : vector<8x32xf32>
    %102 = arith.subf %83, %101 : vector<8x32xf32>
    %103 = arith.mulf %95, %102 : vector<8x32xf32>
    %104 = arith.addf %101, %103 : vector<8x32xf32>
    %c0_68 = arith.constant 0 : index
    %c0_69 = arith.constant 0 : index
    %105 = vector.load %arg14[%c0_68, %c0_69] : memref<8x32xf32, #tpu.memory_space<vmem>>, vector<8x32xf32>
    tpu.vector_store %arg14[%c0_68, %c0_69], %104 {strides = array<i32>} : memref<8x32xf32, #tpu.memory_space<vmem>>, vector<8x32xf32>,
    %c0_70 = arith.constant 0 : index
    %c0_71 = arith.constant 0 : index
    %106 = vector.load %arg15[%c0_70, %c0_71] : memref<8x32xf32, #tpu.memory_space<vmem>>, vector<8x32xf32>
    %cst_72 = arith.constant dense<0.000000e+00> : vector<8x96xf32>
    %107 = tpu.matmul %106, %20, %cst_72 {dimension_numbers = #tpu.dot_dimension_numbers<[1], [0], [0], [1], [0, 0, 1, 1], [], []>} : vector<8x32xf32>, vector<32x96xf32>, vector<8x96xf32> -> vector<8x96xf32>
    %c48 = arith.constant 48 : index
    %c0_73 = arith.constant 0 : index
    %108 = vector.load %arg12[%c48, %c0_73] : memref<64x96xf32, #tpu.memory_space<vmem>>, vector<8x96xf32>
    %109 = vector.extract_strided_slice %108 {offsets = [0, 0], sizes = [8, 64], strides = [1, 1]} : vector<8x96xf32> to vector<8x64xf32>
    %110 = vector.extract_strided_slice %107 {offsets = [0, 0], sizes = [8, 64], strides = [1, 1]} : vector<8x96xf32> to vector<8x64xf32>
    %111 = arith.addf %109, %110 : vector<8x64xf32>
    %112 = arith.negf %111 : vector<8x64xf32>
    %113 = math.exp %112 : vector<8x64xf32>
    %cst_74 = arith.constant 1.000000e+00 : f32
    %114 = vector.broadcast %cst_74 : f32 to vector<8x64xf32>
    %115 = arith.addf %114, %113 : vector<8x64xf32>
    %116 = arith.divf %114, %115 : vector<8x64xf32>
    %117 = vector.extract_strided_slice %116 {offsets = [0, 0], sizes = [8, 32], strides = [1, 1]} : vector<8x64xf32> to vector<8x32xf32>
    %118 = vector.extract_strided_slice %116 {offsets = [0, 32], sizes = [8, 32], strides = [1, 1]} : vector<8x64xf32> to vector<8x32xf32>
    %119 = vector.extract_strided_slice %108 {offsets = [0, 64], sizes = [8, 32], strides = [1, 1]} : vector<8x96xf32> to vector<8x32xf32>
    %120 = vector.extract_strided_slice %107 {offsets = [0, 64], sizes = [8, 32], strides = [1, 1]} : vector<8x96xf32> to vector<8x32xf32>
    %121 = arith.addf %120, %28 : vector<8x32xf32>
    %122 = arith.mulf %117, %121 : vector<8x32xf32>
    %123 = arith.addf %119, %122 : vector<8x32xf32>
    %124 = math.tanh %123 : vector<8x32xf32>
    %125 = arith.subf %106, %124 : vector<8x32xf32>
    %126 = arith.mulf %118, %125 : vector<8x32xf32>
    %127 = arith.addf %124, %126 : vector<8x32xf32>
    %c0_75 = arith.constant 0 : index
    %c0_76 = arith.constant 0 : index
    %128 = vector.load %arg15[%c0_75, %c0_76] : memref<8x32xf32, #tpu.memory_space<vmem>>, vector<8x32xf32>
    tpu.vector_store %arg15[%c0_75, %c0_76], %127 {strides = array<i32>} : memref<8x32xf32, #tpu.memory_space<vmem>>, vector<8x32xf32>,
    %c8_77 = arith.constant 8 : index
    %c0_78 = arith.constant 0 : index
    %129 = vector.load %arg13[%c8_77, %c0_78] : memref<64x64xf32, #tpu.memory_space<vmem>>, vector<8x32xf32>
    tpu.vector_store %arg13[%c8_77, %c0_78], %104 {strides = array<i32>} : memref<64x64xf32, #tpu.memory_space<vmem>>, vector<8x32xf32>,
    %c48_79 = arith.constant 48 : index
    %c32_80 = arith.constant 32 : index
    %130 = vector.load %arg13[%c48_79, %c32_80] : memref<64x64xf32, #tpu.memory_space<vmem>>, vector<8x32xf32>
    tpu.vector_store %arg13[%c48_79, %c32_80], %127 {strides = array<i32>} : memref<64x64xf32, #tpu.memory_space<vmem>>, vector<8x32xf32>,
    %c0_81 = arith.constant 0 : index
    %c0_82 = arith.constant 0 : index
    %131 = vector.load %arg14[%c0_81, %c0_82] : memref<8x32xf32, #tpu.memory_space<vmem>>, vector<8x32xf32>
    %cst_83 = arith.constant dense<0.000000e+00> : vector<8x96xf32>
    %132 = tpu.matmul %131, %18, %cst_83 {dimension_numbers = #tpu.dot_dimension_numbers<[1], [0], [0], [1], [0, 0, 1, 1], [], []>} : vector<8x32xf32>, vector<32x96xf32>, vector<8x96xf32> -> vector<8x96xf32>
    %c16 = arith.constant 16 : index
    %c0_84 = arith.constant 0 : index
    %133 = vector.load %arg11[%c16, %c0_84] : memref<64x96xf32, #tpu.memory_space<vmem>>, vector<8x96xf32>
    %134 = vector.extract_strided_slice %133 {offsets = [0, 0], sizes = [8, 64], strides = [1, 1]} : vector<8x96xf32> to vector<8x64xf32>
    %135 = vector.extract_strided_slice %132 {offsets = [0, 0], sizes = [8, 64], strides = [1, 1]} : vector<8x96xf32> to vector<8x64xf32>
    %136 = arith.addf %134, %135 : vector<8x64xf32>
    %137 = arith.negf %136 : vector<8x64xf32>
    %138 = math.exp %137 : vector<8x64xf32>
    %cst_85 = arith.constant 1.000000e+00 : f32
    %139 = vector.broadcast %cst_85 : f32 to vector<8x64xf32>
    %140 = arith.addf %139, %138 : vector<8x64xf32>
    %141 = arith.divf %139, %140 : vector<8x64xf32>
    %142 = vector.extract_strided_slice %141 {offsets = [0, 0], sizes = [8, 32], strides = [1, 1]} : vector<8x64xf32> to vector<8x32xf32>
    %143 = vector.extract_strided_slice %141 {offsets = [0, 32], sizes = [8, 32], strides = [1, 1]} : vector<8x64xf32> to vector<8x32xf32>
    %144 = vector.extract_strided_slice %133 {offsets = [0, 64], sizes = [8, 32], strides = [1, 1]} : vector<8x96xf32> to vector<8x32xf32>
    %145 = vector.extract_strided_slice %132 {offsets = [0, 64], sizes = [8, 32], strides = [1, 1]} : vector<8x96xf32> to vector<8x32xf32>
    %146 = arith.addf %145, %24 : vector<8x32xf32>
    %147 = arith.mulf %142, %146 : vector<8x32xf32>
    %148 = arith.addf %144, %147 : vector<8x32xf32>
    %149 = math.tanh %148 : vector<8x32xf32>
    %150 = arith.subf %131, %149 : vector<8x32xf32>
    %151 = arith.mulf %143, %150 : vector<8x32xf32>
    %152 = arith.addf %149, %151 : vector<8x32xf32>
    %c0_86 = arith.constant 0 : index
    %c0_87 = arith.constant 0 : index
    %153 = vector.load %arg14[%c0_86, %c0_87] : memref<8x32xf32, #tpu.memory_space<vmem>>, vector<8x32xf32>
    tpu.vector_store %arg14[%c0_86, %c0_87], %152 {strides = array<i32>} : memref<8x32xf32, #tpu.memory_space<vmem>>, vector<8x32xf32>,
    %c0_88 = arith.constant 0 : index
    %c0_89 = arith.constant 0 : index
    %154 = vector.load %arg15[%c0_88, %c0_89] : memref<8x32xf32, #tpu.memory_space<vmem>>, vector<8x32xf32>
    %cst_90 = arith.constant dense<0.000000e+00> : vector<8x96xf32>
    %155 = tpu.matmul %154, %20, %cst_90 {dimension_numbers = #tpu.dot_dimension_numbers<[1], [0], [0], [1], [0, 0, 1, 1], [], []>} : vector<8x32xf32>, vector<32x96xf32>, vector<8x96xf32> -> vector<8x96xf32>
    %c40 = arith.constant 40 : index
    %c0_91 = arith.constant 0 : index
    %156 = vector.load %arg12[%c40, %c0_91] : memref<64x96xf32, #tpu.memory_space<vmem>>, vector<8x96xf32>
    %157 = vector.extract_strided_slice %156 {offsets = [0, 0], sizes = [8, 64], strides = [1, 1]} : vector<8x96xf32> to vector<8x64xf32>
    %158 = vector.extract_strided_slice %155 {offsets = [0, 0], sizes = [8, 64], strides = [1, 1]} : vector<8x96xf32> to vector<8x64xf32>
    %159 = arith.addf %157, %158 : vector<8x64xf32>
    %160 = arith.negf %159 : vector<8x64xf32>
    %161 = math.exp %160 : vector<8x64xf32>
    %cst_92 = arith.constant 1.000000e+00 : f32
    %162 = vector.broadcast %cst_92 : f32 to vector<8x64xf32>
    %163 = arith.addf %162, %161 : vector<8x64xf32>
    %164 = arith.divf %162, %163 : vector<8x64xf32>
    %165 = vector.extract_strided_slice %164 {offsets = [0, 0], sizes = [8, 32], strides = [1, 1]} : vector<8x64xf32> to vector<8x32xf32>
    %166 = vector.extract_strided_slice %164 {offsets = [0, 32], sizes = [8, 32], strides = [1, 1]} : vector<8x64xf32> to vector<8x32xf32>
    %167 = vector.extract_strided_slice %156 {offsets = [0, 64], sizes = [8, 32], strides = [1, 1]} : vector<8x96xf32> to vector<8x32xf32>
    %168 = vector.extract_strided_slice %155 {offsets = [0, 64], sizes = [8, 32], strides = [1, 1]} : vector<8x96xf32> to vector<8x32xf32>
    %169 = arith.addf %168, %28 : vector<8x32xf32>
    %170 = arith.mulf %165, %169 : vector<8x32xf32>
    %171 = arith.addf %167, %170 : vector<8x32xf32>
    %172 = math.tanh %171 : vector<8x32xf32>
    %173 = arith.subf %154, %172 : vector<8x32xf32>
    %174 = arith.mulf %166, %173 : vector<8x32xf32>
    %175 = arith.addf %172, %174 : vector<8x32xf32>
    %c0_93 = arith.constant 0 : index
    %c0_94 = arith.constant 0 : index
    %176 = vector.load %arg15[%c0_93, %c0_94] : memref<8x32xf32, #tpu.memory_space<vmem>>, vector<8x32xf32>
    tpu.vector_store %arg15[%c0_93, %c0_94], %175 {strides = array<i32>} : memref<8x32xf32, #tpu.memory_space<vmem>>, vector<8x32xf32>,
    %c16_95 = arith.constant 16 : index
    %c0_96 = arith.constant 0 : index
    %177 = vector.load %arg13[%c16_95, %c0_96] : memref<64x64xf32, #tpu.memory_space<vmem>>, vector<8x32xf32>
    tpu.vector_store %arg13[%c16_95, %c0_96], %152 {strides = array<i32>} : memref<64x64xf32, #tpu.memory_space<vmem>>, vector<8x32xf32>,
    %c40_97 = arith.constant 40 : index
    %c32_98 = arith.constant 32 : index
    %178 = vector.load %arg13[%c40_97, %c32_98] : memref<64x64xf32, #tpu.memory_space<vmem>>, vector<8x32xf32>
    tpu.vector_store %arg13[%c40_97, %c32_98], %175 {strides = array<i32>} : memref<64x64xf32, #tpu.memory_space<vmem>>, vector<8x32xf32>,
    %c0_99 = arith.constant 0 : index
    %c0_100 = arith.constant 0 : index
    %179 = vector.load %arg14[%c0_99, %c0_100] : memref<8x32xf32, #tpu.memory_space<vmem>>, vector<8x32xf32>
    %cst_101 = arith.constant dense<0.000000e+00> : vector<8x96xf32>
    %180 = tpu.matmul %179, %18, %cst_101 {dimension_numbers = #tpu.dot_dimension_numbers<[1], [0], [0], [1], [0, 0, 1, 1], [], []>} : vector<8x32xf32>, vector<32x96xf32>, vector<8x96xf32> -> vector<8x96xf32>
    %c24 = arith.constant 24 : index
    %c0_102 = arith.constant 0 : index
    %181 = vector.load %arg11[%c24, %c0_102] : memref<64x96xf32, #tpu.memory_space<vmem>>, vector<8x96xf32>
    %182 = vector.extract_strided_slice %181 {offsets = [0, 0], sizes = [8, 64], strides = [1, 1]} : vector<8x96xf32> to vector<8x64xf32>
    %183 = vector.extract_strided_slice %180 {offsets = [0, 0], sizes = [8, 64], strides = [1, 1]} : vector<8x96xf32> to vector<8x64xf32>
    %184 = arith.addf %182, %183 : vector<8x64xf32>
    %185 = arith.negf %184 : vector<8x64xf32>
    %186 = math.exp %185 : vector<8x64xf32>
    %cst_103 = arith.constant 1.000000e+00 : f32
    %187 = vector.broadcast %cst_103 : f32 to vector<8x64xf32>
    %188 = arith.addf %187, %186 : vector<8x64xf32>
    %189 = arith.divf %187, %188 : vector<8x64xf32>
    %190 = vector.extract_strided_slice %189 {offsets = [0, 0], sizes = [8, 32], strides = [1, 1]} : vector<8x64xf32> to vector<8x32xf32>
    %191 = vector.extract_strided_slice %189 {offsets = [0, 32], sizes = [8, 32], strides = [1, 1]} : vector<8x64xf32> to vector<8x32xf32>
    %192 = vector.extract_strided_slice %181 {offsets = [0, 64], sizes = [8, 32], strides = [1, 1]} : vector<8x96xf32> to vector<8x32xf32>
    %193 = vector.extract_strided_slice %180 {offsets = [0, 64], sizes = [8, 32], strides = [1, 1]} : vector<8x96xf32> to vector<8x32xf32>
    %194 = arith.addf %193, %24 : vector<8x32xf32>
    %195 = arith.mulf %190, %194 : vector<8x32xf32>
    %196 = arith.addf %192, %195 : vector<8x32xf32>
    %197 = math.tanh %196 : vector<8x32xf32>
    %198 = arith.subf %179, %197 : vector<8x32xf32>
    %199 = arith.mulf %191, %198 : vector<8x32xf32>
    %200 = arith.addf %197, %199 : vector<8x32xf32>
    %c0_104 = arith.constant 0 : index
    %c0_105 = arith.constant 0 : index
    %201 = vector.load %arg14[%c0_104, %c0_105] : memref<8x32xf32, #tpu.memory_space<vmem>>, vector<8x32xf32>
    tpu.vector_store %arg14[%c0_104, %c0_105], %200 {strides = array<i32>} : memref<8x32xf32, #tpu.memory_space<vmem>>, vector<8x32xf32>,
    %c0_106 = arith.constant 0 : index
    %c0_107 = arith.constant 0 : index
    %202 = vector.load %arg15[%c0_106, %c0_107] : memref<8x32xf32, #tpu.memory_space<vmem>>, vector<8x32xf32>
    %cst_108 = arith.constant dense<0.000000e+00> : vector<8x96xf32>
    %203 = tpu.matmul %202, %20, %cst_108 {dimension_numbers = #tpu.dot_dimension_numbers<[1], [0], [0], [1], [0, 0, 1, 1], [], []>} : vector<8x32xf32>, vector<32x96xf32>, vector<8x96xf32> -> vector<8x96xf32>
    %c32_109 = arith.constant 32 : index
    %c0_110 = arith.constant 0 : index
    %204 = vector.load %arg12[%c32_109, %c0_110] : memref<64x96xf32, #tpu.memory_space<vmem>>, vector<8x96xf32>
    %205 = vector.extract_strided_slice %204 {offsets = [0, 0], sizes = [8, 64], strides = [1, 1]} : vector<8x96xf32> to vector<8x64xf32>
    %206 = vector.extract_strided_slice %203 {offsets = [0, 0], sizes = [8, 64], strides = [1, 1]} : vector<8x96xf32> to vector<8x64xf32>
    %207 = arith.addf %205, %206 : vector<8x64xf32>
    %208 = arith.negf %207 : vector<8x64xf32>
    %209 = math.exp %208 : vector<8x64xf32>
    %cst_111 = arith.constant 1.000000e+00 : f32
    %210 = vector.broadcast %cst_111 : f32 to vector<8x64xf32>
    %211 = arith.addf %210, %209 : vector<8x64xf32>
    %212 = arith.divf %210, %211 : vector<8x64xf32>
    %213 = vector.extract_strided_slice %212 {offsets = [0, 0], sizes = [8, 32], strides = [1, 1]} : vector<8x64xf32> to vector<8x32xf32>
    %214 = vector.extract_strided_slice %212 {offsets = [0, 32], sizes = [8, 32], strides = [1, 1]} : vector<8x64xf32> to vector<8x32xf32>
    %215 = vector.extract_strided_slice %204 {offsets = [0, 64], sizes = [8, 32], strides = [1, 1]} : vector<8x96xf32> to vector<8x32xf32>
    %216 = vector.extract_strided_slice %203 {offsets = [0, 64], sizes = [8, 32], strides = [1, 1]} : vector<8x96xf32> to vector<8x32xf32>
    %217 = arith.addf %216, %28 : vector<8x32xf32>
    %218 = arith.mulf %213, %217 : vector<8x32xf32>
    %219 = arith.addf %215, %218 : vector<8x32xf32>
    %220 = math.tanh %219 : vector<8x32xf32>
    %221 = arith.subf %202, %220 : vector<8x32xf32>
    %222 = arith.mulf %214, %221 : vector<8x32xf32>
    %223 = arith.addf %220, %222 : vector<8x32xf32>
    %c0_112 = arith.constant 0 : index
    %c0_113 = arith.constant 0 : index
    %224 = vector.load %arg15[%c0_112, %c0_113] : memref<8x32xf32, #tpu.memory_space<vmem>>, vector<8x32xf32>
    tpu.vector_store %arg15[%c0_112, %c0_113], %223 {strides = array<i32>} : memref<8x32xf32, #tpu.memory_space<vmem>>, vector<8x32xf32>,
    %c24_114 = arith.constant 24 : index
    %c0_115 = arith.constant 0 : index
    %225 = vector.load %arg13[%c24_114, %c0_115] : memref<64x64xf32, #tpu.memory_space<vmem>>, vector<8x32xf32>
    tpu.vector_store %arg13[%c24_114, %c0_115], %200 {strides = array<i32>} : memref<64x64xf32, #tpu.memory_space<vmem>>, vector<8x32xf32>,
    %c32_116 = arith.constant 32 : index
    %c32_117 = arith.constant 32 : index
    %226 = vector.load %arg13[%c32_116, %c32_117] : memref<64x64xf32, #tpu.memory_space<vmem>>, vector<8x32xf32>
    tpu.vector_store %arg13[%c32_116, %c32_117], %223 {strides = array<i32>} : memref<64x64xf32, #tpu.memory_space<vmem>>, vector<8x32xf32>,
    %c0_118 = arith.constant 0 : index
    %c0_119 = arith.constant 0 : index
    %227 = vector.load %arg14[%c0_118, %c0_119] : memref<8x32xf32, #tpu.memory_space<vmem>>, vector<8x32xf32>
    %cst_120 = arith.constant dense<0.000000e+00> : vector<8x96xf32>
    %228 = tpu.matmul %227, %18, %cst_120 {dimension_numbers = #tpu.dot_dimension_numbers<[1], [0], [0], [1], [0, 0, 1, 1], [], []>} : vector<8x32xf32>, vector<32x96xf32>, vector<8x96xf32> -> vector<8x96xf32>
    %c32_121 = arith.constant 32 : index
    %c0_122 = arith.constant 0 : index
    %229 = vector.load %arg11[%c32_121, %c0_122] : memref<64x96xf32, #tpu.memory_space<vmem>>, vector<8x96xf32>
    %230 = vector.extract_strided_slice %229 {offsets = [0, 0], sizes = [8, 64], strides = [1, 1]} : vector<8x96xf32> to vector<8x64xf32>
    %231 = vector.extract_strided_slice %228 {offsets = [0, 0], sizes = [8, 64], strides = [1, 1]} : vector<8x96xf32> to vector<8x64xf32>
    %232 = arith.addf %230, %231 : vector<8x64xf32>
    %233 = arith.negf %232 : vector<8x64xf32>
    %234 = math.exp %233 : vector<8x64xf32>
    %cst_123 = arith.constant 1.000000e+00 : f32
    %235 = vector.broadcast %cst_123 : f32 to vector<8x64xf32>
    %236 = arith.addf %235, %234 : vector<8x64xf32>
    %237 = arith.divf %235, %236 : vector<8x64xf32>
    %238 = vector.extract_strided_slice %237 {offsets = [0, 0], sizes = [8, 32], strides = [1, 1]} : vector<8x64xf32> to vector<8x32xf32>
    %239 = vector.extract_strided_slice %237 {offsets = [0, 32], sizes = [8, 32], strides = [1, 1]} : vector<8x64xf32> to vector<8x32xf32>
    %240 = vector.extract_strided_slice %229 {offsets = [0, 64], sizes = [8, 32], strides = [1, 1]} : vector<8x96xf32> to vector<8x32xf32>
    %241 = vector.extract_strided_slice %228 {offsets = [0, 64], sizes = [8, 32], strides = [1, 1]} : vector<8x96xf32> to vector<8x32xf32>
    %242 = arith.addf %241, %24 : vector<8x32xf32>
    %243 = arith.mulf %238, %242 : vector<8x32xf32>
    %244 = arith.addf %240, %243 : vector<8x32xf32>
    %245 = math.tanh %244 : vector<8x32xf32>
    %246 = arith.subf %227, %245 : vector<8x32xf32>
    %247 = arith.mulf %239, %246 : vector<8x32xf32>
    %248 = arith.addf %245, %247 : vector<8x32xf32>
    %c0_124 = arith.constant 0 : index
    %c0_125 = arith.constant 0 : index
    %249 = vector.load %arg14[%c0_124, %c0_125] : memref<8x32xf32, #tpu.memory_space<vmem>>, vector<8x32xf32>
    tpu.vector_store %arg14[%c0_124, %c0_125], %248 {strides = array<i32>} : memref<8x32xf32, #tpu.memory_space<vmem>>, vector<8x32xf32>,
    %c0_126 = arith.constant 0 : index
    %c0_127 = arith.constant 0 : index
    %250 = vector.load %arg15[%c0_126, %c0_127] : memref<8x32xf32, #tpu.memory_space<vmem>>, vector<8x32xf32>
    %cst_128 = arith.constant dense<0.000000e+00> : vector<8x96xf32>
    %251 = tpu.matmul %250, %20, %cst_128 {dimension_numbers = #tpu.dot_dimension_numbers<[1], [0], [0], [1], [0, 0, 1, 1], [], []>} : vector<8x32xf32>, vector<32x96xf32>, vector<8x96xf32> -> vector<8x96xf32>
    %c24_129 = arith.constant 24 : index
    %c0_130 = arith.constant 0 : index
    %252 = vector.load %arg12[%c24_129, %c0_130] : memref<64x96xf32, #tpu.memory_space<vmem>>, vector<8x96xf32>
    %253 = vector.extract_strided_slice %252 {offsets = [0, 0], sizes = [8, 64], strides = [1, 1]} : vector<8x96xf32> to vector<8x64xf32>
    %254 = vector.extract_strided_slice %251 {offsets = [0, 0], sizes = [8, 64], strides = [1, 1]} : vector<8x96xf32> to vector<8x64xf32>
    %255 = arith.addf %253, %254 : vector<8x64xf32>
    %256 = arith.negf %255 : vector<8x64xf32>
    %257 = math.exp %256 : vector<8x64xf32>
    %cst_131 = arith.constant 1.000000e+00 : f32
    %258 = vector.broadcast %cst_131 : f32 to vector<8x64xf32>
    %259 = arith.addf %258, %257 : vector<8x64xf32>
    %260 = arith.divf %258, %259 : vector<8x64xf32>
    %261 = vector.extract_strided_slice %260 {offsets = [0, 0], sizes = [8, 32], strides = [1, 1]} : vector<8x64xf32> to vector<8x32xf32>
    %262 = vector.extract_strided_slice %260 {offsets = [0, 32], sizes = [8, 32], strides = [1, 1]} : vector<8x64xf32> to vector<8x32xf32>
    %263 = vector.extract_strided_slice %252 {offsets = [0, 64], sizes = [8, 32], strides = [1, 1]} : vector<8x96xf32> to vector<8x32xf32>
    %264 = vector.extract_strided_slice %251 {offsets = [0, 64], sizes = [8, 32], strides = [1, 1]} : vector<8x96xf32> to vector<8x32xf32>
    %265 = arith.addf %264, %28 : vector<8x32xf32>
    %266 = arith.mulf %261, %265 : vector<8x32xf32>
    %267 = arith.addf %263, %266 : vector<8x32xf32>
    %268 = math.tanh %267 : vector<8x32xf32>
    %269 = arith.subf %250, %268 : vector<8x32xf32>
    %270 = arith.mulf %262, %269 : vector<8x32xf32>
    %271 = arith.addf %268, %270 : vector<8x32xf32>
    %c0_132 = arith.constant 0 : index
    %c0_133 = arith.constant 0 : index
    %272 = vector.load %arg15[%c0_132, %c0_133] : memref<8x32xf32, #tpu.memory_space<vmem>>, vector<8x32xf32>
    tpu.vector_store %arg15[%c0_132, %c0_133], %271 {strides = array<i32>} : memref<8x32xf32, #tpu.memory_space<vmem>>, vector<8x32xf32>,
    %c32_134 = arith.constant 32 : index
    %c0_135 = arith.constant 0 : index
    %273 = vector.load %arg13[%c32_134, %c0_135] : memref<64x64xf32, #tpu.memory_space<vmem>>, vector<8x32xf32>
    tpu.vector_store %arg13[%c32_134, %c0_135], %248 {strides = array<i32>} : memref<64x64xf32, #tpu.memory_space<vmem>>, vector<8x32xf32>,
    %c24_136 = arith.constant 24 : index
    %c32_137 = arith.constant 32 : index
    %274 = vector.load %arg13[%c24_136, %c32_137] : memref<64x64xf32, #tpu.memory_space<vmem>>, vector<8x32xf32>
    tpu.vector_store %arg13[%c24_136, %c32_137], %271 {strides = array<i32>} : memref<64x64xf32, #tpu.memory_space<vmem>>, vector<8x32xf32>,
    %c0_138 = arith.constant 0 : index
    %c0_139 = arith.constant 0 : index
    %275 = vector.load %arg14[%c0_138, %c0_139] : memref<8x32xf32, #tpu.memory_space<vmem>>, vector<8x32xf32>
    %cst_140 = arith.constant dense<0.000000e+00> : vector<8x96xf32>
    %276 = tpu.matmul %275, %18, %cst_140 {dimension_numbers = #tpu.dot_dimension_numbers<[1], [0], [0], [1], [0, 0, 1, 1], [], []>} : vector<8x32xf32>, vector<32x96xf32>, vector<8x96xf32> -> vector<8x96xf32>
    %c40_141 = arith.constant 40 : index
    %c0_142 = arith.constant 0 : index
    %277 = vector.load %arg11[%c40_141, %c0_142] : memref<64x96xf32, #tpu.memory_space<vmem>>, vector<8x96xf32>
    %278 = vector.extract_strided_slice %277 {offsets = [0, 0], sizes = [8, 64], strides = [1, 1]} : vector<8x96xf32> to vector<8x64xf32>
    %279 = vector.extract_strided_slice %276 {offsets = [0, 0], sizes = [8, 64], strides = [1, 1]} : vector<8x96xf32> to vector<8x64xf32>
    %280 = arith.addf %278, %279 : vector<8x64xf32>
    %281 = arith.negf %280 : vector<8x64xf32>
    %282 = math.exp %281 : vector<8x64xf32>
    %cst_143 = arith.constant 1.000000e+00 : f32
    %283 = vector.broadcast %cst_143 : f32 to vector<8x64xf32>
    %284 = arith.addf %283, %282 : vector<8x64xf32>
    %285 = arith.divf %283, %284 : vector<8x64xf32>
    %286 = vector.extract_strided_slice %285 {offsets = [0, 0], sizes = [8, 32], strides = [1, 1]} : vector<8x64xf32> to vector<8x32xf32>
    %287 = vector.extract_strided_slice %285 {offsets = [0, 32], sizes = [8, 32], strides = [1, 1]} : vector<8x64xf32> to vector<8x32xf32>
    %288 = vector.extract_strided_slice %277 {offsets = [0, 64], sizes = [8, 32], strides = [1, 1]} : vector<8x96xf32> to vector<8x32xf32>
    %289 = vector.extract_strided_slice %276 {offsets = [0, 64], sizes = [8, 32], strides = [1, 1]} : vector<8x96xf32> to vector<8x32xf32>
    %290 = arith.addf %289, %24 : vector<8x32xf32>
    %291 = arith.mulf %286, %290 : vector<8x32xf32>
    %292 = arith.addf %288, %291 : vector<8x32xf32>
    %293 = math.tanh %292 : vector<8x32xf32>
    %294 = arith.subf %275, %293 : vector<8x32xf32>
    %295 = arith.mulf %287, %294 : vector<8x32xf32>
    %296 = arith.addf %293, %295 : vector<8x32xf32>
    %c0_144 = arith.constant 0 : index
    %c0_145 = arith.constant 0 : index
    %297 = vector.load %arg14[%c0_144, %c0_145] : memref<8x32xf32, #tpu.memory_space<vmem>>, vector<8x32xf32>
    tpu.vector_store %arg14[%c0_144, %c0_145], %296 {strides = array<i32>} : memref<8x32xf32, #tpu.memory_space<vmem>>, vector<8x32xf32>,
    %c0_146 = arith.constant 0 : index
    %c0_147 = arith.constant 0 : index
    %298 = vector.load %arg15[%c0_146, %c0_147] : memref<8x32xf32, #tpu.memory_space<vmem>>, vector<8x32xf32>
    %cst_148 = arith.constant dense<0.000000e+00> : vector<8x96xf32>
    %299 = tpu.matmul %298, %20, %cst_148 {dimension_numbers = #tpu.dot_dimension_numbers<[1], [0], [0], [1], [0, 0, 1, 1], [], []>} : vector<8x32xf32>, vector<32x96xf32>, vector<8x96xf32> -> vector<8x96xf32>
    %c16_149 = arith.constant 16 : index
    %c0_150 = arith.constant 0 : index
    %300 = vector.load %arg12[%c16_149, %c0_150] : memref<64x96xf32, #tpu.memory_space<vmem>>, vector<8x96xf32>
    %301 = vector.extract_strided_slice %300 {offsets = [0, 0], sizes = [8, 64], strides = [1, 1]} : vector<8x96xf32> to vector<8x64xf32>
    %302 = vector.extract_strided_slice %299 {offsets = [0, 0], sizes = [8, 64], strides = [1, 1]} : vector<8x96xf32> to vector<8x64xf32>
    %303 = arith.addf %301, %302 : vector<8x64xf32>
    %304 = arith.negf %303 : vector<8x64xf32>
    %305 = math.exp %304 : vector<8x64xf32>
    %cst_151 = arith.constant 1.000000e+00 : f32
    %306 = vector.broadcast %cst_151 : f32 to vector<8x64xf32>
    %307 = arith.addf %306, %305 : vector<8x64xf32>
    %308 = arith.divf %306, %307 : vector<8x64xf32>
    %309 = vector.extract_strided_slice %308 {offsets = [0, 0], sizes = [8, 32], strides = [1, 1]} : vector<8x64xf32> to vector<8x32xf32>
    %310 = vector.extract_strided_slice %308 {offsets = [0, 32], sizes = [8, 32], strides = [1, 1]} : vector<8x64xf32> to vector<8x32xf32>
    %311 = vector.extract_strided_slice %300 {offsets = [0, 64], sizes = [8, 32], strides = [1, 1]} : vector<8x96xf32> to vector<8x32xf32>
    %312 = vector.extract_strided_slice %299 {offsets = [0, 64], sizes = [8, 32], strides = [1, 1]} : vector<8x96xf32> to vector<8x32xf32>
    %313 = arith.addf %312, %28 : vector<8x32xf32>
    %314 = arith.mulf %309, %313 : vector<8x32xf32>
    %315 = arith.addf %311, %314 : vector<8x32xf32>
    %316 = math.tanh %315 : vector<8x32xf32>
    %317 = arith.subf %298, %316 : vector<8x32xf32>
    %318 = arith.mulf %310, %317 : vector<8x32xf32>
    %319 = arith.addf %316, %318 : vector<8x32xf32>
    %c0_152 = arith.constant 0 : index
    %c0_153 = arith.constant 0 : index
    %320 = vector.load %arg15[%c0_152, %c0_153] : memref<8x32xf32, #tpu.memory_space<vmem>>, vector<8x32xf32>
    tpu.vector_store %arg15[%c0_152, %c0_153], %319 {strides = array<i32>} : memref<8x32xf32, #tpu.memory_space<vmem>>, vector<8x32xf32>,
    %c40_154 = arith.constant 40 : index
    %c0_155 = arith.constant 0 : index
    %321 = vector.load %arg13[%c40_154, %c0_155] : memref<64x64xf32, #tpu.memory_space<vmem>>, vector<8x32xf32>
    tpu.vector_store %arg13[%c40_154, %c0_155], %296 {strides = array<i32>} : memref<64x64xf32, #tpu.memory_space<vmem>>, vector<8x32xf32>,
    %c16_156 = arith.constant 16 : index
    %c32_157 = arith.constant 32 : index
    %322 = vector.load %arg13[%c16_156, %c32_157] : memref<64x64xf32, #tpu.memory_space<vmem>>, vector<8x32xf32>
    tpu.vector_store %arg13[%c16_156, %c32_157], %319 {strides = array<i32>} : memref<64x64xf32, #tpu.memory_space<vmem>>, vector<8x32xf32>,
    %c0_158 = arith.constant 0 : index
    %c0_159 = arith.constant 0 : index
    %323 = vector.load %arg14[%c0_158, %c0_159] : memref<8x32xf32, #tpu.memory_space<vmem>>, vector<8x32xf32>
    %cst_160 = arith.constant dense<0.000000e+00> : vector<8x96xf32>
    %324 = tpu.matmul %323, %18, %cst_160 {dimension_numbers = #tpu.dot_dimension_numbers<[1], [0], [0], [1], [0, 0, 1, 1], [], []>} : vector<8x32xf32>, vector<32x96xf32>, vector<8x96xf32> -> vector<8x96xf32>
    %c48_161 = arith.constant 48 : index
    %c0_162 = arith.constant 0 : index
    %325 = vector.load %arg11[%c48_161, %c0_162] : memref<64x96xf32, #tpu.memory_space<vmem>>, vector<8x96xf32>
    %326 = vector.extract_strided_slice %325 {offsets = [0, 0], sizes = [8, 64], strides = [1, 1]} : vector<8x96xf32> to vector<8x64xf32>
    %327 = vector.extract_strided_slice %324 {offsets = [0, 0], sizes = [8, 64], strides = [1, 1]} : vector<8x96xf32> to vector<8x64xf32>
    %328 = arith.addf %326, %327 : vector<8x64xf32>
    %329 = arith.negf %328 : vector<8x64xf32>
    %330 = math.exp %329 : vector<8x64xf32>
    %cst_163 = arith.constant 1.000000e+00 : f32
    %331 = vector.broadcast %cst_163 : f32 to vector<8x64xf32>
    %332 = arith.addf %331, %330 : vector<8x64xf32>
    %333 = arith.divf %331, %332 : vector<8x64xf32>
    %334 = vector.extract_strided_slice %333 {offsets = [0, 0], sizes = [8, 32], strides = [1, 1]} : vector<8x64xf32> to vector<8x32xf32>
    %335 = vector.extract_strided_slice %333 {offsets = [0, 32], sizes = [8, 32], strides = [1, 1]} : vector<8x64xf32> to vector<8x32xf32>
    %336 = vector.extract_strided_slice %325 {offsets = [0, 64], sizes = [8, 32], strides = [1, 1]} : vector<8x96xf32> to vector<8x32xf32>
    %337 = vector.extract_strided_slice %324 {offsets = [0, 64], sizes = [8, 32], strides = [1, 1]} : vector<8x96xf32> to vector<8x32xf32>
    %338 = arith.addf %337, %24 : vector<8x32xf32>
    %339 = arith.mulf %334, %338 : vector<8x32xf32>
    %340 = arith.addf %336, %339 : vector<8x32xf32>
    %341 = math.tanh %340 : vector<8x32xf32>
    %342 = arith.subf %323, %341 : vector<8x32xf32>
    %343 = arith.mulf %335, %342 : vector<8x32xf32>
    %344 = arith.addf %341, %343 : vector<8x32xf32>
    %c0_164 = arith.constant 0 : index
    %c0_165 = arith.constant 0 : index
    %345 = vector.load %arg14[%c0_164, %c0_165] : memref<8x32xf32, #tpu.memory_space<vmem>>, vector<8x32xf32>
    tpu.vector_store %arg14[%c0_164, %c0_165], %344 {strides = array<i32>} : memref<8x32xf32, #tpu.memory_space<vmem>>, vector<8x32xf32>,
    %c0_166 = arith.constant 0 : index
    %c0_167 = arith.constant 0 : index
    %346 = vector.load %arg15[%c0_166, %c0_167] : memref<8x32xf32, #tpu.memory_space<vmem>>, vector<8x32xf32>
    %cst_168 = arith.constant dense<0.000000e+00> : vector<8x96xf32>
    %347 = tpu.matmul %346, %20, %cst_168 {dimension_numbers = #tpu.dot_dimension_numbers<[1], [0], [0], [1], [0, 0, 1, 1], [], []>} : vector<8x32xf32>, vector<32x96xf32>, vector<8x96xf32> -> vector<8x96xf32>
    %c8_169 = arith.constant 8 : index
    %c0_170 = arith.constant 0 : index
    %348 = vector.load %arg12[%c8_169, %c0_170] : memref<64x96xf32, #tpu.memory_space<vmem>>, vector<8x96xf32>
    %349 = vector.extract_strided_slice %348 {offsets = [0, 0], sizes = [8, 64], strides = [1, 1]} : vector<8x96xf32> to vector<8x64xf32>
    %350 = vector.extract_strided_slice %347 {offsets = [0, 0], sizes = [8, 64], strides = [1, 1]} : vector<8x96xf32> to vector<8x64xf32>
    %351 = arith.addf %349, %350 : vector<8x64xf32>
    %352 = arith.negf %351 : vector<8x64xf32>
    %353 = math.exp %352 : vector<8x64xf32>
    %cst_171 = arith.constant 1.000000e+00 : f32
    %354 = vector.broadcast %cst_171 : f32 to vector<8x64xf32>
    %355 = arith.addf %354, %353 : vector<8x64xf32>
    %356 = arith.divf %354, %355 : vector<8x64xf32>
    %357 = vector.extract_strided_slice %356 {offsets = [0, 0], sizes = [8, 32], strides = [1, 1]} : vector<8x64xf32> to vector<8x32xf32>
    %358 = vector.extract_strided_slice %356 {offsets = [0, 32], sizes = [8, 32], strides = [1, 1]} : vector<8x64xf32> to vector<8x32xf32>
    %359 = vector.extract_strided_slice %348 {offsets = [0, 64], sizes = [8, 32], strides = [1, 1]} : vector<8x96xf32> to vector<8x32xf32>
    %360 = vector.extract_strided_slice %347 {offsets = [0, 64], sizes = [8, 32], strides = [1, 1]} : vector<8x96xf32> to vector<8x32xf32>
    %361 = arith.addf %360, %28 : vector<8x32xf32>
    %362 = arith.mulf %357, %361 : vector<8x32xf32>
    %363 = arith.addf %359, %362 : vector<8x32xf32>
    %364 = math.tanh %363 : vector<8x32xf32>
    %365 = arith.subf %346, %364 : vector<8x32xf32>
    %366 = arith.mulf %358, %365 : vector<8x32xf32>
    %367 = arith.addf %364, %366 : vector<8x32xf32>
    %c0_172 = arith.constant 0 : index
    %c0_173 = arith.constant 0 : index
    %368 = vector.load %arg15[%c0_172, %c0_173] : memref<8x32xf32, #tpu.memory_space<vmem>>, vector<8x32xf32>
    tpu.vector_store %arg15[%c0_172, %c0_173], %367 {strides = array<i32>} : memref<8x32xf32, #tpu.memory_space<vmem>>, vector<8x32xf32>,
    %c48_174 = arith.constant 48 : index
    %c0_175 = arith.constant 0 : index
    %369 = vector.load %arg13[%c48_174, %c0_175] : memref<64x64xf32, #tpu.memory_space<vmem>>, vector<8x32xf32>
    tpu.vector_store %arg13[%c48_174, %c0_175], %344 {strides = array<i32>} : memref<64x64xf32, #tpu.memory_space<vmem>>, vector<8x32xf32>,
    %c8_176 = arith.constant 8 : index
    %c32_177 = arith.constant 32 : index
    %370 = vector.load %arg13[%c8_176, %c32_177] : memref<64x64xf32, #tpu.memory_space<vmem>>, vector<8x32xf32>
    tpu.vector_store %arg13[%c8_176, %c32_177], %367 {strides = array<i32>} : memref<64x64xf32, #tpu.memory_space<vmem>>, vector<8x32xf32>,
    %c0_178 = arith.constant 0 : index
    %c0_179 = arith.constant 0 : index
    %371 = vector.load %arg14[%c0_178, %c0_179] : memref<8x32xf32, #tpu.memory_space<vmem>>, vector<8x32xf32>
    %cst_180 = arith.constant dense<0.000000e+00> : vector<8x96xf32>
    %372 = tpu.matmul %371, %18, %cst_180 {dimension_numbers = #tpu.dot_dimension_numbers<[1], [0], [0], [1], [0, 0, 1, 1], [], []>} : vector<8x32xf32>, vector<32x96xf32>, vector<8x96xf32> -> vector<8x96xf32>
    %c56_181 = arith.constant 56 : index
    %c0_182 = arith.constant 0 : index
    %373 = vector.load %arg11[%c56_181, %c0_182] : memref<64x96xf32, #tpu.memory_space<vmem>>, vector<8x96xf32>
    %374 = vector.extract_strided_slice %373 {offsets = [0, 0], sizes = [8, 64], strides = [1, 1]} : vector<8x96xf32> to vector<8x64xf32>
    %375 = vector.extract_strided_slice %372 {offsets = [0, 0], sizes = [8, 64], strides = [1, 1]} : vector<8x96xf32> to vector<8x64xf32>
    %376 = arith.addf %374, %375 : vector<8x64xf32>
    %377 = arith.negf %376 : vector<8x64xf32>
    %378 = math.exp %377 : vector<8x64xf32>
    %cst_183 = arith.constant 1.000000e+00 : f32
    %379 = vector.broadcast %cst_183 : f32 to vector<8x64xf32>
    %380 = arith.addf %379, %378 : vector<8x64xf32>
    %381 = arith.divf %379, %380 : vector<8x64xf32>
    %382 = vector.extract_strided_slice %381 {offsets = [0, 0], sizes = [8, 32], strides = [1, 1]} : vector<8x64xf32> to vector<8x32xf32>
    %383 = vector.extract_strided_slice %381 {offsets = [0, 32], sizes = [8, 32], strides = [1, 1]} : vector<8x64xf32> to vector<8x32xf32>
    %384 = vector.extract_strided_slice %373 {offsets = [0, 64], sizes = [8, 32], strides = [1, 1]} : vector<8x96xf32> to vector<8x32xf32>
    %385 = vector.extract_strided_slice %372 {offsets = [0, 64], sizes = [8, 32], strides = [1, 1]} : vector<8x96xf32> to vector<8x32xf32>
    %386 = arith.addf %385, %24 : vector<8x32xf32>
    %387 = arith.mulf %382, %386 : vector<8x32xf32>
    %388 = arith.addf %384, %387 : vector<8x32xf32>
    %389 = math.tanh %388 : vector<8x32xf32>
    %390 = arith.subf %371, %389 : vector<8x32xf32>
    %391 = arith.mulf %383, %390 : vector<8x32xf32>
    %392 = arith.addf %389, %391 : vector<8x32xf32>
    %c0_184 = arith.constant 0 : index
    %c0_185 = arith.constant 0 : index
    %393 = vector.load %arg14[%c0_184, %c0_185] : memref<8x32xf32, #tpu.memory_space<vmem>>, vector<8x32xf32>
    tpu.vector_store %arg14[%c0_184, %c0_185], %392 {strides = array<i32>} : memref<8x32xf32, #tpu.memory_space<vmem>>, vector<8x32xf32>,
    %c0_186 = arith.constant 0 : index
    %c0_187 = arith.constant 0 : index
    %394 = vector.load %arg15[%c0_186, %c0_187] : memref<8x32xf32, #tpu.memory_space<vmem>>, vector<8x32xf32>
    %cst_188 = arith.constant dense<0.000000e+00> : vector<8x96xf32>
    %395 = tpu.matmul %394, %20, %cst_188 {dimension_numbers = #tpu.dot_dimension_numbers<[1], [0], [0], [1], [0, 0, 1, 1], [], []>} : vector<8x32xf32>, vector<32x96xf32>, vector<8x96xf32> -> vector<8x96xf32>
    %c0_189 = arith.constant 0 : index
    %c0_190 = arith.constant 0 : index
    %396 = vector.load %arg12[%c0_189, %c0_190] : memref<64x96xf32, #tpu.memory_space<vmem>>, vector<8x96xf32>
    %397 = vector.extract_strided_slice %396 {offsets = [0, 0], sizes = [8, 64], strides = [1, 1]} : vector<8x96xf32> to vector<8x64xf32>
    %398 = vector.extract_strided_slice %395 {offsets = [0, 0], sizes = [8, 64], strides = [1, 1]} : vector<8x96xf32> to vector<8x64xf32>
    %399 = arith.addf %397, %398 : vector<8x64xf32>
    %400 = arith.negf %399 : vector<8x64xf32>
    %401 = math.exp %400 : vector<8x64xf32>
    %cst_191 = arith.constant 1.000000e+00 : f32
    %402 = vector.broadcast %cst_191 : f32 to vector<8x64xf32>
    %403 = arith.addf %402, %401 : vector<8x64xf32>
    %404 = arith.divf %402, %403 : vector<8x64xf32>
    %405 = vector.extract_strided_slice %404 {offsets = [0, 0], sizes = [8, 32], strides = [1, 1]} : vector<8x64xf32> to vector<8x32xf32>
    %406 = vector.extract_strided_slice %404 {offsets = [0, 32], sizes = [8, 32], strides = [1, 1]} : vector<8x64xf32> to vector<8x32xf32>
    %407 = vector.extract_strided_slice %396 {offsets = [0, 64], sizes = [8, 32], strides = [1, 1]} : vector<8x96xf32> to vector<8x32xf32>
    %408 = vector.extract_strided_slice %395 {offsets = [0, 64], sizes = [8, 32], strides = [1, 1]} : vector<8x96xf32> to vector<8x32xf32>
    %409 = arith.addf %408, %28 : vector<8x32xf32>
    %410 = arith.mulf %405, %409 : vector<8x32xf32>
    %411 = arith.addf %407, %410 : vector<8x32xf32>
    %412 = math.tanh %411 : vector<8x32xf32>
    %413 = arith.subf %394, %412 : vector<8x32xf32>
    %414 = arith.mulf %406, %413 : vector<8x32xf32>
    %415 = arith.addf %412, %414 : vector<8x32xf32>
    %c0_192 = arith.constant 0 : index
    %c0_193 = arith.constant 0 : index
    %416 = vector.load %arg15[%c0_192, %c0_193] : memref<8x32xf32, #tpu.memory_space<vmem>>, vector<8x32xf32>
    tpu.vector_store %arg15[%c0_192, %c0_193], %415 {strides = array<i32>} : memref<8x32xf32, #tpu.memory_space<vmem>>, vector<8x32xf32>,
    %c56_194 = arith.constant 56 : index
    %c0_195 = arith.constant 0 : index
    %417 = vector.load %arg13[%c56_194, %c0_195] : memref<64x64xf32, #tpu.memory_space<vmem>>, vector<8x32xf32>
    tpu.vector_store %arg13[%c56_194, %c0_195], %392 {strides = array<i32>} : memref<64x64xf32, #tpu.memory_space<vmem>>, vector<8x32xf32>,
    %c0_196 = arith.constant 0 : index
    %c32_197 = arith.constant 32 : index
    %418 = vector.load %arg13[%c0_196, %c32_197] : memref<64x64xf32, #tpu.memory_space<vmem>>, vector<8x32xf32>
    tpu.vector_store %arg13[%c0_196, %c32_197], %415 {strides = array<i32>} : memref<64x64xf32, #tpu.memory_space<vmem>>, vector<8x32xf32>,
    %c0_198 = arith.constant 0 : index
    %c0_199 = arith.constant 0 : index
    %419 = vector.load %arg13[%c0_198, %c0_199] : memref<64x64xf32, #tpu.memory_space<vmem>>, vector<64x64xf32>
    %c0_200 = arith.constant 0 : index
    %c0_201 = arith.constant 0 : index
    %c0_202 = arith.constant 0 : index
    %c0_203 = arith.constant 0 : index
    %420 = vector.load %arg3[%c0_200, %c0_201, %c0_202, %c0_203] : memref<1x2x64x96xf32, #tpu.memory_space<vmem>>, vector<1x1x64x96xf32>
    %421 = vector.shape_cast %420 : vector<1x1x64x96xf32> to vector<64x96xf32>
    %cst_204 = arith.constant dense<0.000000e+00> : vector<64x96xf32>
    %422 = tpu.matmul %419, %421, %cst_204 {dimension_numbers = #tpu.dot_dimension_numbers<[1], [0], [0], [1], [0, 0, 1, 1], [], []>} : vector<64x64xf32>, vector<64x96xf32>, vector<64x96xf32> -> vector<64x96xf32>
    %c1_205 = arith.constant 1 : index
    %c0_206 = arith.constant 0 : index
    %c0_207 = arith.constant 0 : index
    %c0_208 = arith.constant 0 : index
    %423 = vector.load %arg5[%c1_205, %c0_206, %c0_207, %c0_208] : memref<2x2x1x96xf32, #tpu.memory_space<vmem>>, vector<1x1x1x96xf32>
    %424 = vector.shape_cast %423 : vector<1x1x1x96xf32> to vector<1x96xf32>
    %425 = vector.broadcast %424 : vector<1x96xf32> to vector<64x96xf32>
    %426 = arith.addf %422, %425 : vector<64x96xf32>
    %c0_209 = arith.constant 0 : index
    %c0_210 = arith.constant 0 : index
    %427 = vector.load %arg11[%c0_209, %c0_210] : memref<64x96xf32, #tpu.memory_space<vmem>>, vector<64x96xf32>
    tpu.vector_store %arg11[%c0_209, %c0_210], %426 {strides = array<i32>} : memref<64x96xf32, #tpu.memory_space<vmem>>, vector<64x96xf32>,
    %c0_211 = arith.constant 0 : index
    %c1_212 = arith.constant 1 : index
    %c0_213 = arith.constant 0 : index
    %c0_214 = arith.constant 0 : index
    %428 = vector.load %arg3[%c0_211, %c1_212, %c0_213, %c0_214] : memref<1x2x64x96xf32, #tpu.memory_space<vmem>>, vector<1x1x64x96xf32>
    %429 = vector.shape_cast %428 : vector<1x1x64x96xf32> to vector<64x96xf32>
    %cst_215 = arith.constant dense<0.000000e+00> : vector<64x96xf32>
    %430 = tpu.matmul %419, %429, %cst_215 {dimension_numbers = #tpu.dot_dimension_numbers<[1], [0], [0], [1], [0, 0, 1, 1], [], []>} : vector<64x64xf32>, vector<64x96xf32>, vector<64x96xf32> -> vector<64x96xf32>
    %c1_216 = arith.constant 1 : index
    %c1_217 = arith.constant 1 : index
    %c0_218 = arith.constant 0 : index
    %c0_219 = arith.constant 0 : index
    %431 = vector.load %arg5[%c1_216, %c1_217, %c0_218, %c0_219] : memref<2x2x1x96xf32, #tpu.memory_space<vmem>>, vector<1x1x1x96xf32>
    %432 = vector.shape_cast %431 : vector<1x1x1x96xf32> to vector<1x96xf32>
    %433 = vector.broadcast %432 : vector<1x96xf32> to vector<64x96xf32>
    %434 = arith.addf %430, %433 : vector<64x96xf32>
    %c0_220 = arith.constant 0 : index
    %c0_221 = arith.constant 0 : index
    %435 = vector.load %arg12[%c0_220, %c0_221] : memref<64x96xf32, #tpu.memory_space<vmem>>, vector<64x96xf32>
    tpu.vector_store %arg12[%c0_220, %c0_221], %434 {strides = array<i32>} : memref<64x96xf32, #tpu.memory_space<vmem>>, vector<64x96xf32>,
    %c1_222 = arith.constant 1 : index
    %c0_223 = arith.constant 0 : index
    %c0_224 = arith.constant 0 : index
    %c0_225 = arith.constant 0 : index
    %436 = vector.load %arg4[%c1_222, %c0_223, %c0_224, %c0_225] : memref<2x2x32x96xf32, #tpu.memory_space<vmem>>, vector<1x1x32x96xf32>
    %437 = vector.shape_cast %436 : vector<1x1x32x96xf32> to vector<32x96xf32>
    %c1_226 = arith.constant 1 : index
    %c1_227 = arith.constant 1 : index
    %c0_228 = arith.constant 0 : index
    %c0_229 = arith.constant 0 : index
    %438 = vector.load %arg4[%c1_226, %c1_227, %c0_228, %c0_229] : memref<2x2x32x96xf32, #tpu.memory_space<vmem>>, vector<1x1x32x96xf32>
    %439 = vector.shape_cast %438 : vector<1x1x32x96xf32> to vector<32x96xf32>
    %c1_230 = arith.constant 1 : index
    %c0_231 = arith.constant 0 : index
    %c0_232 = arith.constant 0 : index
    %c0_233 = arith.constant 0 : index
    %440 = vector.load %arg6[%c1_230, %c0_231, %c0_232, %c0_233] : memref<2x2x1x32xf32, #tpu.memory_space<vmem>>, vector<1x1x1x32xf32>
    %441 = vector.shape_cast %440 : vector<1x1x1x32xf32> to vector<1x32xf32>
    %442 = vector.shape_cast %441 : vector<1x32xf32> to vector<1x32xf32>
    %443 = vector.broadcast %442 : vector<1x32xf32> to vector<8x32xf32>
    %c1_234 = arith.constant 1 : index
    %c1_235 = arith.constant 1 : index
    %c0_236 = arith.constant 0 : index
    %c0_237 = arith.constant 0 : index
    %444 = vector.load %arg6[%c1_234, %c1_235, %c0_236, %c0_237] : memref<2x2x1x32xf32, #tpu.memory_space<vmem>>, vector<1x1x1x32xf32>
    %445 = vector.shape_cast %444 : vector<1x1x1x32xf32> to vector<1x32xf32>
    %446 = vector.shape_cast %445 : vector<1x32xf32> to vector<1x32xf32>
    %447 = vector.broadcast %446 : vector<1x32xf32> to vector<8x32xf32>
    %c2 = arith.constant 2 : index
    %c0_238 = arith.constant 0 : index
    %c0_239 = arith.constant 0 : index
    %448 = vector.load %arg1[%c2, %c0_238, %c0_239] : memref<4x8x32xf32, #tpu.memory_space<vmem>>, vector<1x8x32xf32>
    %449 = vector.shape_cast %448 : vector<1x8x32xf32> to vector<8x32xf32>
    %c0_240 = arith.constant 0 : index
    %c0_241 = arith.constant 0 : index
    %450 = vector.load %arg14[%c0_240, %c0_241] : memref<8x32xf32, #tpu.memory_space<vmem>>, vector<8x32xf32>
    tpu.vector_store %arg14[%c0_240, %c0_241], %449 {strides = array<i32>} : memref<8x32xf32, #tpu.memory_space<vmem>>, vector<8x32xf32>,
    %c3 = arith.constant 3 : index
    %c0_242 = arith.constant 0 : index
    %c0_243 = arith.constant 0 : index
    %451 = vector.load %arg1[%c3, %c0_242, %c0_243] : memref<4x8x32xf32, #tpu.memory_space<vmem>>, vector<1x8x32xf32>
    %452 = vector.shape_cast %451 : vector<1x8x32xf32> to vector<8x32xf32>
    %c0_244 = arith.constant 0 : index
    %c0_245 = arith.constant 0 : index
    %453 = vector.load %arg15[%c0_244, %c0_245] : memref<8x32xf32, #tpu.memory_space<vmem>>, vector<8x32xf32>
    tpu.vector_store %arg15[%c0_244, %c0_245], %452 {strides = array<i32>} : memref<8x32xf32, #tpu.memory_space<vmem>>, vector<8x32xf32>,
    %c0_246 = arith.constant 0 : index
    %c0_247 = arith.constant 0 : index
    %454 = vector.load %arg14[%c0_246, %c0_247] : memref<8x32xf32, #tpu.memory_space<vmem>>, vector<8x32xf32>
    %cst_248 = arith.constant dense<0.000000e+00> : vector<8x96xf32>
    %455 = tpu.matmul %454, %437, %cst_248 {dimension_numbers = #tpu.dot_dimension_numbers<[1], [0], [0], [1], [0, 0, 1, 1], [], []>} : vector<8x32xf32>, vector<32x96xf32>, vector<8x96xf32> -> vector<8x96xf32>
    %c0_249 = arith.constant 0 : index
    %c0_250 = arith.constant 0 : index
    %456 = vector.load %arg11[%c0_249, %c0_250] : memref<64x96xf32, #tpu.memory_space<vmem>>, vector<8x96xf32>
    %457 = vector.extract_strided_slice %456 {offsets = [0, 0], sizes = [8, 64], strides = [1, 1]} : vector<8x96xf32> to vector<8x64xf32>
    %458 = vector.extract_strided_slice %455 {offsets = [0, 0], sizes = [8, 64], strides = [1, 1]} : vector<8x96xf32> to vector<8x64xf32>
    %459 = arith.addf %457, %458 : vector<8x64xf32>
    %460 = arith.negf %459 : vector<8x64xf32>
    %461 = math.exp %460 : vector<8x64xf32>
    %cst_251 = arith.constant 1.000000e+00 : f32
    %462 = vector.broadcast %cst_251 : f32 to vector<8x64xf32>
    %463 = arith.addf %462, %461 : vector<8x64xf32>
    %464 = arith.divf %462, %463 : vector<8x64xf32>
    %465 = vector.extract_strided_slice %464 {offsets = [0, 0], sizes = [8, 32], strides = [1, 1]} : vector<8x64xf32> to vector<8x32xf32>
    %466 = vector.extract_strided_slice %464 {offsets = [0, 32], sizes = [8, 32], strides = [1, 1]} : vector<8x64xf32> to vector<8x32xf32>
    %467 = vector.extract_strided_slice %456 {offsets = [0, 64], sizes = [8, 32], strides = [1, 1]} : vector<8x96xf32> to vector<8x32xf32>
    %468 = vector.extract_strided_slice %455 {offsets = [0, 64], sizes = [8, 32], strides = [1, 1]} : vector<8x96xf32> to vector<8x32xf32>
    %469 = arith.addf %468, %443 : vector<8x32xf32>
    %470 = arith.mulf %465, %469 : vector<8x32xf32>
    %471 = arith.addf %467, %470 : vector<8x32xf32>
    %472 = math.tanh %471 : vector<8x32xf32>
    %473 = arith.subf %454, %472 : vector<8x32xf32>
    %474 = arith.mulf %466, %473 : vector<8x32xf32>
    %475 = arith.addf %472, %474 : vector<8x32xf32>
    %c0_252 = arith.constant 0 : index
    %c0_253 = arith.constant 0 : index
    %476 = vector.load %arg14[%c0_252, %c0_253] : memref<8x32xf32, #tpu.memory_space<vmem>>, vector<8x32xf32>
    tpu.vector_store %arg14[%c0_252, %c0_253], %475 {strides = array<i32>} : memref<8x32xf32, #tpu.memory_space<vmem>>, vector<8x32xf32>,
    %c0_254 = arith.constant 0 : index
    %c0_255 = arith.constant 0 : index
    %477 = vector.load %arg15[%c0_254, %c0_255] : memref<8x32xf32, #tpu.memory_space<vmem>>, vector<8x32xf32>
    %cst_256 = arith.constant dense<0.000000e+00> : vector<8x96xf32>
    %478 = tpu.matmul %477, %439, %cst_256 {dimension_numbers = #tpu.dot_dimension_numbers<[1], [0], [0], [1], [0, 0, 1, 1], [], []>} : vector<8x32xf32>, vector<32x96xf32>, vector<8x96xf32> -> vector<8x96xf32>
    %c56_257 = arith.constant 56 : index
    %c0_258 = arith.constant 0 : index
    %479 = vector.load %arg12[%c56_257, %c0_258] : memref<64x96xf32, #tpu.memory_space<vmem>>, vector<8x96xf32>
    %480 = vector.extract_strided_slice %479 {offsets = [0, 0], sizes = [8, 64], strides = [1, 1]} : vector<8x96xf32> to vector<8x64xf32>
    %481 = vector.extract_strided_slice %478 {offsets = [0, 0], sizes = [8, 64], strides = [1, 1]} : vector<8x96xf32> to vector<8x64xf32>
    %482 = arith.addf %480, %481 : vector<8x64xf32>
    %483 = arith.negf %482 : vector<8x64xf32>
    %484 = math.exp %483 : vector<8x64xf32>
    %cst_259 = arith.constant 1.000000e+00 : f32
    %485 = vector.broadcast %cst_259 : f32 to vector<8x64xf32>
    %486 = arith.addf %485, %484 : vector<8x64xf32>
    %487 = arith.divf %485, %486 : vector<8x64xf32>
    %488 = vector.extract_strided_slice %487 {offsets = [0, 0], sizes = [8, 32], strides = [1, 1]} : vector<8x64xf32> to vector<8x32xf32>
    %489 = vector.extract_strided_slice %487 {offsets = [0, 32], sizes = [8, 32], strides = [1, 1]} : vector<8x64xf32> to vector<8x32xf32>
    %490 = vector.extract_strided_slice %479 {offsets = [0, 64], sizes = [8, 32], strides = [1, 1]} : vector<8x96xf32> to vector<8x32xf32>
    %491 = vector.extract_strided_slice %478 {offsets = [0, 64], sizes = [8, 32], strides = [1, 1]} : vector<8x96xf32> to vector<8x32xf32>
    %492 = arith.addf %491, %447 : vector<8x32xf32>
    %493 = arith.mulf %488, %492 : vector<8x32xf32>
    %494 = arith.addf %490, %493 : vector<8x32xf32>
    %495 = math.tanh %494 : vector<8x32xf32>
    %496 = arith.subf %477, %495 : vector<8x32xf32>
    %497 = arith.mulf %489, %496 : vector<8x32xf32>
    %498 = arith.addf %495, %497 : vector<8x32xf32>
    %c0_260 = arith.constant 0 : index
    %c0_261 = arith.constant 0 : index
    %499 = vector.load %arg15[%c0_260, %c0_261] : memref<8x32xf32, #tpu.memory_space<vmem>>, vector<8x32xf32>
    tpu.vector_store %arg15[%c0_260, %c0_261], %498 {strides = array<i32>} : memref<8x32xf32, #tpu.memory_space<vmem>>, vector<8x32xf32>,
    %c0_262 = arith.constant 0 : index
    %c0_263 = arith.constant 0 : index
    %500 = vector.load %arg14[%c0_262, %c0_263] : memref<8x32xf32, #tpu.memory_space<vmem>>, vector<8x32xf32>
    %cst_264 = arith.constant dense<0.000000e+00> : vector<8x96xf32>
    %501 = tpu.matmul %500, %437, %cst_264 {dimension_numbers = #tpu.dot_dimension_numbers<[1], [0], [0], [1], [0, 0, 1, 1], [], []>} : vector<8x32xf32>, vector<32x96xf32>, vector<8x96xf32> -> vector<8x96xf32>
    %c8_265 = arith.constant 8 : index
    %c0_266 = arith.constant 0 : index
    %502 = vector.load %arg11[%c8_265, %c0_266] : memref<64x96xf32, #tpu.memory_space<vmem>>, vector<8x96xf32>
    %503 = vector.extract_strided_slice %502 {offsets = [0, 0], sizes = [8, 64], strides = [1, 1]} : vector<8x96xf32> to vector<8x64xf32>
    %504 = vector.extract_strided_slice %501 {offsets = [0, 0], sizes = [8, 64], strides = [1, 1]} : vector<8x96xf32> to vector<8x64xf32>
    %505 = arith.addf %503, %504 : vector<8x64xf32>
    %506 = arith.negf %505 : vector<8x64xf32>
    %507 = math.exp %506 : vector<8x64xf32>
    %cst_267 = arith.constant 1.000000e+00 : f32
    %508 = vector.broadcast %cst_267 : f32 to vector<8x64xf32>
    %509 = arith.addf %508, %507 : vector<8x64xf32>
    %510 = arith.divf %508, %509 : vector<8x64xf32>
    %511 = vector.extract_strided_slice %510 {offsets = [0, 0], sizes = [8, 32], strides = [1, 1]} : vector<8x64xf32> to vector<8x32xf32>
    %512 = vector.extract_strided_slice %510 {offsets = [0, 32], sizes = [8, 32], strides = [1, 1]} : vector<8x64xf32> to vector<8x32xf32>
    %513 = vector.extract_strided_slice %502 {offsets = [0, 64], sizes = [8, 32], strides = [1, 1]} : vector<8x96xf32> to vector<8x32xf32>
    %514 = vector.extract_strided_slice %501 {offsets = [0, 64], sizes = [8, 32], strides = [1, 1]} : vector<8x96xf32> to vector<8x32xf32>
    %515 = arith.addf %514, %443 : vector<8x32xf32>
    %516 = arith.mulf %511, %515 : vector<8x32xf32>
    %517 = arith.addf %513, %516 : vector<8x32xf32>
    %518 = math.tanh %517 : vector<8x32xf32>
    %519 = arith.subf %500, %518 : vector<8x32xf32>
    %520 = arith.mulf %512, %519 : vector<8x32xf32>
    %521 = arith.addf %518, %520 : vector<8x32xf32>
    %c0_268 = arith.constant 0 : index
    %c0_269 = arith.constant 0 : index
    %522 = vector.load %arg14[%c0_268, %c0_269] : memref<8x32xf32, #tpu.memory_space<vmem>>, vector<8x32xf32>
    tpu.vector_store %arg14[%c0_268, %c0_269], %521 {strides = array<i32>} : memref<8x32xf32, #tpu.memory_space<vmem>>, vector<8x32xf32>,
    %c0_270 = arith.constant 0 : index
    %c0_271 = arith.constant 0 : index
    %523 = vector.load %arg15[%c0_270, %c0_271] : memref<8x32xf32, #tpu.memory_space<vmem>>, vector<8x32xf32>
    %cst_272 = arith.constant dense<0.000000e+00> : vector<8x96xf32>
    %524 = tpu.matmul %523, %439, %cst_272 {dimension_numbers = #tpu.dot_dimension_numbers<[1], [0], [0], [1], [0, 0, 1, 1], [], []>} : vector<8x32xf32>, vector<32x96xf32>, vector<8x96xf32> -> vector<8x96xf32>
    %c48_273 = arith.constant 48 : index
    %c0_274 = arith.constant 0 : index
    %525 = vector.load %arg12[%c48_273, %c0_274] : memref<64x96xf32, #tpu.memory_space<vmem>>, vector<8x96xf32>
    %526 = vector.extract_strided_slice %525 {offsets = [0, 0], sizes = [8, 64], strides = [1, 1]} : vector<8x96xf32> to vector<8x64xf32>
    %527 = vector.extract_strided_slice %524 {offsets = [0, 0], sizes = [8, 64], strides = [1, 1]} : vector<8x96xf32> to vector<8x64xf32>
    %528 = arith.addf %526, %527 : vector<8x64xf32>
    %529 = arith.negf %528 : vector<8x64xf32>
    %530 = math.exp %529 : vector<8x64xf32>
    %cst_275 = arith.constant 1.000000e+00 : f32
    %531 = vector.broadcast %cst_275 : f32 to vector<8x64xf32>
    %532 = arith.addf %531, %530 : vector<8x64xf32>
    %533 = arith.divf %531, %532 : vector<8x64xf32>
    %534 = vector.extract_strided_slice %533 {offsets = [0, 0], sizes = [8, 32], strides = [1, 1]} : vector<8x64xf32> to vector<8x32xf32>
    %535 = vector.extract_strided_slice %533 {offsets = [0, 32], sizes = [8, 32], strides = [1, 1]} : vector<8x64xf32> to vector<8x32xf32>
    %536 = vector.extract_strided_slice %525 {offsets = [0, 64], sizes = [8, 32], strides = [1, 1]} : vector<8x96xf32> to vector<8x32xf32>
    %537 = vector.extract_strided_slice %524 {offsets = [0, 64], sizes = [8, 32], strides = [1, 1]} : vector<8x96xf32> to vector<8x32xf32>
    %538 = arith.addf %537, %447 : vector<8x32xf32>
    %539 = arith.mulf %534, %538 : vector<8x32xf32>
    %540 = arith.addf %536, %539 : vector<8x32xf32>
    %541 = math.tanh %540 : vector<8x32xf32>
    %542 = arith.subf %523, %541 : vector<8x32xf32>
    %543 = arith.mulf %535, %542 : vector<8x32xf32>
    %544 = arith.addf %541, %543 : vector<8x32xf32>
    %c0_276 = arith.constant 0 : index
    %c0_277 = arith.constant 0 : index
    %545 = vector.load %arg15[%c0_276, %c0_277] : memref<8x32xf32, #tpu.memory_space<vmem>>, vector<8x32xf32>
    tpu.vector_store %arg15[%c0_276, %c0_277], %544 {strides = array<i32>} : memref<8x32xf32, #tpu.memory_space<vmem>>, vector<8x32xf32>,
    %c0_278 = arith.constant 0 : index
    %c0_279 = arith.constant 0 : index
    %546 = vector.load %arg14[%c0_278, %c0_279] : memref<8x32xf32, #tpu.memory_space<vmem>>, vector<8x32xf32>
    %cst_280 = arith.constant dense<0.000000e+00> : vector<8x96xf32>
    %547 = tpu.matmul %546, %437, %cst_280 {dimension_numbers = #tpu.dot_dimension_numbers<[1], [0], [0], [1], [0, 0, 1, 1], [], []>} : vector<8x32xf32>, vector<32x96xf32>, vector<8x96xf32> -> vector<8x96xf32>
    %c16_281 = arith.constant 16 : index
    %c0_282 = arith.constant 0 : index
    %548 = vector.load %arg11[%c16_281, %c0_282] : memref<64x96xf32, #tpu.memory_space<vmem>>, vector<8x96xf32>
    %549 = vector.extract_strided_slice %548 {offsets = [0, 0], sizes = [8, 64], strides = [1, 1]} : vector<8x96xf32> to vector<8x64xf32>
    %550 = vector.extract_strided_slice %547 {offsets = [0, 0], sizes = [8, 64], strides = [1, 1]} : vector<8x96xf32> to vector<8x64xf32>
    %551 = arith.addf %549, %550 : vector<8x64xf32>
    %552 = arith.negf %551 : vector<8x64xf32>
    %553 = math.exp %552 : vector<8x64xf32>
    %cst_283 = arith.constant 1.000000e+00 : f32
    %554 = vector.broadcast %cst_283 : f32 to vector<8x64xf32>
    %555 = arith.addf %554, %553 : vector<8x64xf32>
    %556 = arith.divf %554, %555 : vector<8x64xf32>
    %557 = vector.extract_strided_slice %556 {offsets = [0, 0], sizes = [8, 32], strides = [1, 1]} : vector<8x64xf32> to vector<8x32xf32>
    %558 = vector.extract_strided_slice %556 {offsets = [0, 32], sizes = [8, 32], strides = [1, 1]} : vector<8x64xf32> to vector<8x32xf32>
    %559 = vector.extract_strided_slice %548 {offsets = [0, 64], sizes = [8, 32], strides = [1, 1]} : vector<8x96xf32> to vector<8x32xf32>
    %560 = vector.extract_strided_slice %547 {offsets = [0, 64], sizes = [8, 32], strides = [1, 1]} : vector<8x96xf32> to vector<8x32xf32>
    %561 = arith.addf %560, %443 : vector<8x32xf32>
    %562 = arith.mulf %557, %561 : vector<8x32xf32>
    %563 = arith.addf %559, %562 : vector<8x32xf32>
    %564 = math.tanh %563 : vector<8x32xf32>
    %565 = arith.subf %546, %564 : vector<8x32xf32>
    %566 = arith.mulf %558, %565 : vector<8x32xf32>
    %567 = arith.addf %564, %566 : vector<8x32xf32>
    %c0_284 = arith.constant 0 : index
    %c0_285 = arith.constant 0 : index
    %568 = vector.load %arg14[%c0_284, %c0_285] : memref<8x32xf32, #tpu.memory_space<vmem>>, vector<8x32xf32>
    tpu.vector_store %arg14[%c0_284, %c0_285], %567 {strides = array<i32>} : memref<8x32xf32, #tpu.memory_space<vmem>>, vector<8x32xf32>,
    %c0_286 = arith.constant 0 : index
    %c0_287 = arith.constant 0 : index
    %569 = vector.load %arg15[%c0_286, %c0_287] : memref<8x32xf32, #tpu.memory_space<vmem>>, vector<8x32xf32>
    %cst_288 = arith.constant dense<0.000000e+00> : vector<8x96xf32>
    %570 = tpu.matmul %569, %439, %cst_288 {dimension_numbers = #tpu.dot_dimension_numbers<[1], [0], [0], [1], [0, 0, 1, 1], [], []>} : vector<8x32xf32>, vector<32x96xf32>, vector<8x96xf32> -> vector<8x96xf32>
    %c40_289 = arith.constant 40 : index
    %c0_290 = arith.constant 0 : index
    %571 = vector.load %arg12[%c40_289, %c0_290] : memref<64x96xf32, #tpu.memory_space<vmem>>, vector<8x96xf32>
    %572 = vector.extract_strided_slice %571 {offsets = [0, 0], sizes = [8, 64], strides = [1, 1]} : vector<8x96xf32> to vector<8x64xf32>
    %573 = vector.extract_strided_slice %570 {offsets = [0, 0], sizes = [8, 64], strides = [1, 1]} : vector<8x96xf32> to vector<8x64xf32>
    %574 = arith.addf %572, %573 : vector<8x64xf32>
    %575 = arith.negf %574 : vector<8x64xf32>
    %576 = math.exp %575 : vector<8x64xf32>
    %cst_291 = arith.constant 1.000000e+00 : f32
    %577 = vector.broadcast %cst_291 : f32 to vector<8x64xf32>
    %578 = arith.addf %577, %576 : vector<8x64xf32>
    %579 = arith.divf %577, %578 : vector<8x64xf32>
    %580 = vector.extract_strided_slice %579 {offsets = [0, 0], sizes = [8, 32], strides = [1, 1]} : vector<8x64xf32> to vector<8x32xf32>
    %581 = vector.extract_strided_slice %579 {offsets = [0, 32], sizes = [8, 32], strides = [1, 1]} : vector<8x64xf32> to vector<8x32xf32>
    %582 = vector.extract_strided_slice %571 {offsets = [0, 64], sizes = [8, 32], strides = [1, 1]} : vector<8x96xf32> to vector<8x32xf32>
    %583 = vector.extract_strided_slice %570 {offsets = [0, 64], sizes = [8, 32], strides = [1, 1]} : vector<8x96xf32> to vector<8x32xf32>
    %584 = arith.addf %583, %447 : vector<8x32xf32>
    %585 = arith.mulf %580, %584 : vector<8x32xf32>
    %586 = arith.addf %582, %585 : vector<8x32xf32>
    %587 = math.tanh %586 : vector<8x32xf32>
    %588 = arith.subf %569, %587 : vector<8x32xf32>
    %589 = arith.mulf %581, %588 : vector<8x32xf32>
    %590 = arith.addf %587, %589 : vector<8x32xf32>
    %c0_292 = arith.constant 0 : index
    %c0_293 = arith.constant 0 : index
    %591 = vector.load %arg15[%c0_292, %c0_293] : memref<8x32xf32, #tpu.memory_space<vmem>>, vector<8x32xf32>
    tpu.vector_store %arg15[%c0_292, %c0_293], %590 {strides = array<i32>} : memref<8x32xf32, #tpu.memory_space<vmem>>, vector<8x32xf32>,
    %c0_294 = arith.constant 0 : index
    %c0_295 = arith.constant 0 : index
    %592 = vector.load %arg14[%c0_294, %c0_295] : memref<8x32xf32, #tpu.memory_space<vmem>>, vector<8x32xf32>
    %cst_296 = arith.constant dense<0.000000e+00> : vector<8x96xf32>
    %593 = tpu.matmul %592, %437, %cst_296 {dimension_numbers = #tpu.dot_dimension_numbers<[1], [0], [0], [1], [0, 0, 1, 1], [], []>} : vector<8x32xf32>, vector<32x96xf32>, vector<8x96xf32> -> vector<8x96xf32>
    %c24_297 = arith.constant 24 : index
    %c0_298 = arith.constant 0 : index
    %594 = vector.load %arg11[%c24_297, %c0_298] : memref<64x96xf32, #tpu.memory_space<vmem>>, vector<8x96xf32>
    %595 = vector.extract_strided_slice %594 {offsets = [0, 0], sizes = [8, 64], strides = [1, 1]} : vector<8x96xf32> to vector<8x64xf32>
    %596 = vector.extract_strided_slice %593 {offsets = [0, 0], sizes = [8, 64], strides = [1, 1]} : vector<8x96xf32> to vector<8x64xf32>
    %597 = arith.addf %595, %596 : vector<8x64xf32>
    %598 = arith.negf %597 : vector<8x64xf32>
    %599 = math.exp %598 : vector<8x64xf32>
    %cst_299 = arith.constant 1.000000e+00 : f32
    %600 = vector.broadcast %cst_299 : f32 to vector<8x64xf32>
    %601 = arith.addf %600, %599 : vector<8x64xf32>
    %602 = arith.divf %600, %601 : vector<8x64xf32>
    %603 = vector.extract_strided_slice %602 {offsets = [0, 0], sizes = [8, 32], strides = [1, 1]} : vector<8x64xf32> to vector<8x32xf32>
    %604 = vector.extract_strided_slice %602 {offsets = [0, 32], sizes = [8, 32], strides = [1, 1]} : vector<8x64xf32> to vector<8x32xf32>
    %605 = vector.extract_strided_slice %594 {offsets = [0, 64], sizes = [8, 32], strides = [1, 1]} : vector<8x96xf32> to vector<8x32xf32>
    %606 = vector.extract_strided_slice %593 {offsets = [0, 64], sizes = [8, 32], strides = [1, 1]} : vector<8x96xf32> to vector<8x32xf32>
    %607 = arith.addf %606, %443 : vector<8x32xf32>
    %608 = arith.mulf %603, %607 : vector<8x32xf32>
    %609 = arith.addf %605, %608 : vector<8x32xf32>
    %610 = math.tanh %609 : vector<8x32xf32>
    %611 = arith.subf %592, %610 : vector<8x32xf32>
    %612 = arith.mulf %604, %611 : vector<8x32xf32>
    %613 = arith.addf %610, %612 : vector<8x32xf32>
    %c0_300 = arith.constant 0 : index
    %c0_301 = arith.constant 0 : index
    %614 = vector.load %arg14[%c0_300, %c0_301] : memref<8x32xf32, #tpu.memory_space<vmem>>, vector<8x32xf32>
    tpu.vector_store %arg14[%c0_300, %c0_301], %613 {strides = array<i32>} : memref<8x32xf32, #tpu.memory_space<vmem>>, vector<8x32xf32>,
    %c0_302 = arith.constant 0 : index
    %c0_303 = arith.constant 0 : index
    %615 = vector.load %arg15[%c0_302, %c0_303] : memref<8x32xf32, #tpu.memory_space<vmem>>, vector<8x32xf32>
    %cst_304 = arith.constant dense<0.000000e+00> : vector<8x96xf32>
    %616 = tpu.matmul %615, %439, %cst_304 {dimension_numbers = #tpu.dot_dimension_numbers<[1], [0], [0], [1], [0, 0, 1, 1], [], []>} : vector<8x32xf32>, vector<32x96xf32>, vector<8x96xf32> -> vector<8x96xf32>
    %c32_305 = arith.constant 32 : index
    %c0_306 = arith.constant 0 : index
    %617 = vector.load %arg12[%c32_305, %c0_306] : memref<64x96xf32, #tpu.memory_space<vmem>>, vector<8x96xf32>
    %618 = vector.extract_strided_slice %617 {offsets = [0, 0], sizes = [8, 64], strides = [1, 1]} : vector<8x96xf32> to vector<8x64xf32>
    %619 = vector.extract_strided_slice %616 {offsets = [0, 0], sizes = [8, 64], strides = [1, 1]} : vector<8x96xf32> to vector<8x64xf32>
    %620 = arith.addf %618, %619 : vector<8x64xf32>
    %621 = arith.negf %620 : vector<8x64xf32>
    %622 = math.exp %621 : vector<8x64xf32>
    %cst_307 = arith.constant 1.000000e+00 : f32
    %623 = vector.broadcast %cst_307 : f32 to vector<8x64xf32>
    %624 = arith.addf %623, %622 : vector<8x64xf32>
    %625 = arith.divf %623, %624 : vector<8x64xf32>
    %626 = vector.extract_strided_slice %625 {offsets = [0, 0], sizes = [8, 32], strides = [1, 1]} : vector<8x64xf32> to vector<8x32xf32>
    %627 = vector.extract_strided_slice %625 {offsets = [0, 32], sizes = [8, 32], strides = [1, 1]} : vector<8x64xf32> to vector<8x32xf32>
    %628 = vector.extract_strided_slice %617 {offsets = [0, 64], sizes = [8, 32], strides = [1, 1]} : vector<8x96xf32> to vector<8x32xf32>
    %629 = vector.extract_strided_slice %616 {offsets = [0, 64], sizes = [8, 32], strides = [1, 1]} : vector<8x96xf32> to vector<8x32xf32>
    %630 = arith.addf %629, %447 : vector<8x32xf32>
    %631 = arith.mulf %626, %630 : vector<8x32xf32>
    %632 = arith.addf %628, %631 : vector<8x32xf32>
    %633 = math.tanh %632 : vector<8x32xf32>
    %634 = arith.subf %615, %633 : vector<8x32xf32>
    %635 = arith.mulf %627, %634 : vector<8x32xf32>
    %636 = arith.addf %633, %635 : vector<8x32xf32>
    %c0_308 = arith.constant 0 : index
    %c0_309 = arith.constant 0 : index
    %637 = vector.load %arg15[%c0_308, %c0_309] : memref<8x32xf32, #tpu.memory_space<vmem>>, vector<8x32xf32>
    tpu.vector_store %arg15[%c0_308, %c0_309], %636 {strides = array<i32>} : memref<8x32xf32, #tpu.memory_space<vmem>>, vector<8x32xf32>,
    %c0_310 = arith.constant 0 : index
    %c0_311 = arith.constant 0 : index
    %638 = vector.load %arg14[%c0_310, %c0_311] : memref<8x32xf32, #tpu.memory_space<vmem>>, vector<8x32xf32>
    %cst_312 = arith.constant dense<0.000000e+00> : vector<8x96xf32>
    %639 = tpu.matmul %638, %437, %cst_312 {dimension_numbers = #tpu.dot_dimension_numbers<[1], [0], [0], [1], [0, 0, 1, 1], [], []>} : vector<8x32xf32>, vector<32x96xf32>, vector<8x96xf32> -> vector<8x96xf32>
    %c32_313 = arith.constant 32 : index
    %c0_314 = arith.constant 0 : index
    %640 = vector.load %arg11[%c32_313, %c0_314] : memref<64x96xf32, #tpu.memory_space<vmem>>, vector<8x96xf32>
    %641 = vector.extract_strided_slice %640 {offsets = [0, 0], sizes = [8, 64], strides = [1, 1]} : vector<8x96xf32> to vector<8x64xf32>
    %642 = vector.extract_strided_slice %639 {offsets = [0, 0], sizes = [8, 64], strides = [1, 1]} : vector<8x96xf32> to vector<8x64xf32>
    %643 = arith.addf %641, %642 : vector<8x64xf32>
    %644 = arith.negf %643 : vector<8x64xf32>
    %645 = math.exp %644 : vector<8x64xf32>
    %cst_315 = arith.constant 1.000000e+00 : f32
    %646 = vector.broadcast %cst_315 : f32 to vector<8x64xf32>
    %647 = arith.addf %646, %645 : vector<8x64xf32>
    %648 = arith.divf %646, %647 : vector<8x64xf32>
    %649 = vector.extract_strided_slice %648 {offsets = [0, 0], sizes = [8, 32], strides = [1, 1]} : vector<8x64xf32> to vector<8x32xf32>
    %650 = vector.extract_strided_slice %648 {offsets = [0, 32], sizes = [8, 32], strides = [1, 1]} : vector<8x64xf32> to vector<8x32xf32>
    %651 = vector.extract_strided_slice %640 {offsets = [0, 64], sizes = [8, 32], strides = [1, 1]} : vector<8x96xf32> to vector<8x32xf32>
    %652 = vector.extract_strided_slice %639 {offsets = [0, 64], sizes = [8, 32], strides = [1, 1]} : vector<8x96xf32> to vector<8x32xf32>
    %653 = arith.addf %652, %443 : vector<8x32xf32>
    %654 = arith.mulf %649, %653 : vector<8x32xf32>
    %655 = arith.addf %651, %654 : vector<8x32xf32>
    %656 = math.tanh %655 : vector<8x32xf32>
    %657 = arith.subf %638, %656 : vector<8x32xf32>
    %658 = arith.mulf %650, %657 : vector<8x32xf32>
    %659 = arith.addf %656, %658 : vector<8x32xf32>
    %c0_316 = arith.constant 0 : index
    %c0_317 = arith.constant 0 : index
    %660 = vector.load %arg14[%c0_316, %c0_317] : memref<8x32xf32, #tpu.memory_space<vmem>>, vector<8x32xf32>
    tpu.vector_store %arg14[%c0_316, %c0_317], %659 {strides = array<i32>} : memref<8x32xf32, #tpu.memory_space<vmem>>, vector<8x32xf32>,
    %c0_318 = arith.constant 0 : index
    %c0_319 = arith.constant 0 : index
    %661 = vector.load %arg15[%c0_318, %c0_319] : memref<8x32xf32, #tpu.memory_space<vmem>>, vector<8x32xf32>
    %cst_320 = arith.constant dense<0.000000e+00> : vector<8x96xf32>
    %662 = tpu.matmul %661, %439, %cst_320 {dimension_numbers = #tpu.dot_dimension_numbers<[1], [0], [0], [1], [0, 0, 1, 1], [], []>} : vector<8x32xf32>, vector<32x96xf32>, vector<8x96xf32> -> vector<8x96xf32>
    %c24_321 = arith.constant 24 : index
    %c0_322 = arith.constant 0 : index
    %663 = vector.load %arg12[%c24_321, %c0_322] : memref<64x96xf32, #tpu.memory_space<vmem>>, vector<8x96xf32>
    %664 = vector.extract_strided_slice %663 {offsets = [0, 0], sizes = [8, 64], strides = [1, 1]} : vector<8x96xf32> to vector<8x64xf32>
    %665 = vector.extract_strided_slice %662 {offsets = [0, 0], sizes = [8, 64], strides = [1, 1]} : vector<8x96xf32> to vector<8x64xf32>
    %666 = arith.addf %664, %665 : vector<8x64xf32>
    %667 = arith.negf %666 : vector<8x64xf32>
    %668 = math.exp %667 : vector<8x64xf32>
    %cst_323 = arith.constant 1.000000e+00 : f32
    %669 = vector.broadcast %cst_323 : f32 to vector<8x64xf32>
    %670 = arith.addf %669, %668 : vector<8x64xf32>
    %671 = arith.divf %669, %670 : vector<8x64xf32>
    %672 = vector.extract_strided_slice %671 {offsets = [0, 0], sizes = [8, 32], strides = [1, 1]} : vector<8x64xf32> to vector<8x32xf32>
    %673 = vector.extract_strided_slice %671 {offsets = [0, 32], sizes = [8, 32], strides = [1, 1]} : vector<8x64xf32> to vector<8x32xf32>
    %674 = vector.extract_strided_slice %663 {offsets = [0, 64], sizes = [8, 32], strides = [1, 1]} : vector<8x96xf32> to vector<8x32xf32>
    %675 = vector.extract_strided_slice %662 {offsets = [0, 64], sizes = [8, 32], strides = [1, 1]} : vector<8x96xf32> to vector<8x32xf32>
    %676 = arith.addf %675, %447 : vector<8x32xf32>
    %677 = arith.mulf %672, %676 : vector<8x32xf32>
    %678 = arith.addf %674, %677 : vector<8x32xf32>
    %679 = math.tanh %678 : vector<8x32xf32>
    %680 = arith.subf %661, %679 : vector<8x32xf32>
    %681 = arith.mulf %673, %680 : vector<8x32xf32>
    %682 = arith.addf %679, %681 : vector<8x32xf32>
    %c0_324 = arith.constant 0 : index
    %c0_325 = arith.constant 0 : index
    %683 = vector.load %arg15[%c0_324, %c0_325] : memref<8x32xf32, #tpu.memory_space<vmem>>, vector<8x32xf32>
    tpu.vector_store %arg15[%c0_324, %c0_325], %682 {strides = array<i32>} : memref<8x32xf32, #tpu.memory_space<vmem>>, vector<8x32xf32>,
    %c0_326 = arith.constant 0 : index
    %c0_327 = arith.constant 0 : index
    %684 = vector.load %arg14[%c0_326, %c0_327] : memref<8x32xf32, #tpu.memory_space<vmem>>, vector<8x32xf32>
    %cst_328 = arith.constant dense<0.000000e+00> : vector<8x96xf32>
    %685 = tpu.matmul %684, %437, %cst_328 {dimension_numbers = #tpu.dot_dimension_numbers<[1], [0], [0], [1], [0, 0, 1, 1], [], []>} : vector<8x32xf32>, vector<32x96xf32>, vector<8x96xf32> -> vector<8x96xf32>
    %c40_329 = arith.constant 40 : index
    %c0_330 = arith.constant 0 : index
    %686 = vector.load %arg11[%c40_329, %c0_330] : memref<64x96xf32, #tpu.memory_space<vmem>>, vector<8x96xf32>
    %687 = vector.extract_strided_slice %686 {offsets = [0, 0], sizes = [8, 64], strides = [1, 1]} : vector<8x96xf32> to vector<8x64xf32>
    %688 = vector.extract_strided_slice %685 {offsets = [0, 0], sizes = [8, 64], strides = [1, 1]} : vector<8x96xf32> to vector<8x64xf32>
    %689 = arith.addf %687, %688 : vector<8x64xf32>
    %690 = arith.negf %689 : vector<8x64xf32>
    %691 = math.exp %690 : vector<8x64xf32>
    %cst_331 = arith.constant 1.000000e+00 : f32
    %692 = vector.broadcast %cst_331 : f32 to vector<8x64xf32>
    %693 = arith.addf %692, %691 : vector<8x64xf32>
    %694 = arith.divf %692, %693 : vector<8x64xf32>
    %695 = vector.extract_strided_slice %694 {offsets = [0, 0], sizes = [8, 32], strides = [1, 1]} : vector<8x64xf32> to vector<8x32xf32>
    %696 = vector.extract_strided_slice %694 {offsets = [0, 32], sizes = [8, 32], strides = [1, 1]} : vector<8x64xf32> to vector<8x32xf32>
    %697 = vector.extract_strided_slice %686 {offsets = [0, 64], sizes = [8, 32], strides = [1, 1]} : vector<8x96xf32> to vector<8x32xf32>
    %698 = vector.extract_strided_slice %685 {offsets = [0, 64], sizes = [8, 32], strides = [1, 1]} : vector<8x96xf32> to vector<8x32xf32>
    %699 = arith.addf %698, %443 : vector<8x32xf32>
    %700 = arith.mulf %695, %699 : vector<8x32xf32>
    %701 = arith.addf %697, %700 : vector<8x32xf32>
    %702 = math.tanh %701 : vector<8x32xf32>
    %703 = arith.subf %684, %702 : vector<8x32xf32>
    %704 = arith.mulf %696, %703 : vector<8x32xf32>
    %705 = arith.addf %702, %704 : vector<8x32xf32>
    %c0_332 = arith.constant 0 : index
    %c0_333 = arith.constant 0 : index
    %706 = vector.load %arg14[%c0_332, %c0_333] : memref<8x32xf32, #tpu.memory_space<vmem>>, vector<8x32xf32>
    tpu.vector_store %arg14[%c0_332, %c0_333], %705 {strides = array<i32>} : memref<8x32xf32, #tpu.memory_space<vmem>>, vector<8x32xf32>,
    %c0_334 = arith.constant 0 : index
    %c0_335 = arith.constant 0 : index
    %707 = vector.load %arg15[%c0_334, %c0_335] : memref<8x32xf32, #tpu.memory_space<vmem>>, vector<8x32xf32>
    %cst_336 = arith.constant dense<0.000000e+00> : vector<8x96xf32>
    %708 = tpu.matmul %707, %439, %cst_336 {dimension_numbers = #tpu.dot_dimension_numbers<[1], [0], [0], [1], [0, 0, 1, 1], [], []>} : vector<8x32xf32>, vector<32x96xf32>, vector<8x96xf32> -> vector<8x96xf32>
    %c16_337 = arith.constant 16 : index
    %c0_338 = arith.constant 0 : index
    %709 = vector.load %arg12[%c16_337, %c0_338] : memref<64x96xf32, #tpu.memory_space<vmem>>, vector<8x96xf32>
    %710 = vector.extract_strided_slice %709 {offsets = [0, 0], sizes = [8, 64], strides = [1, 1]} : vector<8x96xf32> to vector<8x64xf32>
    %711 = vector.extract_strided_slice %708 {offsets = [0, 0], sizes = [8, 64], strides = [1, 1]} : vector<8x96xf32> to vector<8x64xf32>
    %712 = arith.addf %710, %711 : vector<8x64xf32>
    %713 = arith.negf %712 : vector<8x64xf32>
    %714 = math.exp %713 : vector<8x64xf32>
    %cst_339 = arith.constant 1.000000e+00 : f32
    %715 = vector.broadcast %cst_339 : f32 to vector<8x64xf32>
    %716 = arith.addf %715, %714 : vector<8x64xf32>
    %717 = arith.divf %715, %716 : vector<8x64xf32>
    %718 = vector.extract_strided_slice %717 {offsets = [0, 0], sizes = [8, 32], strides = [1, 1]} : vector<8x64xf32> to vector<8x32xf32>
    %719 = vector.extract_strided_slice %717 {offsets = [0, 32], sizes = [8, 32], strides = [1, 1]} : vector<8x64xf32> to vector<8x32xf32>
    %720 = vector.extract_strided_slice %709 {offsets = [0, 64], sizes = [8, 32], strides = [1, 1]} : vector<8x96xf32> to vector<8x32xf32>
    %721 = vector.extract_strided_slice %708 {offsets = [0, 64], sizes = [8, 32], strides = [1, 1]} : vector<8x96xf32> to vector<8x32xf32>
    %722 = arith.addf %721, %447 : vector<8x32xf32>
    %723 = arith.mulf %718, %722 : vector<8x32xf32>
    %724 = arith.addf %720, %723 : vector<8x32xf32>
    %725 = math.tanh %724 : vector<8x32xf32>
    %726 = arith.subf %707, %725 : vector<8x32xf32>
    %727 = arith.mulf %719, %726 : vector<8x32xf32>
    %728 = arith.addf %725, %727 : vector<8x32xf32>
    %c0_340 = arith.constant 0 : index
    %c0_341 = arith.constant 0 : index
    %729 = vector.load %arg15[%c0_340, %c0_341] : memref<8x32xf32, #tpu.memory_space<vmem>>, vector<8x32xf32>
    tpu.vector_store %arg15[%c0_340, %c0_341], %728 {strides = array<i32>} : memref<8x32xf32, #tpu.memory_space<vmem>>, vector<8x32xf32>,
    %c0_342 = arith.constant 0 : index
    %c0_343 = arith.constant 0 : index
    %730 = vector.load %arg14[%c0_342, %c0_343] : memref<8x32xf32, #tpu.memory_space<vmem>>, vector<8x32xf32>
    %cst_344 = arith.constant dense<0.000000e+00> : vector<8x96xf32>
    %731 = tpu.matmul %730, %437, %cst_344 {dimension_numbers = #tpu.dot_dimension_numbers<[1], [0], [0], [1], [0, 0, 1, 1], [], []>} : vector<8x32xf32>, vector<32x96xf32>, vector<8x96xf32> -> vector<8x96xf32>
    %c48_345 = arith.constant 48 : index
    %c0_346 = arith.constant 0 : index
    %732 = vector.load %arg11[%c48_345, %c0_346] : memref<64x96xf32, #tpu.memory_space<vmem>>, vector<8x96xf32>
    %733 = vector.extract_strided_slice %732 {offsets = [0, 0], sizes = [8, 64], strides = [1, 1]} : vector<8x96xf32> to vector<8x64xf32>
    %734 = vector.extract_strided_slice %731 {offsets = [0, 0], sizes = [8, 64], strides = [1, 1]} : vector<8x96xf32> to vector<8x64xf32>
    %735 = arith.addf %733, %734 : vector<8x64xf32>
    %736 = arith.negf %735 : vector<8x64xf32>
    %737 = math.exp %736 : vector<8x64xf32>
    %cst_347 = arith.constant 1.000000e+00 : f32
    %738 = vector.broadcast %cst_347 : f32 to vector<8x64xf32>
    %739 = arith.addf %738, %737 : vector<8x64xf32>
    %740 = arith.divf %738, %739 : vector<8x64xf32>
    %741 = vector.extract_strided_slice %740 {offsets = [0, 0], sizes = [8, 32], strides = [1, 1]} : vector<8x64xf32> to vector<8x32xf32>
    %742 = vector.extract_strided_slice %740 {offsets = [0, 32], sizes = [8, 32], strides = [1, 1]} : vector<8x64xf32> to vector<8x32xf32>
    %743 = vector.extract_strided_slice %732 {offsets = [0, 64], sizes = [8, 32], strides = [1, 1]} : vector<8x96xf32> to vector<8x32xf32>
    %744 = vector.extract_strided_slice %731 {offsets = [0, 64], sizes = [8, 32], strides = [1, 1]} : vector<8x96xf32> to vector<8x32xf32>
    %745 = arith.addf %744, %443 : vector<8x32xf32>
    %746 = arith.mulf %741, %745 : vector<8x32xf32>
    %747 = arith.addf %743, %746 : vector<8x32xf32>
    %748 = math.tanh %747 : vector<8x32xf32>
    %749 = arith.subf %730, %748 : vector<8x32xf32>
    %750 = arith.mulf %742, %749 : vector<8x32xf32>
    %751 = arith.addf %748, %750 : vector<8x32xf32>
    %c0_348 = arith.constant 0 : index
    %c0_349 = arith.constant 0 : index
    %752 = vector.load %arg14[%c0_348, %c0_349] : memref<8x32xf32, #tpu.memory_space<vmem>>, vector<8x32xf32>
    tpu.vector_store %arg14[%c0_348, %c0_349], %751 {strides = array<i32>} : memref<8x32xf32, #tpu.memory_space<vmem>>, vector<8x32xf32>,
    %c0_350 = arith.constant 0 : index
    %c0_351 = arith.constant 0 : index
    %753 = vector.load %arg15[%c0_350, %c0_351] : memref<8x32xf32, #tpu.memory_space<vmem>>, vector<8x32xf32>
    %cst_352 = arith.constant dense<0.000000e+00> : vector<8x96xf32>
    %754 = tpu.matmul %753, %439, %cst_352 {dimension_numbers = #tpu.dot_dimension_numbers<[1], [0], [0], [1], [0, 0, 1, 1], [], []>} : vector<8x32xf32>, vector<32x96xf32>, vector<8x96xf32> -> vector<8x96xf32>
    %c8_353 = arith.constant 8 : index
    %c0_354 = arith.constant 0 : index
    %755 = vector.load %arg12[%c8_353, %c0_354] : memref<64x96xf32, #tpu.memory_space<vmem>>, vector<8x96xf32>
    %756 = vector.extract_strided_slice %755 {offsets = [0, 0], sizes = [8, 64], strides = [1, 1]} : vector<8x96xf32> to vector<8x64xf32>
    %757 = vector.extract_strided_slice %754 {offsets = [0, 0], sizes = [8, 64], strides = [1, 1]} : vector<8x96xf32> to vector<8x64xf32>
    %758 = arith.addf %756, %757 : vector<8x64xf32>
    %759 = arith.negf %758 : vector<8x64xf32>
    %760 = math.exp %759 : vector<8x64xf32>
    %cst_355 = arith.constant 1.000000e+00 : f32
    %761 = vector.broadcast %cst_355 : f32 to vector<8x64xf32>
    %762 = arith.addf %761, %760 : vector<8x64xf32>
    %763 = arith.divf %761, %762 : vector<8x64xf32>
    %764 = vector.extract_strided_slice %763 {offsets = [0, 0], sizes = [8, 32], strides = [1, 1]} : vector<8x64xf32> to vector<8x32xf32>
    %765 = vector.extract_strided_slice %763 {offsets = [0, 32], sizes = [8, 32], strides = [1, 1]} : vector<8x64xf32> to vector<8x32xf32>
    %766 = vector.extract_strided_slice %755 {offsets = [0, 64], sizes = [8, 32], strides = [1, 1]} : vector<8x96xf32> to vector<8x32xf32>
    %767 = vector.extract_strided_slice %754 {offsets = [0, 64], sizes = [8, 32], strides = [1, 1]} : vector<8x96xf32> to vector<8x32xf32>
    %768 = arith.addf %767, %447 : vector<8x32xf32>
    %769 = arith.mulf %764, %768 : vector<8x32xf32>
    %770 = arith.addf %766, %769 : vector<8x32xf32>
    %771 = math.tanh %770 : vector<8x32xf32>
    %772 = arith.subf %753, %771 : vector<8x32xf32>
    %773 = arith.mulf %765, %772 : vector<8x32xf32>
    %774 = arith.addf %771, %773 : vector<8x32xf32>
    %c0_356 = arith.constant 0 : index
    %c0_357 = arith.constant 0 : index
    %775 = vector.load %arg15[%c0_356, %c0_357] : memref<8x32xf32, #tpu.memory_space<vmem>>, vector<8x32xf32>
    tpu.vector_store %arg15[%c0_356, %c0_357], %774 {strides = array<i32>} : memref<8x32xf32, #tpu.memory_space<vmem>>, vector<8x32xf32>,
    %c0_358 = arith.constant 0 : index
    %c0_359 = arith.constant 0 : index
    %776 = vector.load %arg14[%c0_358, %c0_359] : memref<8x32xf32, #tpu.memory_space<vmem>>, vector<8x32xf32>
    %cst_360 = arith.constant dense<0.000000e+00> : vector<8x96xf32>
    %777 = tpu.matmul %776, %437, %cst_360 {dimension_numbers = #tpu.dot_dimension_numbers<[1], [0], [0], [1], [0, 0, 1, 1], [], []>} : vector<8x32xf32>, vector<32x96xf32>, vector<8x96xf32> -> vector<8x96xf32>
    %c56_361 = arith.constant 56 : index
    %c0_362 = arith.constant 0 : index
    %778 = vector.load %arg11[%c56_361, %c0_362] : memref<64x96xf32, #tpu.memory_space<vmem>>, vector<8x96xf32>
    %779 = vector.extract_strided_slice %778 {offsets = [0, 0], sizes = [8, 64], strides = [1, 1]} : vector<8x96xf32> to vector<8x64xf32>
    %780 = vector.extract_strided_slice %777 {offsets = [0, 0], sizes = [8, 64], strides = [1, 1]} : vector<8x96xf32> to vector<8x64xf32>
    %781 = arith.addf %779, %780 : vector<8x64xf32>
    %782 = arith.negf %781 : vector<8x64xf32>
    %783 = math.exp %782 : vector<8x64xf32>
    %cst_363 = arith.constant 1.000000e+00 : f32
    %784 = vector.broadcast %cst_363 : f32 to vector<8x64xf32>
    %785 = arith.addf %784, %783 : vector<8x64xf32>
    %786 = arith.divf %784, %785 : vector<8x64xf32>
    %787 = vector.extract_strided_slice %786 {offsets = [0, 0], sizes = [8, 32], strides = [1, 1]} : vector<8x64xf32> to vector<8x32xf32>
    %788 = vector.extract_strided_slice %786 {offsets = [0, 32], sizes = [8, 32], strides = [1, 1]} : vector<8x64xf32> to vector<8x32xf32>
    %789 = vector.extract_strided_slice %778 {offsets = [0, 64], sizes = [8, 32], strides = [1, 1]} : vector<8x96xf32> to vector<8x32xf32>
    %790 = vector.extract_strided_slice %777 {offsets = [0, 64], sizes = [8, 32], strides = [1, 1]} : vector<8x96xf32> to vector<8x32xf32>
    %791 = arith.addf %790, %443 : vector<8x32xf32>
    %792 = arith.mulf %787, %791 : vector<8x32xf32>
    %793 = arith.addf %789, %792 : vector<8x32xf32>
    %794 = math.tanh %793 : vector<8x32xf32>
    %795 = arith.subf %776, %794 : vector<8x32xf32>
    %796 = arith.mulf %788, %795 : vector<8x32xf32>
    %797 = arith.addf %794, %796 : vector<8x32xf32>
    %c0_364 = arith.constant 0 : index
    %c0_365 = arith.constant 0 : index
    %798 = vector.load %arg14[%c0_364, %c0_365] : memref<8x32xf32, #tpu.memory_space<vmem>>, vector<8x32xf32>
    tpu.vector_store %arg14[%c0_364, %c0_365], %797 {strides = array<i32>} : memref<8x32xf32, #tpu.memory_space<vmem>>, vector<8x32xf32>,
    %c0_366 = arith.constant 0 : index
    %c0_367 = arith.constant 0 : index
    %799 = vector.load %arg15[%c0_366, %c0_367] : memref<8x32xf32, #tpu.memory_space<vmem>>, vector<8x32xf32>
    %cst_368 = arith.constant dense<0.000000e+00> : vector<8x96xf32>
    %800 = tpu.matmul %799, %439, %cst_368 {dimension_numbers = #tpu.dot_dimension_numbers<[1], [0], [0], [1], [0, 0, 1, 1], [], []>} : vector<8x32xf32>, vector<32x96xf32>, vector<8x96xf32> -> vector<8x96xf32>
    %c0_369 = arith.constant 0 : index
    %c0_370 = arith.constant 0 : index
    %801 = vector.load %arg12[%c0_369, %c0_370] : memref<64x96xf32, #tpu.memory_space<vmem>>, vector<8x96xf32>
    %802 = vector.extract_strided_slice %801 {offsets = [0, 0], sizes = [8, 64], strides = [1, 1]} : vector<8x96xf32> to vector<8x64xf32>
    %803 = vector.extract_strided_slice %800 {offsets = [0, 0], sizes = [8, 64], strides = [1, 1]} : vector<8x96xf32> to vector<8x64xf32>
    %804 = arith.addf %802, %803 : vector<8x64xf32>
    %805 = arith.negf %804 : vector<8x64xf32>
    %806 = math.exp %805 : vector<8x64xf32>
    %cst_371 = arith.constant 1.000000e+00 : f32
    %807 = vector.broadcast %cst_371 : f32 to vector<8x64xf32>
    %808 = arith.addf %807, %806 : vector<8x64xf32>
    %809 = arith.divf %807, %808 : vector<8x64xf32>
    %810 = vector.extract_strided_slice %809 {offsets = [0, 0], sizes = [8, 32], strides = [1, 1]} : vector<8x64xf32> to vector<8x32xf32>
    %811 = vector.extract_strided_slice %809 {offsets = [0, 32], sizes = [8, 32], strides = [1, 1]} : vector<8x64xf32> to vector<8x32xf32>
    %812 = vector.extract_strided_slice %801 {offsets = [0, 64], sizes = [8, 32], strides = [1, 1]} : vector<8x96xf32> to vector<8x32xf32>
    %813 = vector.extract_strided_slice %800 {offsets = [0, 64], sizes = [8, 32], strides = [1, 1]} : vector<8x96xf32> to vector<8x32xf32>
    %814 = arith.addf %813, %447 : vector<8x32xf32>
    %815 = arith.mulf %810, %814 : vector<8x32xf32>
    %816 = arith.addf %812, %815 : vector<8x32xf32>
    %817 = math.tanh %816 : vector<8x32xf32>
    %818 = arith.subf %799, %817 : vector<8x32xf32>
    %819 = arith.mulf %811, %818 : vector<8x32xf32>
    %820 = arith.addf %817, %819 : vector<8x32xf32>
    %c0_372 = arith.constant 0 : index
    %c0_373 = arith.constant 0 : index
    %821 = vector.load %arg15[%c0_372, %c0_373] : memref<8x32xf32, #tpu.memory_space<vmem>>, vector<8x32xf32>
    tpu.vector_store %arg15[%c0_372, %c0_373], %820 {strides = array<i32>} : memref<8x32xf32, #tpu.memory_space<vmem>>, vector<8x32xf32>,
    %c0_374 = arith.constant 0 : index
    %c0_375 = arith.constant 0 : index
    %822 = vector.load %arg14[%c0_374, %c0_375] : memref<8x32xf32, #tpu.memory_space<vmem>>, vector<8x32xf32>
    %c0_376 = arith.constant 0 : index
    %c0_377 = arith.constant 0 : index
    %823 = vector.load %arg15[%c0_376, %c0_377] : memref<8x32xf32, #tpu.memory_space<vmem>>, vector<8x32xf32>
    %824 = tpu.concatenate %822, %823 in 0 : vector<8x32xf32>, vector<8x32xf32> -> vector<16x32xf32>
    %c0_378 = arith.constant 0 : index
    %c0_379 = arith.constant 0 : index
    %c0_380 = arith.constant 0 : index
    %825 = vector.load %arg7[%c0_378, %c0_379, %c0_380] : memref<2x4x16xf32, #tpu.memory_space<vmem>>, vector<1x4x16xf32>
    %826 = vector.shape_cast %825 : vector<1x4x16xf32> to vector<4x16xf32>
    %cst_381 = arith.constant dense<0.000000e+00> : vector<4x32xf32>
    %827 = tpu.matmul %826, %824, %cst_381 {dimension_numbers = #tpu.dot_dimension_numbers<[1], [0], [0], [1], [0, 0, 1, 1], [], []>} : vector<4x16xf32>, vector<16x32xf32>, vector<4x32xf32> -> vector<4x32xf32>
    %c1_382 = arith.constant 1 : index
    %c0_383 = arith.constant 0 : index
    %c0_384 = arith.constant 0 : index
    %828 = vector.load %arg7[%c1_382, %c0_383, %c0_384] : memref<2x4x16xf32, #tpu.memory_space<vmem>>, vector<1x4x16xf32>
    %829 = vector.shape_cast %828 : vector<1x4x16xf32> to vector<4x16xf32>
    %cst_385 = arith.constant dense<0.000000e+00> : vector<4x32xf32>
    %830 = tpu.matmul %829, %824, %cst_385 {dimension_numbers = #tpu.dot_dimension_numbers<[1], [0], [0], [1], [0, 0, 1, 1], [], []>} : vector<4x16xf32>, vector<16x32xf32>, vector<4x32xf32> -> vector<4x32xf32>
    %c0_386 = arith.constant 0 : index
    %c0_387 = arith.constant 0 : index
    %831 = vector.load %arg8[%c0_386, %c0_387] : memref<64x16xf32, #tpu.memory_space<vmem>>, vector<64x16xf32>
    %832 = vector.extract_strided_slice %831 {offsets = [0, 0], sizes = [32, 16], strides = [1, 1]} : vector<64x16xf32> to vector<32x16xf32>
    %cst_388 = arith.constant dense<0.000000e+00> : vector<4x16xf32>
    %833 = tpu.matmul %827, %832, %cst_388 {dimension_numbers = #tpu.dot_dimension_numbers<[1], [0], [0], [1], [0, 0, 1, 1], [], []>} : vector<4x32xf32>, vector<32x16xf32>, vector<4x16xf32> -> vector<4x16xf32>
    %834 = vector.extract_strided_slice %831 {offsets = [32, 0], sizes = [32, 16], strides = [1, 1]} : vector<64x16xf32> to vector<32x16xf32>
    %cst_389 = arith.constant dense<0.000000e+00> : vector<4x16xf32>
    %835 = tpu.matmul %830, %834, %cst_389 {dimension_numbers = #tpu.dot_dimension_numbers<[1], [0], [0], [1], [0, 0, 1, 1], [], []>} : vector<4x32xf32>, vector<32x16xf32>, vector<4x16xf32> -> vector<4x16xf32>
    %836 = arith.addf %833, %835 : vector<4x16xf32>
    %c0_390 = arith.constant 0 : index
    %c0_391 = arith.constant 0 : index
    %837 = vector.load %arg9[%c0_390, %c0_391] : memref<1x16xf32, #tpu.memory_space<vmem>>, vector<1x16xf32>
    %838 = vector.broadcast %837 : vector<1x16xf32> to vector<4x16xf32>
    %839 = arith.addf %836, %838 : vector<4x16xf32>
    %c0_392 = arith.constant 0 : index
    %c0_393 = arith.constant 0 : index
    %840 = vector.load %arg10[%c0_392, %c0_393] : memref<4x16xf32, #tpu.memory_space<vmem>>, vector<4x16xf32>
    tpu.vector_store %arg10[%c0_392, %c0_393], %839 {strides = array<i32>} : memref<4x16xf32, #tpu.memory_space<vmem>>, vector<4x16xf32>,
    return
  }
}

</mosaic_0001>

<bundles_post_ra>
// kernel: _lambda_.1
= control target key start
LH: loop header
LB: loop body
LE: loop exit
PB: predicated region body
PF: predicated region fallthrough
CT: control target
= control target key end

     0   :  { %15 = vsyncpa [#allocation8], 0  ;;  %s7035_s0 = inlined_call_operand.vmem [shape: f32[64,16], index: 0, kind: input, shape index: {}]   ;;  %s7036_s1 = inlined_call_operand.vmem [shape: f32[4,8,32], index: 1, kind: input, shape index: {}]   ;;  %s7037_s2 = inlined_call_operand.vmem [shape: f32[2,16,96], index: 2, kind: input, shape index: {}]   ;;  %s7038_s3 = inlined_call_operand.vmem [shape: f32[1,2,64,96], index: 3, kind: input, shape index: {}]   ;;  %s7039_s4 = inlined_call_operand.hbm [shape: f32[2,2,32,96], index: 4, kind: input, shape index: {}]   ;;  %s7040_s5 = inlined_call_operand.vmem [shape: f32[2,2,1,96], index: 5, kind: input, shape index: {}]   ;;  %s7041_s6 = inlined_call_operand.hbm [shape: f32[2,2,1,32], index: 6, kind: input, shape index: {}]   ;;  %s7042_s7 = inlined_call_operand.vmem [shape: f32[2,4,16], index: 7, kind: input, shape index: {}]   ;;  %s7043_s8 = inlined_call_operand.hbm [shape: f32[64,16], index: 8, kind: input, shape index: {}]   ;;  %s7044_s9 = inlined_call_operand.vmem [shape: f32[1,16], index: 9, kind: input, shape index: {}]   ;;  %s7045_s10 = inlined_call_operand.hbm [shape: f32[4,16], index: 10, kind: output, shape index: {}]  }
   0x1   :  { %16 = vsyncpa [#allocation11], 0 }
   0x2   :  { %17 = vsyncpa [#allocation9], 0  ;;  %s6119_s13 = smov [#allocation10]   ;;  %s6025_s17 = scalar_lea.hbm %s7041_s6, 64 }
   0x3   :  { %s45_s14 = sshll.u32 %s6119_s13, 4  ;;  %p6026_p0 = scmp.ne.s32.totalorder %s7041_s6, %s6025_s17  ;;  %s46_s14 = int_to_ptr.vmem [resolvable:$true] %s45_s14 }
   0x4   :  { %p6029_p1 = scmp.lt.u32.totalorder %s6025_s17, %s7041_s6 }
   0x6   :  { %p6031_p2 = pnand %p6029_p1, %p6026_p0 }
   0x8   :  { %6034 = shalt.err (!%p6031_p2)
}
   0x9   :  { %s6035_s22 = scalar_lea.vmem %s46_s14, 64  ;;  %p6040_p4 = scmp.lt.s32.totalorder %s46_s14, %s46_s14 }
   0xa   :  { %p6036_p3 = scmp.ne.s32.totalorder %s46_s14, %s6035_s22  ;;  %p6041_p5 = scmp.lt.s32.totalorder %s6035_s22, %s6035_s22 }
   0xc   :  { %p6042_p6 = por %p6041_p5, %p6040_p4 }
   0xe   :  { %p6043_p7 = pnand %p6042_p6, %p6036_p3 }
  0x10   :  { %6046 = shalt.err (!%p6043_p7)
}
  0x11   :  { %s6120_s23 = smov 16   ;;  %s6121_s24 = smov 1  }
  0x12   :  { %51 = dma.hbm_to_vmem [thread:$0]  %s7041_s6, 64, %s46_s14, [#allocation11], %s6120_s23, %s6120_s23, %s6121_s24  }
  0x13   :  { %s6122_s27 = smov [#allocation7]   ;;  %s6047_s11 = scalar_lea.hbm %s7039_s4, 2048 }
  0x14   :  { %s31_s28 = sshll.u32 %s6122_s27, 4  ;;  %p6048_p8 = scmp.ne.s32.totalorder %s7039_s4, %s6047_s11  ;;  %s32_s28 = int_to_ptr.vmem [resolvable:$true] %s31_s28 }
  0x15   :  { %p6051_p9 = scmp.lt.u32.totalorder %s6047_s11, %s7039_s4 }
  0x17   :  { %p6053_p10 = pnand %p6051_p9, %p6048_p8 }
  0x19   :  { %6056 = shalt.err (!%p6053_p10)
}
  0x1a   :  { %s6057_s17 = scalar_lea.vmem %s32_s28, 2048  ;;  %p6062_p12 = scmp.lt.s32.totalorder %s32_s28, %s32_s28 }
  0x1b   :  { %p6058_p11 = scmp.ne.s32.totalorder %s32_s28, %s6057_s17  ;;  %p6063_p13 = scmp.lt.s32.totalorder %s6057_s17, %s6057_s17 }
  0x1d   :  { %p6064_p0 = por %p6063_p13, %p6062_p12 }
  0x1f   :  { %p6065_p1 = pnand %p6064_p0, %p6058_p11 }
  0x21   :  { %6068 = shalt.err (!%p6065_p1)
}
  0x22   :  { %s6123_s6 = smov 128   ;;  %s6124_s14 = smov 8  }
  0x23   :  { %37 = dma.hbm_to_vmem [thread:$0]  %s7039_s4, 2048, %s32_s28, [#allocation8], %s6123_s6, %s6123_s6, %s6124_s14  }
  0x24   :  { %s6125_s20 = smov [#allocation12]   ;;  %s6069_s24 = scalar_lea.hbm %s7043_s8, 1024 }
  0x25   :  { %s59_s21 = sshll.u32 %s6125_s20, 4  ;;  %p6070_p2 = scmp.ne.s32.totalorder %s7043_s8, %s6069_s24  ;;  %s60_s21 = int_to_ptr.vmem [resolvable:$true] %s59_s21 }
  0x26   :  { %p6073_p3 = scmp.lt.u32.totalorder %s6069_s24, %s7043_s8 }
  0x28   :  { %p6075_p4 = pnand %p6073_p3, %p6070_p2 }
  0x2a   :  { %6078 = shalt.err (!%p6075_p4)
}
  0x2b   :  { %s6079_s30 = scalar_lea.vmem %s60_s21, 1024  ;;  %p6084_p6 = scmp.lt.s32.totalorder %s60_s21, %s60_s21 }
  0x2c   :  { %p6080_p5 = scmp.ne.s32.totalorder %s60_s21, %s6079_s30  ;;  %p6085_p7 = scmp.lt.s32.totalorder %s6079_s30, %s6079_s30 }
  0x2e   :  { %p6086_p8 = por %p6085_p7, %p6084_p6 }
  0x30   :  { %p6087_p9 = pnand %p6086_p8, %p6080_p5 }
  0x32   :  { %6090 = shalt.err (!%p6087_p9)
}
  0x33   :  { %65 = dma.hbm_to_vmem [thread:$0]  %s7043_s8, 1024, %s60_s21, [#allocation11], %s6123_s6, %s6123_s6, %s6124_s14  }
  0x34   :  { %6113 = dma.done.wait [#allocation8], 2048  }
  0x35   :  { %6114 = vsyncadd [#allocation8], 4294965248 }
  0x36   :  { %6115 = dma.done.wait [#allocation11], 1088  }
  0x37   :  { %6116 = vsyncadd [#allocation11], 4294966208  ;;  %vm94_vm0 = vcmask 130048   ;;  %v4748_v0 = vld [vmem:[%s7037_s2 + $0x10] sm:$0xff]  ;;  %v4749_v1 = vld [vmem:[%s7037_s2 + $0x18] sm:$0xff]  ;;  %vm380_vm1 = vcmask 261120  }
  0x38   :  { %v77_v2 = vld [vmem:[%s7035_s0] sm:$0xff]  ;;  %v5573_v3 = vpack.c.bf16 %v4749_v1, %v4748_v0  ;;  %v86_v5 = vld [vmem:[%s7037_s2 + $0x8] sm:$0xff]  ;;  %v362_v7 = vld [vmem:[#allocation7 + $0x20] sm:$0xff]  ;;  %v6126_v13 = vmov 0.0|0.0   ;;  %s6127_s13 = smov 64   ;;  %vm6128_vm2 = vmmov 0  }
  0x39   :  { %5113 = vmatprep.mubr.msk.f32.mxu1 %vm94_vm0, %v77_v2  ;;  %v85_v4 = vld [vmem:[%s7037_s2] sm:$0xff]  ;;  %5097 = vmatprep.mubr.msk.f32.mxu0 %vm94_vm0, %v77_v2  ;;  %v363_v8 = vld [vmem:[#allocation7 + $0x28] sm:$0xff]  ;;  %v78_v9 = vld [vmem:[%s7035_s0 + $0x8] sm:$0xff]  ;;  %v6129_v31 = vmov 0.0   ;;  %vm224_vm3 = vcmask 785408   ;;  %s6130_s14 = smov 32  }
  0x3a   :  { %v5569_v6 = vpack.c.bf16 %v86_v5, %v85_v4  ;;  %5574 = vmatprep.subr.bf16.mxu1 %v5573_v3  ;;  %v6244_v10 = vpack.c.bf16 %v363_v8, %v362_v7  ;;  %v79_v11 = vld [vmem:[%s7035_s0 + $0x10] sm:$0xff]  ;;  %v364_v12 = vld [vmem:[#allocation7 + $0x30] sm:$0xff]  ;;  %v365_v14 = vld [vmem:[#allocation7 + $0x38] sm:$0xff]  ;;  %s6131_s23 = smov 96   ;;  %vm623_vm4 = vcmask 523520   ;;  %vm2280_vm5 = vcmask 523264  }
  0x3b   :  { %5576 = vmatpush3.bf16.msra.mxu1 %v5573_v3  ;;  %v357_v15 = vld [vmem:[#allocation7] sm:$0xff]  ;;  %v358_v16 = vld [vmem:[#allocation7 + $0x8] sm:$0xff]  ;;  %v4762_v18 = vld [vmem:[%s7036_s1 + $0x8] sm:$0xff]  ;;  %v6266_v23 = vpack.c.bf16 %v365_v14, %v364_v12  ;;  %s6132_s16 = smov [#allocation13]   ;;  %vm4721_vm6 = vcmask 125952  }
  0x3c   :  { %5570 = vmatprep.subr.bf16.mxu0 %v5569_v6  ;;  %5583 = vmatprep.subr.bf16.mxu1 %v6126_v13  ;;  %v6251_v17 = vpack.c.bf16 %v358_v16, %v357_v15  ;;  %384 = vst.msk [vmem:[#allocation6] sm:$0xff] %vm380_vm1, %v4762_v18  ;;  %v359_v19 = vld [vmem:[#allocation7 + $0x10] sm:$0xff]  ;;  %v360_v20 = vld [vmem:[#allocation7 + $0x18] sm:$0xff]  ;;  %v80_v22 = vld [vmem:[%s7035_s0 + $0x18] sm:$0xff] }
  0x3d   :  { %5572 = vmatpush3.bf16.msra.mxu0 %v5569_v6  ;;  %v379_v21 = vld [vmem:[%s7036_s1] sm:$0xff]  ;;  %v6276_v25 = vpack.c.bf16 %v360_v20, %v359_v19  ;;  %v4761_v26 = vld [vmem:[#allocation10 + $0x1] ss:$0 sm:$0xff]  ;;  %v82_v27 = vld [vmem:[%s7035_s0 + $0x28] sm:$0xff] }
  0x3e   :  { %5577 = vmatprep.subr.bf16.mxu0 %v6126_v13  ;;  %5114 = vmatmul.mubr.msk.f32.vlgmr.msra.gmra.mrb[0].mxu1 %vm94_vm0, %v78_v9  ;;  %381 = vst.msk [vmem:[#allocation5] sm:$0xff] %vm380_vm1, %v379_v21  ;;  %v81_v24 = vld [vmem:[%s7035_s0 + $0x20] sm:$0xff]  ;;  %v83_v28 = vld [vmem:[%s7035_s0 + $0x30] sm:$0xff]  ;;  %v84_v30 = vld [vmem:[%s7035_s0 + $0x38] sm:$0xff]  ;;  %s4729_s0 = sshll.u32 %s6132_s16, 4  ;;  %s4730_s0 = int_to_ptr.vmem [resolvable:$true] %s4729_s0 }
  0x3f   :  { %5585 = vmatpush3.bf16.msra.mxu1 %v6244_v10  ;;  %5116 = vmatprep.mubr.msk.f32.mxu1 %vm94_vm0, %v79_v11  ;;  %v4760_v29 = vld [vmem:[#allocation10] ss:$0 sm:$0xff]  ;;  %v4751_v34 = vld [vmem:[%s7040_s5 + $0x1] ss:$0 sm:$0xff]  ;;  %v4739_v36 = vld [vmem:[%s7040_s5] ss:$0 sm:$0xff]  ;;  %p6096_p11 = scmp.lt.s32.totalorder %s4730_s0, %s4730_s0 }
  0x40   :  { %5098 = vmatmul.mubr.msk.f32.vlgmr.msra.gmra.mrb[0].mxu0 %vm94_vm0, %v78_v9  ;;  %5586 = vmatprep.subr.bf16.mxu1 %v6126_v13  ;;  %s6091_s17 = scalar_lea.vmem %s4730_s0, 64 }
  0x41   :  { %5100 = vmatprep.mubr.msk.f32.mxu0 %vm94_vm0, %v79_v11  ;;  %5579 = vmatpush3.bf16.msra.mxu0 %v6251_v17  ;;  %p6092_p10 = scmp.ne.s32.totalorder %s4730_s0, %s6091_s17  ;;  %p6097_p12 = scmp.lt.s32.totalorder %s6091_s17, %s6091_s17 }
  0x42   :  { %5117 = vmatmul.mubr.msk.f32.gmra.mrb[2].mxu1 %vm94_vm0, %v80_v22  ;;  %5580 = vmatprep.subr.bf16.mxu0 %v6126_v13 }
  0x43   :  { %5119 = vmatprep.mubr.msk.f32.mxu1 %vm94_vm0, %v81_v24  ;;  %5588 = vmatpush3.bf16.msra.mxu1 %v6266_v23  ;;  %v6305_v32 = vld [vmem:[#allocation6] sm:$0xff]  ;;  %p6098_p13 = por %p6097_p12, %p6096_p11 }
  0x44   :  { %5101 = vmatmul.mubr.msk.f32.gmra.mrb[2].mxu0 %vm94_vm0, %v80_v22  ;;  %584 = vrot.lane.b32.xlu0 %v4761_v26, %s6127_s13 }
  0x45   :  { %5103 = vmatprep.mubr.msk.f32.mxu0 %vm94_vm0, %v81_v24  ;;  %5582 = vmatpush3.bf16.msra.mxu0 %v6276_v25  ;;  %v6310_v33 = vld [vmem:[#allocation5] sm:$0xff]  ;;  %p6099_p0 = pnand %p6098_p13, %p6092_p10 }
  0x46   :  { %5120 = vmatmul.mubr.msk.f32.gmra.mrb[4].mxu1 %vm94_vm0, %v82_v27  ;;  %5595 = vmatprep.subr.bf16.mxu1 %v6126_v13 }
  0x47   :  { %5122 = vmatprep.mubr.msk.f32.mxu1 %vm94_vm0, %v83_v28  ;;  %5589 = vmatprep.subr.bf16.mxu0 %v6126_v13 }
  0x48   :  { %5104 = vmatmul.mubr.msk.f32.gmra.mrb[4].mxu0 %vm94_vm0, %v82_v27  ;;  %467 = vrot.lane.b32.xlu0 %v4760_v29, %s6127_s13 }
  0x49   :  { %5106 = vmatprep.mubr.msk.f32.mxu0 %vm94_vm0, %v83_v28 }
  0x4a   :  { %5123 = vmatmul.mubr.msk.f32.gmra.mrb[6].mxu1 %vm94_vm0, %v84_v30 }
  0x4b   :  { %5144 = vmatprep.mubr.msk.f32.mxu1 %vm6128_vm2, %v6129_v31 }
  0x4c   :  { %5107 = vmatmul.mubr.msk.f32.gmra.mrb[6].mxu0 %vm94_vm0, %v84_v30 }
  0x4d   :  { %5133 = vmatprep.mubr.msk.f32.mxu0 %vm6128_vm2, %v6129_v31 }
  0x4e   :  { %5145 = vmatmul.mubr.msk.f32.vlgmr.msra.gmra.mrb[8].mxu1 %vm380_vm1, %v6305_v32 }
  0x4f   :  { %5597 = vmatpush3.bf16.msra.mxu1 %v6244_v10  ;;  %5166 = vmatprep.mubr.msk.f32.mxu1 %vm6128_vm2, %v6129_v31 }
  0x50   :  { %5134 = vmatmul.mubr.msk.f32.vlgmr.msra.gmra.mrb[8].mxu0 %vm380_vm1, %v6310_v33  ;;  %5598 = vmatprep.subr.bf16.mxu1 %v6126_v13 }
  0x51   :  { %5591 = vmatpush3.bf16.msra.mxu0 %v6251_v17  ;;  %5155 = vmatprep.mubr.msk.f32.mxu0 %vm6128_vm2, %v6129_v31 }
  0x52   :  { %5592 = vmatprep.subr.bf16.mxu0 %v6126_v13 }
  0x53   :  { %5600 = vmatpush3.bf16.msra.mxu1 %v6266_v23 }
  0x54   :  { %5607 = vmatprep.subr.bf16.mxu1 %v6126_v13 }
  0x55   :  { %5594 = vmatpush3.bf16.msra.mxu0 %v6276_v25 }
  0x56   :  { %5601 = vmatprep.subr.bf16.mxu0 %v6126_v13 }
  0xb6   :  { %v6342_v56 = vpop.permute.xlu0 %584 }
  0xba   :  { %v6350_v6 = vpop.permute.xlu0 %467 }
 0x111   :  { %v5115_v35 = vpop.f32.mrb[0].mxu1 }
 0x112   :  { %v316_v37 = vadd.f32 %v5115_v35, %v4751_v34  ;;  %v310_v38 = vpop.f32.mrb[1].mxu1 }
 0x113   :  { %v311_v39 = vadd.f32 %v4751_v34, %v310_v38  ;;  %v5099_v40 = vpop.f32.mrb[0].mxu0 }
 0x114   :  { %350 = vst.msk [vmem:[#allocation3 + $0x8] sm:$0xff] %vm224_vm3, %v316_v37  ;;  %v191_v41 = vadd.f32 %v5099_v40, %v4739_v36  ;;  %v185_v42 = vpop.f32.mrb[1].mxu0 }
 0x115   :  { %349 = vst.msk [vmem:[#allocation3] sm:$0xff] %vm224_vm3, %v311_v39  ;;  %v5118_v43 = vpop.f32.mrb[2].mxu1  ;;  %v186_v44 = vadd.f32 %v4739_v36, %v185_v42 }
 0x116   :  { %v326_v45 = vadd.f32 %v5118_v43, %v4751_v34  ;;  %v320_v46 = vpop.f32.mrb[3].mxu1  ;;  %226 = vst.msk [vmem:[#allocation2 + $0x8] sm:$0xff] %vm224_vm3, %v191_v41 }
 0x117   :  { %v321_v47 = vadd.f32 %v4751_v34, %v320_v46  ;;  %225 = vst.msk [vmem:[#allocation2] sm:$0xff] %vm224_vm3, %v186_v44  ;;  %v5102_v48 = vpop.f32.mrb[2].mxu0 }
 0x118   :  { %352 = vst.msk [vmem:[#allocation3 + $0x18] sm:$0xff] %vm224_vm3, %v326_v45  ;;  %v201_v49 = vadd.f32 %v5102_v48, %v4739_v36  ;;  %v195_v50 = vpop.f32.mrb[3].mxu0 }
 0x119   :  { %351 = vst.msk [vmem:[#allocation3 + $0x10] sm:$0xff] %vm224_vm3, %v321_v47  ;;  %v5121_v51 = vpop.f32.mrb[4].mxu1  ;;  %v196_v52 = vadd.f32 %v4739_v36, %v195_v50 }
 0x11a   :  { %v336_v53 = vadd.f32 %v5121_v51, %v4751_v34  ;;  %v330_v54 = vpop.f32.mrb[5].mxu1  ;;  %228 = vst.msk [vmem:[#allocation2 + $0x18] sm:$0xff] %vm224_vm3, %v201_v49 }
 0x11b   :  { %v331_v55 = vadd.f32 %v4751_v34, %v330_v54  ;;  %227 = vst.msk [vmem:[#allocation2 + $0x10] sm:$0xff] %vm224_vm3, %v196_v52  ;;  %v5105_v57 = vpop.f32.mrb[4].mxu0 }
 0x11c   :  { %354 = vst.msk [vmem:[#allocation3 + $0x28] sm:$0xff] %vm224_vm3, %v336_v53  ;;  %v211_v58 = vadd.f32 %v5105_v57, %v4739_v36  ;;  %v205_v59 = vpop.f32.mrb[5].mxu0 }
 0x11d   :  { %353 = vst.msk [vmem:[#allocation3 + $0x20] sm:$0xff] %vm224_vm3, %v331_v55  ;;  %v5124_v60 = vpop.f32.mrb[6].mxu1  ;;  %v206_v61 = vadd.f32 %v4739_v36, %v205_v59 }
 0x11e   :  { %v346_v62 = vadd.f32 %v5124_v60, %v4751_v34  ;;  %v340_v63 = vpop.f32.mrb[7].mxu1  ;;  %230 = vst.msk [vmem:[#allocation2 + $0x28] sm:$0xff] %vm224_vm3, %v211_v58  ;;  %v459_v16 = vld [vmem:[#allocation2] sm:$0xff] }
 0x11f   :  { %v341_v0 = vadd.f32 %v4751_v34, %v340_v63  ;;  %229 = vst.msk [vmem:[#allocation2 + $0x20] sm:$0xff] %vm224_vm3, %v206_v61  ;;  %v5108_v1 = vpop.f32.mrb[6].mxu0 }
 0x120   :  { %356 = vst.msk [vmem:[#allocation3 + $0x38] sm:$0xff] %vm224_vm3, %v346_v62  ;;  %v221_v2 = vadd.f32 %v5108_v1, %v4739_v36  ;;  %v215_v3 = vpop.f32.mrb[7].mxu0  ;;  %v699_v1 = vld [vmem:[#allocation2 + $0x8] sm:$0xff] }
 0x121   :  { %355 = vst.msk [vmem:[#allocation3 + $0x30] sm:$0xff] %vm224_vm3, %v341_v0  ;;  %v572_v4 = vpop.f32.mrb[8].mxu1  ;;  %v216_v5 = vadd.f32 %v4739_v36, %v215_v3 }
 0x122   :  { %v5146_v7 = vpop.f32.mrb[9].mxu1  ;;  %232 = vst.msk [vmem:[#allocation2 + $0x38] sm:$0xff] %vm224_vm3, %v221_v2  ;;  %v587_v8 = vadd.f32 %v6342_v56, %v572_v4 }
 0x123   :  { %231 = vst.msk [vmem:[#allocation2 + $0x30] sm:$0xff] %vm224_vm3, %v216_v5  ;;  %v455_v9 = vpop.f32.mrb[8].mxu0 }
 0x124   :  { %589 = vrot.lane.b32.xlu1 %v587_v8, %s6127_s13  ;;  %v470_v11 = vadd.f32 %v6350_v6, %v455_v9  ;;  %v5135_v12 = vpop.f32.mrb[9].mxu0  ;;  %v460_v19 = vadd.f32 %v459_v16, %v455_v9 }
 0x126   :  { %v4764_v20 = vmul.f32 -1.442695, %v460_v19 }
 0x127   :  { %v576_v14 = vld [vmem:[#allocation3 + $0x38] sm:$0xff] }
 0x128   :  { %472 = vrot.lane.b32.xlu1 %v470_v11, %s6127_s13  ;;  %v577_v15 = vadd.f32 %v576_v14, %v572_v4  ;;  %v813_v63 = vld [vmem:[#allocation3 + $0x30] sm:$0xff] }
 0x12a   :  { %v4766_v18 = vmul.f32 -1.442695, %v577_v15 }
 0x12c   :  { %5833 = vpow2.f32 %v4766_v18 }
 0x12d   :  { %5835 = vpow2.f32 %v4764_v20 }
 0x136   :  { %v5834_v21 = vpop.eup %5833 }
 0x137   :  { %v581_v22 = vadd.f32 1.0, %v5834_v21  ;;  %v5836_v24 = vpop.eup %5835 }
 0x138   :  { %v464_v26 = vadd.f32 1.0, %v5836_v24 }
 0x139   :  { %5837 = vrcp.f32 %v581_v22 }
 0x13a   :  { %5839 = vrcp.f32 %v464_v26 }
 0x143   :  { %v5838_v27 = vpop.eup %5837 }
 0x144   :  { %v5840_v30 = vpop.eup %5839 }
 0x196   :  { %v590_v28 = vpop.permute.xlu1 %589 }
 0x197   :  { %v592_v29 = vmul.f32 %v5838_v27, %v590_v28 }
 0x199   :  { %594 = vrot.lane.b32.xlu0 %v592_v29, %s6127_s13 }
 0x19a   :  { %v473_v34 = vpop.permute.xlu1 %472 }
 0x19b   :  { %v475_v35 = vmul.f32 %v5840_v30, %v473_v34 }
 0x19d   :  { %477 = vrot.lane.b32.xlu1 %v475_v35, %s6127_s13 }
 0x20b   :  { %v595_v36 = vpop.permute.xlu0 %594 }
 0x20c   :  { %v597_v37 = vadd.f32 %v595_v36, %v576_v14 }
 0x20e   :  { %5841 = vtanh.f32 %v597_v37 }
 0x20f   :  { %v478_v38 = vpop.permute.xlu1 %477 }
 0x210   :  { %v480_v39 = vadd.f32 %v478_v38, %v459_v16 }
 0x212   :  { %5843 = vtanh.f32 %v480_v39 }
 0x218   :  { %v5842_v40 = vpop.eup %5841 }
 0x219   :  { %600 = vrot.lane.b32.xlu0 %v5842_v40, %s6127_s13 }
 0x21c   :  { %v5844_v41 = vpop.eup %5843 }
 0x21d   :  { %483 = vrot.lane.b32.xlu1 %v5844_v41, %s6127_s13 }
 0x28b   :  { %v601_v42 = vpop.permute.xlu0 %600 }
 0x28c   :  { %v603_v43 = vsub.f32 %v6305_v32, %v601_v42 }
 0x28e   :  { %605 = vrot.lane.b32.xlu0 %v603_v43, %s6130_s14 }
 0x28f   :  { %v484_v44 = vpop.permute.xlu1 %483 }
 0x290   :  { %v486_v45 = vsub.f32 %v6310_v33, %v484_v44 }
 0x292   :  { %488 = vrot.lane.b32.xlu1 %v486_v45, %s6130_s14 }
 0x300   :  { %v606_v46 = vpop.permute.xlu0 %605 }
 0x301   :  { %v608_v47 = vmul.f32 %v5838_v27, %v606_v46 }
 0x303   :  { %610 = vrot.lane.b32.xlu0 %v608_v47, %s6130_s14 }
 0x304   :  { %v489_v48 = vpop.permute.xlu1 %488 }
 0x305   :  { %v491_v49 = vmul.f32 %v5840_v30, %v489_v48 }
 0x307   :  { %493 = vrot.lane.b32.xlu1 %v491_v49, %s6130_s14 }
 0x375   :  { %v611_v50 = vpop.permute.xlu0 %610 }
 0x376   :  { %v6368_v51 = vadd.f32 %v5842_v40, %v611_v50 }
 0x378   :  { %615 = vrot.lane.b32.xlu0 %v6368_v51, %s6127_s13 }
 0x379   :  { %v494_v32 = vpop.permute.xlu1 %493 }
 0x37a   :  { %v496_v52 = vadd.f32 %v5844_v41, %v494_v32 }
 0x37c   :  { %498 = vrot.lane.b32.xlu1 %v496_v52, %s6127_s13  ;;  %v1046_v52 = vld [vmem:[#allocation3 + $0x28] sm:$0xff] }
 0x3ea   :  { %v616_v33 = vpop.permute.xlu0 %615 }
 0x3eb   :  { %618 = vst.msk [vmem:[#allocation6] sm:$0xff] %vm380_vm1, %v616_v33 }
 0x3ee   :  { %v499_v53 = vpop.permute.xlu1 %498 }
 0x3ef   :  { %501 = vst.msk [vmem:[#allocation5] sm:$0xff] %vm380_vm1, %v499_v53  ;;  %619 = vst.msk [vmem:[#allocation4] sm:$0xff] %vm380_vm1, %v499_v53  ;;  %v932_v53 = vld [vmem:[#allocation2 + $0x10] sm:$0xff] }
 0x3f2   :  { %v739_v54 = vld [vmem:[#allocation6] sm:$0xff] }
 0x3f3   :  { %5167 = vmatmul.mubr.msk.f32.vlgmr.msra.gmra.mrb[10].mxu1 %vm380_vm1, %v739_v54 }
 0x3f4   :  { %5609 = vmatpush3.bf16.msra.mxu1 %v6244_v10  ;;  %5188 = vmatprep.mubr.msk.f32.mxu1 %vm6128_vm2, %v6129_v31 }
 0x3f5   :  { %5610 = vmatprep.subr.bf16.mxu1 %v6126_v13 }
 0x3f6   :  { %v625_v55 = vld [vmem:[#allocation5] sm:$0xff] }
 0x3f7   :  { %5156 = vmatmul.mubr.msk.f32.vlgmr.msra.gmra.mrb[10].mxu0 %vm380_vm1, %v625_v55 }
 0x3f8   :  { %5603 = vmatpush3.bf16.msra.mxu0 %v6251_v17  ;;  %5612 = vmatpush3.bf16.msra.mxu1 %v6266_v23 }
 0x3f9   :  { %5604 = vmatprep.subr.bf16.mxu0 %v6126_v13  ;;  %5177 = vmatprep.mubr.msk.f32.mxu0 %vm6128_vm2, %v6129_v31 }
 0x3fa   :  { %5619 = vmatprep.subr.bf16.mxu1 %v6126_v13 }
 0x3fc   :  { %5606 = vmatpush3.bf16.msra.mxu0 %v6276_v25 }
 0x3fd   :  { %5613 = vmatprep.subr.bf16.mxu0 %v6126_v13 }
 0x4c6   :  { %v809_v57 = vpop.f32.mrb[10].mxu1 }
 0x4c7   :  { %v821_v58 = vadd.f32 %v809_v57, %v6342_v56  ;;  %v5168_v59 = vpop.f32.mrb[11].mxu1  ;;  %v814_v0 = vadd.f32 %v813_v63, %v809_v57 }
 0x4c9   :  { %823 = vrot.lane.b32.xlu0 %v821_v58, %s6127_s13  ;;  %v4770_v2 = vmul.f32 -1.442695, %v814_v0 }
 0x4ca   :  { %v695_v60 = vpop.f32.mrb[10].mxu0 }
 0x4cb   :  { %v707_v61 = vadd.f32 %v695_v60, %v6350_v6  ;;  %v5157_v62 = vpop.f32.mrb[11].mxu0  ;;  %v700_v3 = vadd.f32 %v699_v1, %v695_v60  ;;  %5845 = vpow2.f32 %v4770_v2 }
 0x4cd   :  { %709 = vrot.lane.b32.xlu1 %v707_v61, %s6127_s13  ;;  %v4768_v4 = vmul.f32 -1.442695, %v700_v3 }
 0x4cf   :  { %5847 = vpow2.f32 %v4768_v4 }
 0x4d5   :  { %v5846_v5 = vpop.eup %5845 }
 0x4d6   :  { %v818_v7 = vadd.f32 1.0, %v5846_v5 }
 0x4d8   :  { %5849 = vrcp.f32 %v818_v7 }
 0x4d9   :  { %v5848_v8 = vpop.eup %5847 }
 0x4da   :  { %v704_v9 = vadd.f32 1.0, %v5848_v8 }
 0x4dc   :  { %5851 = vrcp.f32 %v704_v9 }
 0x4e2   :  { %v5850_v11 = vpop.eup %5849 }
 0x4e6   :  { %v5852_v15 = vpop.eup %5851 }
 0x53b   :  { %v824_v12 = vpop.permute.xlu0 %823 }
 0x53c   :  { %v826_v14 = vmul.f32 %v5850_v11, %v824_v12 }
 0x53e   :  { %828 = vrot.lane.b32.xlu0 %v826_v14, %s6127_s13 }
 0x53f   :  { %v710_v16 = vpop.permute.xlu1 %709 }
 0x540   :  { %v712_v18 = vmul.f32 %v5852_v15, %v710_v16 }
 0x542   :  { %714 = vrot.lane.b32.xlu1 %v712_v18, %s6127_s13 }
 0x5b0   :  { %v829_v19 = vpop.permute.xlu0 %828 }
 0x5b1   :  { %v831_v20 = vadd.f32 %v829_v19, %v813_v63 }
 0x5b3   :  { %5853 = vtanh.f32 %v831_v20 }
 0x5b4   :  { %v715_v21 = vpop.permute.xlu1 %714 }
 0x5b5   :  { %v717_v22 = vadd.f32 %v715_v21, %v699_v1 }
 0x5b7   :  { %5855 = vtanh.f32 %v717_v22 }
 0x5bd   :  { %v5854_v24 = vpop.eup %5853 }
 0x5be   :  { %834 = vrot.lane.b32.xlu0 %v5854_v24, %s6127_s13 }
 0x5c1   :  { %v5856_v26 = vpop.eup %5855 }
 0x5c2   :  { %720 = vrot.lane.b32.xlu1 %v5856_v26, %s6127_s13 }
 0x630   :  { %v835_v27 = vpop.permute.xlu0 %834 }
 0x631   :  { %v837_v28 = vsub.f32 %v739_v54, %v835_v27 }
 0x633   :  { %839 = vrot.lane.b32.xlu0 %v837_v28, %s6130_s14 }
 0x634   :  { %v721_v29 = vpop.permute.xlu1 %720 }
 0x635   :  { %v723_v30 = vsub.f32 %v625_v55, %v721_v29 }
 0x637   :  { %725 = vrot.lane.b32.xlu1 %v723_v30, %s6130_s14 }
 0x6a5   :  { %v840_v34 = vpop.permute.xlu0 %839 }
 0x6a6   :  { %v842_v35 = vmul.f32 %v5850_v11, %v840_v34 }
 0x6a8   :  { %844 = vrot.lane.b32.xlu0 %v842_v35, %s6130_s14 }
 0x6a9   :  { %v726_v36 = vpop.permute.xlu1 %725 }
 0x6aa   :  { %v728_v37 = vmul.f32 %v5852_v15, %v726_v36 }
 0x6ac   :  { %730 = vrot.lane.b32.xlu1 %v728_v37, %s6130_s14 }
 0x71a   :  { %v845_v38 = vpop.permute.xlu0 %844 }
 0x71b   :  { %v6402_v39 = vadd.f32 %v5854_v24, %v845_v38 }
 0x71d   :  { %849 = vrot.lane.b32.xlu0 %v6402_v39, %s6127_s13 }
 0x71e   :  { %v731_v40 = vpop.permute.xlu1 %730 }
 0x71f   :  { %v733_v41 = vadd.f32 %v5856_v26, %v731_v40 }
 0x721   :  { %735 = vrot.lane.b32.xlu1 %v733_v41, %s6127_s13 }
 0x78f   :  { %v850_v42 = vpop.permute.xlu0 %849 }
 0x790   :  { %852 = vst.msk [vmem:[#allocation6] sm:$0xff] %vm380_vm1, %v850_v42  ;;  %v1279_v42 = vld [vmem:[#allocation3 + $0x20] sm:$0xff] }
 0x793   :  { %v736_v43 = vpop.permute.xlu1 %735 }
 0x794   :  { %738 = vst.msk [vmem:[#allocation5] sm:$0xff] %vm380_vm1, %v736_v43  ;;  %853 = vst.msk [vmem:[#allocation4 + $0x8] sm:$0xff] %vm380_vm1, %v736_v43 }
 0x797   :  { %v972_v44 = vld [vmem:[#allocation6] sm:$0xff] }
 0x798   :  { %5189 = vmatmul.mubr.msk.f32.vlgmr.msra.gmra.mrb[12].mxu1 %vm380_vm1, %v972_v44 }
 0x799   :  { %5621 = vmatpush3.bf16.msra.mxu1 %v6244_v10  ;;  %5210 = vmatprep.mubr.msk.f32.mxu1 %vm6128_vm2, %v6129_v31 }
 0x79a   :  { %5622 = vmatprep.subr.bf16.mxu1 %v6126_v13 }
 0x79b   :  { %v858_v45 = vld [vmem:[#allocation5] sm:$0xff] }
 0x79c   :  { %5178 = vmatmul.mubr.msk.f32.vlgmr.msra.gmra.mrb[12].mxu0 %vm380_vm1, %v858_v45 }
 0x79d   :  { %5615 = vmatpush3.bf16.msra.mxu0 %v6251_v17  ;;  %5624 = vmatpush3.bf16.msra.mxu1 %v6266_v23 }
 0x79e   :  { %5616 = vmatprep.subr.bf16.mxu0 %v6126_v13  ;;  %5199 = vmatprep.mubr.msk.f32.mxu0 %vm6128_vm2, %v6129_v31 }
 0x79f   :  { %5631 = vmatprep.subr.bf16.mxu1 %v6126_v13 }
 0x7a1   :  { %5618 = vmatpush3.bf16.msra.mxu0 %v6276_v25 }
 0x7a2   :  { %5625 = vmatprep.subr.bf16.mxu0 %v6126_v13 }
 0x86b   :  { %v1042_v46 = vpop.f32.mrb[12].mxu1 }
 0x86c   :  { %v1054_v47 = vadd.f32 %v1042_v46, %v6342_v56  ;;  %v5190_v48 = vpop.f32.mrb[13].mxu1  ;;  %v1047_v33 = vadd.f32 %v1046_v52, %v1042_v46 }
 0x86e   :  { %1056 = vrot.lane.b32.xlu0 %v1054_v47, %s6127_s13  ;;  %v4774_v54 = vmul.f32 -1.442695, %v1047_v33 }
 0x86f   :  { %v928_v49 = vpop.f32.mrb[12].mxu0 }
 0x870   :  { %v940_v50 = vadd.f32 %v928_v49, %v6350_v6  ;;  %v5179_v32 = vpop.f32.mrb[13].mxu0  ;;  %v933_v55 = vadd.f32 %v932_v53, %v928_v49  ;;  %5857 = vpow2.f32 %v4774_v54 }
 0x872   :  { %942 = vrot.lane.b32.xlu1 %v940_v50, %s6127_s13  ;;  %v4772_v57 = vmul.f32 -1.442695, %v933_v55 }
 0x874   :  { %5859 = vpow2.f32 %v4772_v57 }
 0x87a   :  { %v5858_v58 = vpop.eup %5857 }
 0x87b   :  { %v1051_v59 = vadd.f32 1.0, %v5858_v58 }
 0x87d   :  { %5861 = vrcp.f32 %v1051_v59 }
 0x87e   :  { %v5860_v60 = vpop.eup %5859 }
 0x87f   :  { %v937_v61 = vadd.f32 1.0, %v5860_v60 }
 0x881   :  { %5863 = vrcp.f32 %v937_v61 }
 0x887   :  { %v5862_v62 = vpop.eup %5861 }
 0x88b   :  { %v5864_v1 = vpop.eup %5863 }
 0x8e0   :  { %v1057_v63 = vpop.permute.xlu0 %1056 }
 0x8e1   :  { %v1059_v0 = vmul.f32 %v5862_v62, %v1057_v63 }
 0x8e3   :  { %1061 = vrot.lane.b32.xlu0 %v1059_v0, %s6127_s13 }
 0x8e4   :  { %v943_v2 = vpop.permute.xlu1 %942 }
 0x8e5   :  { %v945_v3 = vmul.f32 %v5864_v1, %v943_v2 }
 0x8e7   :  { %947 = vrot.lane.b32.xlu1 %v945_v3, %s6127_s13 }
 0x955   :  { %v1062_v4 = vpop.permute.xlu0 %1061 }
 0x956   :  { %v1064_v5 = vadd.f32 %v1062_v4, %v1046_v52 }
 0x958   :  { %5865 = vtanh.f32 %v1064_v5 }
 0x959   :  { %v948_v7 = vpop.permute.xlu1 %947 }
 0x95a   :  { %v950_v8 = vadd.f32 %v948_v7, %v932_v53 }
 0x95c   :  { %5867 = vtanh.f32 %v950_v8 }
 0x962   :  { %v5866_v9 = vpop.eup %5865 }
 0x963   :  { %1067 = vrot.lane.b32.xlu0 %v5866_v9, %s6127_s13 }
 0x966   :  { %v5868_v11 = vpop.eup %5867 }
 0x967   :  { %953 = vrot.lane.b32.xlu1 %v5868_v11, %s6127_s13 }
 0x9d5   :  { %v1068_v12 = vpop.permute.xlu0 %1067 }
 0x9d6   :  { %v1070_v14 = vsub.f32 %v972_v44, %v1068_v12  ;;  %v1165_v44 = vld [vmem:[#allocation2 + $0x18] sm:$0xff] }
 0x9d8   :  { %1072 = vrot.lane.b32.xlu0 %v1070_v14, %s6130_s14 }
 0x9d9   :  { %v954_v15 = vpop.permute.xlu1 %953 }
 0x9da   :  { %v956_v16 = vsub.f32 %v858_v45, %v954_v15 }
 0x9dc   :  { %958 = vrot.lane.b32.xlu1 %v956_v16, %s6130_s14 }
 0xa4a   :  { %v1073_v18 = vpop.permute.xlu0 %1072 }
 0xa4b   :  { %v1075_v19 = vmul.f32 %v5862_v62, %v1073_v18 }
 0xa4d   :  { %1077 = vrot.lane.b32.xlu0 %v1075_v19, %s6130_s14 }
 0xa4e   :  { %v959_v20 = vpop.permute.xlu1 %958 }
 0xa4f   :  { %v961_v21 = vmul.f32 %v5864_v1, %v959_v20 }
 0xa51   :  { %963 = vrot.lane.b32.xlu1 %v961_v21, %s6130_s14 }
 0xabf   :  { %v1078_v22 = vpop.permute.xlu0 %1077 }
 0xac0   :  { %v6436_v24 = vadd.f32 %v5866_v9, %v1078_v22 }
 0xac2   :  { %1082 = vrot.lane.b32.xlu0 %v6436_v24, %s6127_s13 }
 0xac3   :  { %v964_v26 = vpop.permute.xlu1 %963 }
 0xac4   :  { %v966_v27 = vadd.f32 %v5868_v11, %v964_v26 }
 0xac6   :  { %968 = vrot.lane.b32.xlu1 %v966_v27, %s6127_s13 }
 0xb34   :  { %v1083_v28 = vpop.permute.xlu0 %1082 }
 0xb35   :  { %1085 = vst.msk [vmem:[#allocation6] sm:$0xff] %vm380_vm1, %v1083_v28 }
 0xb38   :  { %v969_v29 = vpop.permute.xlu1 %968 }
 0xb39   :  { %971 = vst.msk [vmem:[#allocation5] sm:$0xff] %vm380_vm1, %v969_v29  ;;  %1086 = vst.msk [vmem:[#allocation4 + $0x10] sm:$0xff] %vm380_vm1, %v969_v29  ;;  %v1512_v29 = vld [vmem:[#allocation3 + $0x18] sm:$0xff] }
 0xb3c   :  { %v1205_v30 = vld [vmem:[#allocation6] sm:$0xff] }
 0xb3d   :  { %5211 = vmatmul.mubr.msk.f32.vlgmr.msra.gmra.mrb[14].mxu1 %vm380_vm1, %v1205_v30 }
 0xb3e   :  { %5633 = vmatpush3.bf16.msra.mxu1 %v6244_v10  ;;  %5232 = vmatprep.mubr.msk.f32.mxu1 %vm6128_vm2, %v6129_v31 }
 0xb3f   :  { %5634 = vmatprep.subr.bf16.mxu1 %v6126_v13 }
 0xb40   :  { %v1091_v34 = vld [vmem:[#allocation5] sm:$0xff] }
 0xb41   :  { %5200 = vmatmul.mubr.msk.f32.vlgmr.msra.gmra.mrb[14].mxu0 %vm380_vm1, %v1091_v34 }
 0xb42   :  { %5627 = vmatpush3.bf16.msra.mxu0 %v6251_v17  ;;  %5636 = vmatpush3.bf16.msra.mxu1 %v6266_v23 }
 0xb43   :  { %5628 = vmatprep.subr.bf16.mxu0 %v6126_v13  ;;  %5221 = vmatprep.mubr.msk.f32.mxu0 %vm6128_vm2, %v6129_v31 }
 0xb44   :  { %5643 = vmatprep.subr.bf16.mxu1 %v6126_v13 }
 0xb46   :  { %5630 = vmatpush3.bf16.msra.mxu0 %v6276_v25 }
 0xb47   :  { %5637 = vmatprep.subr.bf16.mxu0 %v6126_v13 }
 0xc10   :  { %v1275_v35 = vpop.f32.mrb[14].mxu1 }
 0xc11   :  { %v1287_v36 = vadd.f32 %v1275_v35, %v6342_v56  ;;  %v5212_v37 = vpop.f32.mrb[15].mxu1  ;;  %v1280_v43 = vadd.f32 %v1279_v42, %v1275_v35 }
 0xc13   :  { %1289 = vrot.lane.b32.xlu0 %v1287_v36, %s6127_s13  ;;  %v4778_v45 = vmul.f32 -1.442695, %v1280_v43 }
 0xc14   :  { %v1161_v38 = vpop.f32.mrb[14].mxu0 }
 0xc15   :  { %v1173_v40 = vadd.f32 %v1161_v38, %v6350_v6  ;;  %v5201_v41 = vpop.f32.mrb[15].mxu0  ;;  %v1166_v46 = vadd.f32 %v1165_v44, %v1161_v38  ;;  %5869 = vpow2.f32 %v4778_v45 }
 0xc17   :  { %1175 = vrot.lane.b32.xlu1 %v1173_v40, %s6127_s13  ;;  %v4776_v47 = vmul.f32 -1.442695, %v1166_v46 }
 0xc19   :  { %5871 = vpow2.f32 %v4776_v47 }
 0xc1f   :  { %v5870_v48 = vpop.eup %5869 }
 0xc20   :  { %v1284_v49 = vadd.f32 1.0, %v5870_v48 }
 0xc22   :  { %5873 = vrcp.f32 %v1284_v49 }
 0xc23   :  { %v5872_v50 = vpop.eup %5871 }
 0xc24   :  { %v1170_v32 = vadd.f32 1.0, %v5872_v50 }
 0xc26   :  { %5875 = vrcp.f32 %v1170_v32 }
 0xc2c   :  { %v5874_v52 = vpop.eup %5873 }
 0xc30   :  { %v5876_v54 = vpop.eup %5875 }
 0xc85   :  { %v1290_v33 = vpop.permute.xlu0 %1289 }
 0xc86   :  { %v1292_v53 = vmul.f32 %v5874_v52, %v1290_v33 }
 0xc88   :  { %1294 = vrot.lane.b32.xlu0 %v1292_v53, %s6127_s13 }
 0xc89   :  { %v1176_v55 = vpop.permute.xlu1 %1175 }
 0xc8a   :  { %v1178_v57 = vmul.f32 %v5876_v54, %v1176_v55 }
 0xc8c   :  { %1180 = vrot.lane.b32.xlu1 %v1178_v57, %s6127_s13 }
 0xcfa   :  { %v1295_v58 = vpop.permute.xlu0 %1294 }
 0xcfb   :  { %v1297_v59 = vadd.f32 %v1295_v58, %v1279_v42 }
 0xcfd   :  { %5877 = vtanh.f32 %v1297_v59 }
 0xcfe   :  { %v1181_v60 = vpop.permute.xlu1 %1180 }
 0xcff   :  { %v1183_v61 = vadd.f32 %v1181_v60, %v1165_v44 }
 0xd01   :  { %5879 = vtanh.f32 %v1183_v61 }
 0xd07   :  { %v5878_v62 = vpop.eup %5877 }
 0xd08   :  { %1300 = vrot.lane.b32.xlu0 %v5878_v62, %s6127_s13 }
 0xd0b   :  { %v5880_v63 = vpop.eup %5879 }
 0xd0c   :  { %1186 = vrot.lane.b32.xlu1 %v5880_v63, %s6127_s13 }
 0xd7a   :  { %v1301_v0 = vpop.permute.xlu0 %1300 }
 0xd7b   :  { %v1303_v1 = vsub.f32 %v1205_v30, %v1301_v0 }
 0xd7d   :  { %1305 = vrot.lane.b32.xlu0 %v1303_v1, %s6130_s14 }
 0xd7e   :  { %v1187_v2 = vpop.permute.xlu1 %1186 }
 0xd7f   :  { %v1189_v3 = vsub.f32 %v1091_v34, %v1187_v2  ;;  %v1398_v34 = vld [vmem:[#allocation2 + $0x20] sm:$0xff] }
 0xd81   :  { %1191 = vrot.lane.b32.xlu1 %v1189_v3, %s6130_s14 }
 0xdef   :  { %v1306_v4 = vpop.permute.xlu0 %1305 }
 0xdf0   :  { %v1308_v5 = vmul.f32 %v5874_v52, %v1306_v4 }
 0xdf2   :  { %1310 = vrot.lane.b32.xlu0 %v1308_v5, %s6130_s14 }
 0xdf3   :  { %v1192_v7 = vpop.permute.xlu1 %1191 }
 0xdf4   :  { %v1194_v8 = vmul.f32 %v5876_v54, %v1192_v7 }
 0xdf6   :  { %1196 = vrot.lane.b32.xlu1 %v1194_v8, %s6130_s14 }
 0xe64   :  { %v1311_v9 = vpop.permute.xlu0 %1310 }
 0xe65   :  { %v6470_v11 = vadd.f32 %v5878_v62, %v1311_v9 }
 0xe67   :  { %1315 = vrot.lane.b32.xlu0 %v6470_v11, %s6127_s13 }
 0xe68   :  { %v1197_v12 = vpop.permute.xlu1 %1196 }
 0xe69   :  { %v1199_v14 = vadd.f32 %v5880_v63, %v1197_v12 }
 0xe6b   :  { %1201 = vrot.lane.b32.xlu1 %v1199_v14, %s6127_s13 }
 0xed9   :  { %v1316_v15 = vpop.permute.xlu0 %1315 }
 0xeda   :  { %1318 = vst.msk [vmem:[#allocation6] sm:$0xff] %vm380_vm1, %v1316_v15 }
 0xedd   :  { %v1202_v16 = vpop.permute.xlu1 %1201 }
 0xede   :  { %1204 = vst.msk [vmem:[#allocation5] sm:$0xff] %vm380_vm1, %v1202_v16  ;;  %1319 = vst.msk [vmem:[#allocation4 + $0x18] sm:$0xff] %vm380_vm1, %v1202_v16 }
 0xee1   :  { %v1438_v18 = vld [vmem:[#allocation6] sm:$0xff] }
 0xee2   :  { %5233 = vmatmul.mubr.msk.f32.vlgmr.msra.gmra.mrb[16].mxu1 %vm380_vm1, %v1438_v18 }
 0xee3   :  { %5645 = vmatpush3.bf16.msra.mxu1 %v6244_v10  ;;  %5254 = vmatprep.mubr.msk.f32.mxu1 %vm6128_vm2, %v6129_v31 }
 0xee4   :  { %5646 = vmatprep.subr.bf16.mxu1 %v6126_v13 }
 0xee5   :  { %v1324_v19 = vld [vmem:[#allocation5] sm:$0xff] }
 0xee6   :  { %5222 = vmatmul.mubr.msk.f32.vlgmr.msra.gmra.mrb[16].mxu0 %vm380_vm1, %v1324_v19 }
 0xee7   :  { %5639 = vmatpush3.bf16.msra.mxu0 %v6251_v17  ;;  %5648 = vmatpush3.bf16.msra.mxu1 %v6266_v23 }
 0xee8   :  { %5640 = vmatprep.subr.bf16.mxu0 %v6126_v13  ;;  %5243 = vmatprep.mubr.msk.f32.mxu0 %vm6128_vm2, %v6129_v31 }
 0xee9   :  { %5655 = vmatprep.subr.bf16.mxu1 %v6126_v13 }
 0xeeb   :  { %5642 = vmatpush3.bf16.msra.mxu0 %v6276_v25 }
 0xeec   :  { %5649 = vmatprep.subr.bf16.mxu0 %v6126_v13 }
 0xfb5   :  { %v1508_v20 = vpop.f32.mrb[16].mxu1 }
 0xfb6   :  { %v1520_v21 = vadd.f32 %v1508_v20, %v6342_v56  ;;  %v5234_v22 = vpop.f32.mrb[17].mxu1  ;;  %v1513_v30 = vadd.f32 %v1512_v29, %v1508_v20  ;;  %v1631_v20 = vld [vmem:[#allocation2 + $0x28] sm:$0xff] }
 0xfb8   :  { %1522 = vrot.lane.b32.xlu0 %v1520_v21, %s6127_s13  ;;  %v4782_v35 = vmul.f32 -1.442695, %v1513_v30 }
 0xfb9   :  { %v1394_v26 = vpop.f32.mrb[16].mxu0 }
 0xfba   :  { %v1406_v27 = vadd.f32 %v1394_v26, %v6350_v6  ;;  %v5223_v28 = vpop.f32.mrb[17].mxu0  ;;  %v1399_v36 = vadd.f32 %v1398_v34, %v1394_v26  ;;  %5881 = vpow2.f32 %v4782_v35 }
 0xfbc   :  { %1408 = vrot.lane.b32.xlu1 %v1406_v27, %s6127_s13  ;;  %v4780_v37 = vmul.f32 -1.442695, %v1399_v36 }
 0xfbe   :  { %5883 = vpow2.f32 %v4780_v37 }
 0xfc4   :  { %v5882_v38 = vpop.eup %5881 }
 0xfc5   :  { %v1517_v40 = vadd.f32 1.0, %v5882_v38 }
 0xfc7   :  { %5885 = vrcp.f32 %v1517_v40 }
 0xfc8   :  { %v5884_v41 = vpop.eup %5883 }
 0xfc9   :  { %v1403_v42 = vadd.f32 1.0, %v5884_v41 }
 0xfcb   :  { %5887 = vrcp.f32 %v1403_v42 }
 0xfd1   :  { %v5886_v43 = vpop.eup %5885 }
 0xfd5   :  { %v5888_v46 = vpop.eup %5887 }
0x102a   :  { %v1523_v44 = vpop.permute.xlu0 %1522 }
0x102b   :  { %v1525_v45 = vmul.f32 %v5886_v43, %v1523_v44 }
0x102d   :  { %1527 = vrot.lane.b32.xlu0 %v1525_v45, %s6127_s13 }
0x102e   :  { %v1409_v47 = vpop.permute.xlu1 %1408 }
0x102f   :  { %v1411_v48 = vmul.f32 %v5888_v46, %v1409_v47 }
0x1031   :  { %1413 = vrot.lane.b32.xlu1 %v1411_v48, %s6127_s13 }
0x109f   :  { %v1528_v49 = vpop.permute.xlu0 %1527 }
0x10a0   :  { %v1530_v50 = vadd.f32 %v1528_v49, %v1512_v29 }
0x10a2   :  { %5889 = vtanh.f32 %v1530_v50 }
0x10a3   :  { %v1414_v32 = vpop.permute.xlu1 %1413 }
0x10a4   :  { %v1416_v52 = vadd.f32 %v1414_v32, %v1398_v34 }
0x10a6   :  { %5891 = vtanh.f32 %v1416_v52 }
0x10ac   :  { %v5890_v33 = vpop.eup %5889 }
0x10ad   :  { %1533 = vrot.lane.b32.xlu0 %v5890_v33, %s6127_s13 }
0x10b0   :  { %v5892_v53 = vpop.eup %5891 }
0x10b1   :  { %1419 = vrot.lane.b32.xlu1 %v5892_v53, %s6127_s13 }
0x111f   :  { %v1534_v54 = vpop.permute.xlu0 %1533 }
0x1120   :  { %v1536_v55 = vsub.f32 %v1438_v18, %v1534_v54  ;;  %v1745_v18 = vld [vmem:[#allocation3 + $0x10] sm:$0xff] }
0x1122   :  { %1538 = vrot.lane.b32.xlu0 %v1536_v55, %s6130_s14 }
0x1123   :  { %v1420_v57 = vpop.permute.xlu1 %1419 }
0x1124   :  { %v1422_v58 = vsub.f32 %v1324_v19, %v1420_v57 }
0x1126   :  { %1424 = vrot.lane.b32.xlu1 %v1422_v58, %s6130_s14 }
0x1194   :  { %v1539_v59 = vpop.permute.xlu0 %1538 }
0x1195   :  { %v1541_v60 = vmul.f32 %v5886_v43, %v1539_v59 }
0x1197   :  { %1543 = vrot.lane.b32.xlu0 %v1541_v60, %s6130_s14 }
0x1198   :  { %v1425_v61 = vpop.permute.xlu1 %1424 }
0x1199   :  { %v1427_v62 = vmul.f32 %v5888_v46, %v1425_v61 }
0x119b   :  { %1429 = vrot.lane.b32.xlu1 %v1427_v62, %s6130_s14 }
0x1209   :  { %v1544_v63 = vpop.permute.xlu0 %1543 }
0x120a   :  { %v6504_v0 = vadd.f32 %v5890_v33, %v1544_v63 }
0x120c   :  { %1548 = vrot.lane.b32.xlu0 %v6504_v0, %s6127_s13 }
0x120d   :  { %v1430_v1 = vpop.permute.xlu1 %1429 }
0x120e   :  { %v1432_v2 = vadd.f32 %v5892_v53, %v1430_v1 }
0x1210   :  { %1434 = vrot.lane.b32.xlu1 %v1432_v2, %s6127_s13 }
0x127e   :  { %v1549_v3 = vpop.permute.xlu0 %1548 }
0x127f   :  { %1551 = vst.msk [vmem:[#allocation6] sm:$0xff] %vm380_vm1, %v1549_v3 }
0x1282   :  { %v6510_v4 = vpop.permute.xlu1 %1434 }
0x1283   :  { %1437 = vst.msk [vmem:[#allocation5] sm:$0xff] %vm380_vm1, %v6510_v4 }
0x1286   :  { %v1671_v5 = vld [vmem:[#allocation6] sm:$0xff] }
0x1287   :  { %5255 = vmatmul.mubr.msk.f32.vlgmr.msra.gmra.mrb[18].mxu1 %vm380_vm1, %v1671_v5 }
0x1288   :  { %5657 = vmatpush3.bf16.msra.mxu1 %v6244_v10  ;;  %5276 = vmatprep.mubr.msk.f32.mxu1 %vm6128_vm2, %v6129_v31 }
0x1289   :  { %5658 = vmatprep.subr.bf16.mxu1 %v6126_v13 }
0x128a   :  { %v1557_v7 = vld [vmem:[#allocation5] sm:$0xff] }
0x128b   :  { %5244 = vmatmul.mubr.msk.f32.vlgmr.msra.gmra.mrb[18].mxu0 %vm380_vm1, %v1557_v7 }
0x128c   :  { %5651 = vmatpush3.bf16.msra.mxu0 %v6251_v17  ;;  %5660 = vmatpush3.bf16.msra.mxu1 %v6266_v23 }
0x128d   :  { %5652 = vmatprep.subr.bf16.mxu0 %v6126_v13  ;;  %5265 = vmatprep.mubr.msk.f32.mxu0 %vm6128_vm2, %v6129_v31 }
0x128e   :  { %5667 = vmatprep.subr.bf16.mxu1 %v6126_v13 }
0x1290   :  { %5654 = vmatpush3.bf16.msra.mxu0 %v6276_v25 }
0x1291   :  { %5661 = vmatprep.subr.bf16.mxu0 %v6126_v13 }
0x135a   :  { %v1741_v8 = vpop.f32.mrb[18].mxu1 }
0x135b   :  { %v1753_v9 = vadd.f32 %v1741_v8, %v6342_v56  ;;  %v5256_v12 = vpop.f32.mrb[19].mxu1  ;;  %v1746_v19 = vadd.f32 %v1745_v18, %v1741_v8 }
0x135d   :  { %1755 = vrot.lane.b32.xlu0 %v1753_v9, %s6127_s13  ;;  %v4786_v21 = vmul.f32 -1.442695, %v1746_v19 }
0x135e   :  { %v1627_v14 = vpop.f32.mrb[18].mxu0 }
0x135f   :  { %v1639_v15 = vadd.f32 %v1627_v14, %v6350_v6  ;;  %v5245_v16 = vpop.f32.mrb[19].mxu0  ;;  %v1632_v22 = vadd.f32 %v1631_v20, %v1627_v14  ;;  %5893 = vpow2.f32 %v4786_v21 }
0x1361   :  { %1641 = vrot.lane.b32.xlu1 %v1639_v15, %s6127_s13  ;;  %v4784_v26 = vmul.f32 -1.442695, %v1632_v22 }
0x1363   :  { %5895 = vpow2.f32 %v4784_v26 }
0x1369   :  { %v5894_v27 = vpop.eup %5893 }
0x136a   :  { %v1750_v28 = vadd.f32 1.0, %v5894_v27 }
0x136c   :  { %5897 = vrcp.f32 %v1750_v28 }
0x136d   :  { %v5896_v29 = vpop.eup %5895 }
0x136e   :  { %v1636_v30 = vadd.f32 1.0, %v5896_v29 }
0x1370   :  { %5899 = vrcp.f32 %v1636_v30 }
0x1376   :  { %v5898_v34 = vpop.eup %5897 }
0x137a   :  { %v5900_v37 = vpop.eup %5899 }
0x13cf   :  { %v1756_v35 = vpop.permute.xlu0 %1755 }
0x13d0   :  { %v1758_v36 = vmul.f32 %v5898_v34, %v1756_v35 }
0x13d2   :  { %1760 = vrot.lane.b32.xlu0 %v1758_v36, %s6127_s13 }
0x13d3   :  { %v1642_v38 = vpop.permute.xlu1 %1641 }
0x13d4   :  { %v1644_v40 = vmul.f32 %v5900_v37, %v1642_v38 }
0x13d6   :  { %1646 = vrot.lane.b32.xlu1 %v1644_v40, %s6127_s13 }
0x1444   :  { %v1761_v41 = vpop.permute.xlu0 %1760 }
0x1445   :  { %v1763_v42 = vadd.f32 %v1761_v41, %v1745_v18 }
0x1447   :  { %5901 = vtanh.f32 %v1763_v42 }
0x1448   :  { %v1647_v43 = vpop.permute.xlu1 %1646 }
0x1449   :  { %v1649_v44 = vadd.f32 %v1647_v43, %v1631_v20 }
0x144b   :  { %5903 = vtanh.f32 %v1649_v44 }
0x1451   :  { %v5902_v45 = vpop.eup %5901 }
0x1452   :  { %1766 = vrot.lane.b32.xlu0 %v5902_v45, %s6127_s13 }
0x1455   :  { %v5904_v46 = vpop.eup %5903 }
0x1456   :  { %1652 = vrot.lane.b32.xlu1 %v5904_v46, %s6127_s13 }
0x14c4   :  { %v1767_v47 = vpop.permute.xlu0 %1766 }
0x14c5   :  { %v1769_v48 = vsub.f32 %v1671_v5, %v1767_v47 }
0x14c7   :  { %1771 = vrot.lane.b32.xlu0 %v1769_v48, %s6130_s14 }
0x14c8   :  { %v1653_v49 = vpop.permute.xlu1 %1652 }
0x14c9   :  { %v1655_v50 = vsub.f32 %v1557_v7, %v1653_v49  ;;  %v1864_v7 = vld [vmem:[#allocation2 + $0x30] sm:$0xff] }
0x14cb   :  { %1657 = vrot.lane.b32.xlu1 %v1655_v50, %s6130_s14 }
0x1539   :  { %v1772_v32 = vpop.permute.xlu0 %1771 }
0x153a   :  { %v1774_v52 = vmul.f32 %v5898_v34, %v1772_v32 }
0x153c   :  { %1776 = vrot.lane.b32.xlu0 %v1774_v52, %s6130_s14 }
0x153d   :  { %v1658_v33 = vpop.permute.xlu1 %1657 }
0x153e   :  { %v1660_v53 = vmul.f32 %v5900_v37, %v1658_v33 }
0x1540   :  { %1662 = vrot.lane.b32.xlu1 %v1660_v53, %s6130_s14 }
0x15ae   :  { %v1777_v54 = vpop.permute.xlu0 %1776 }
0x15af   :  { %v6540_v55 = vadd.f32 %v5902_v45, %v1777_v54 }
0x15b1   :  { %1781 = vrot.lane.b32.xlu0 %v6540_v55, %s6127_s13 }
0x15b2   :  { %v1663_v57 = vpop.permute.xlu1 %1662 }
0x15b3   :  { %v1665_v58 = vadd.f32 %v5904_v46, %v1663_v57 }
0x15b5   :  { %1667 = vrot.lane.b32.xlu1 %v1665_v58, %s6127_s13 }
0x1623   :  { %v1782_v59 = vpop.permute.xlu0 %1781 }
0x1624   :  { %1784 = vst.msk [vmem:[#allocation6] sm:$0xff] %vm380_vm1, %v1782_v59 }
0x1627   :  { %v6546_v60 = vpop.permute.xlu1 %1667 }
0x1628   :  { %1670 = vst.msk [vmem:[#allocation5] sm:$0xff] %vm380_vm1, %v6546_v60 }
0x162b   :  { %v1904_v61 = vld [vmem:[#allocation6] sm:$0xff] }
0x162c   :  { %5277 = vmatmul.mubr.msk.f32.vlgmr.msra.gmra.mrb[20].mxu1 %vm380_vm1, %v1904_v61 }
0x162d   :  { %5669 = vmatpush3.bf16.msra.mxu1 %v6244_v10  ;;  %5298 = vmatprep.mubr.msk.f32.mxu1 %vm6128_vm2, %v6129_v31 }
0x162e   :  { %5670 = vmatprep.subr.bf16.mxu1 %v6126_v13 }
0x162f   :  { %v1790_v62 = vld [vmem:[#allocation5] sm:$0xff] }
0x1630   :  { %5266 = vmatmul.mubr.msk.f32.vlgmr.msra.gmra.mrb[20].mxu0 %vm380_vm1, %v1790_v62 }
0x1631   :  { %5663 = vmatpush3.bf16.msra.mxu0 %v6251_v17  ;;  %5672 = vmatpush3.bf16.msra.mxu1 %v6266_v23  ;;  %v1978_v17 = vld [vmem:[#allocation3 + $0x8] sm:$0xff] }
0x1632   :  { %5664 = vmatprep.subr.bf16.mxu0 %v6126_v13  ;;  %5287 = vmatprep.mubr.msk.f32.mxu0 %vm6128_vm2, %v6129_v31 }
0x1635   :  { %5666 = vmatpush3.bf16.msra.mxu0 %v6276_v25 }
0x16ff   :  { %v1974_v10 = vpop.f32.mrb[20].mxu1 }
0x1700   :  { %v1986_v63 = vadd.f32 %v1974_v10, %v6342_v56  ;;  %v5278_v1 = vpop.f32.mrb[21].mxu1  ;;  %v1979_v23 = vadd.f32 %v1978_v17, %v1974_v10  ;;  %v2097_v10 = vld [vmem:[#allocation2 + $0x38] sm:$0xff] }
0x1702   :  { %1988 = vrot.lane.b32.xlu0 %v1986_v63, %s6127_s13  ;;  %v4790_v8 = vmul.f32 -1.442695, %v1979_v23 }
0x1703   :  { %v1860_v2 = vpop.f32.mrb[20].mxu0 }
0x1704   :  { %v1872_v3 = vadd.f32 %v1860_v2, %v6350_v6  ;;  %v5267_v5 = vpop.f32.mrb[21].mxu0  ;;  %v1865_v9 = vadd.f32 %v1864_v7, %v1860_v2  ;;  %5905 = vpow2.f32 %v4790_v8 }
0x1706   :  { %1874 = vrot.lane.b32.xlu1 %v1872_v3, %s6127_s13  ;;  %v4788_v12 = vmul.f32 -1.442695, %v1865_v9 }
0x1708   :  { %5907 = vpow2.f32 %v4788_v12 }
0x170e   :  { %v5906_v25 = vpop.eup %5905 }
0x170f   :  { %v1983_v14 = vadd.f32 1.0, %v5906_v25 }
0x1711   :  { %5909 = vrcp.f32 %v1983_v14 }
0x1712   :  { %v5908_v15 = vpop.eup %5907 }
0x1713   :  { %v1869_v16 = vadd.f32 1.0, %v5908_v15 }
0x1715   :  { %5911 = vrcp.f32 %v1869_v16 }
0x171b   :  { %v5910_v18 = vpop.eup %5909 }
0x171f   :  { %v5912_v21 = vpop.eup %5911 }
0x1774   :  { %v1989_v19 = vpop.permute.xlu0 %1988 }
0x1775   :  { %v1991_v20 = vmul.f32 %v5910_v18, %v1989_v19 }
0x1777   :  { %1993 = vrot.lane.b32.xlu0 %v1991_v20, %s6127_s13 }
0x1778   :  { %v1875_v22 = vpop.permute.xlu1 %1874 }
0x1779   :  { %v1877_v26 = vmul.f32 %v5912_v21, %v1875_v22 }
0x177b   :  { %1879 = vrot.lane.b32.xlu1 %v1877_v26, %s6127_s13 }
0x17e9   :  { %v1994_v27 = vpop.permute.xlu0 %1993 }
0x17ea   :  { %v1996_v28 = vadd.f32 %v1994_v27, %v1978_v17 }
0x17ec   :  { %5913 = vtanh.f32 %v1996_v28 }
0x17ed   :  { %v1880_v29 = vpop.permute.xlu1 %1879 }
0x17ee   :  { %v1882_v30 = vadd.f32 %v1880_v29, %v1864_v7 }
0x17f0   :  { %5915 = vtanh.f32 %v1882_v30 }
0x17f6   :  { %v5914_v34 = vpop.eup %5913 }
0x17f7   :  { %1999 = vrot.lane.b32.xlu0 %v5914_v34, %s6127_s13 }
0x17fa   :  { %v5916_v35 = vpop.eup %5915 }
0x17fb   :  { %1885 = vrot.lane.b32.xlu1 %v5916_v35, %s6127_s13 }
0x1869   :  { %v2000_v36 = vpop.permute.xlu0 %1999 }
0x186a   :  { %v2002_v37 = vsub.f32 %v1904_v61, %v2000_v36  ;;  %v2211_v61 = vld [vmem:[#allocation3] sm:$0xff] }
0x186b   :  { %v4805_v36 = vld [vmem:[%s7038_s3 + $0x40] sm:$0xff] }
0x186c   :  { %2004 = vrot.lane.b32.xlu0 %v2002_v37, %s6130_s14 }
0x186d   :  { %v1886_v38 = vpop.permute.xlu1 %1885 }
0x186e   :  { %v1888_v40 = vsub.f32 %v1790_v62, %v1886_v38  ;;  %v4806_v38 = vld [vmem:[%s7038_s3 + $0x48] sm:$0xff] }
0x1870   :  { %1890 = vrot.lane.b32.xlu1 %v1888_v40, %s6130_s14  ;;  %v2266_v40 = vld [vmem:[%s7038_s3 + $0x10] sm:$0xff] }
0x18de   :  { %v2005_v41 = vpop.permute.xlu0 %2004 }
0x18df   :  { %v2007_v42 = vmul.f32 %v5910_v18, %v2005_v41  ;;  %v2267_v41 = vld [vmem:[%s7038_s3 + $0x18] sm:$0xff] }
0x18e1   :  { %2009 = vrot.lane.b32.xlu0 %v2007_v42, %s6130_s14  ;;  %v5689_v42 = vpack.c.bf16 %v4806_v38, %v4805_v36  ;;  %v4796_v36 = vld [vmem:[%s7040_s5 + $0x2] ss:$0 sm:$0xff] }
0x18e2   :  { %v1891_v43 = vpop.permute.xlu1 %1890 }
0x18e3   :  { %v1893_v44 = vmul.f32 %v5912_v21, %v1891_v43  ;;  %v5677_v43 = vpack.c.bf16 %v2267_v41, %v2266_v40  ;;  %5690 = vmatprep.subr.bf16.mxu1 %v5689_v42 }
0x18e5   :  { %1895 = vrot.lane.b32.xlu1 %v1893_v44, %s6130_s14  ;;  %v4807_v44 = vld [vmem:[%s7038_s3 + $0x50] sm:$0xff] }
0x1953   :  { %v2010_v45 = vpop.permute.xlu0 %2009 }
0x1954   :  { %v6574_v46 = vadd.f32 %v5914_v34, %v2010_v45  ;;  %v2264_v34 = vld [vmem:[%s7038_s3] sm:$0xff]  ;;  %v4808_v45 = vld [vmem:[%s7038_s3 + $0x58] sm:$0xff] }
0x1956   :  { %2014 = vrot.lane.b32.xlu0 %v6574_v46, %s6127_s13 }
0x1957   :  { %v1896_v47 = vpop.permute.xlu1 %1895 }
0x1958   :  { %v1898_v48 = vadd.f32 %v5916_v35, %v1896_v47  ;;  %v2265_v35 = vld [vmem:[%s7038_s3 + $0x8] sm:$0xff]  ;;  %v2268_v47 = vld [vmem:[%s7038_s3 + $0x20] sm:$0xff] }
0x1959   :  { %v5673_v37 = vpack.c.bf16 %v2265_v35, %v2264_v34 }
0x195a   :  { %1900 = vrot.lane.b32.xlu1 %v1898_v48, %s6127_s13  ;;  %v2269_v48 = vld [vmem:[%s7038_s3 + $0x28] sm:$0xff] }
0x195b   :  { %5674 = vmatprep.subr.bf16.mxu0 %v5673_v37 }
0x19c8   :  { %v2015_v49 = vpop.permute.xlu0 %2014 }
0x19c9   :  { %2017 = vst.msk [vmem:[#allocation6] sm:$0xff] %vm380_vm1, %v2015_v49  ;;  %v5681_v49 = vpack.c.bf16 %v2269_v48, %v2268_v47 }
0x19cc   :  { %v6580_v50 = vpop.permute.xlu1 %1900 }
0x19cd   :  { %1903 = vst.msk [vmem:[#allocation5] sm:$0xff] %vm380_vm1, %v6580_v50 }
0x19d0   :  { %v2137_v32 = vld [vmem:[#allocation6] sm:$0xff] }
0x19d1   :  { %5299 = vmatmul.mubr.msk.f32.vlgmr.msra.gmra.mrb[22].mxu1 %vm380_vm1, %v2137_v32 }
0x19d2   :  { %5692 = vmatpush3.bf16.msra.mxu1 %v5689_v42 }
0x19d4   :  { %v2023_v52 = vld [vmem:[#allocation5] sm:$0xff] }
0x19d5   :  { %5288 = vmatmul.mubr.msk.f32.vlgmr.msra.gmra.mrb[22].mxu0 %vm380_vm1, %v2023_v52 }
0x19d6   :  { %5676 = vmatpush3.bf16.msra.mxu0 %v5673_v37  ;;  %v4814_v37 = vld [vmem:[%s7040_s5 + $0x3] ss:$0 sm:$0xff] }
0x19d7   :  { %5678 = vmatprep.subr.bf16.mxu0 %v5677_v43 }
0x19da   :  { %5680 = vmatpush3.bf16.msra.mxu0 %v5677_v43 }
0x19db   :  { %5682 = vmatprep.subr.bf16.mxu0 %v5681_v49 }
0x19de   :  { %5684 = vmatpush3.bf16.msra.mxu0 %v5681_v49 }
0x1aa4   :  { %v2207_v33 = vpop.f32.mrb[22].mxu1 }
0x1aa5   :  { %v2219_v53 = vadd.f32 %v2207_v33, %v6342_v56  ;;  %v5300_v54 = vpop.f32.mrb[23].mxu1  ;;  %v2212_v62 = vadd.f32 %v2211_v61, %v2207_v33  ;;  %v4811_v33 = vld [vmem:[%s7038_s3 + $0x70] sm:$0xff] }
0x1aa6   :  { %v4812_v54 = vld [vmem:[%s7038_s3 + $0x78] sm:$0xff] }
0x1aa7   :  { %2221 = vrot.lane.b32.xlu0 %v2219_v53, %s6127_s13  ;;  %v4794_v63 = vmul.f32 -1.442695, %v2212_v62 }
0x1aa8   :  { %v2093_v57 = vpop.f32.mrb[22].mxu0 }
0x1aa9   :  { %v2105_v58 = vadd.f32 %v2093_v57, %v6350_v6  ;;  %v5289_v59 = vpop.f32.mrb[23].mxu0  ;;  %v2098_v1 = vadd.f32 %v2097_v10, %v2093_v57  ;;  %5917 = vpow2.f32 %v4794_v63  ;;  %v5701_v57 = vpack.c.bf16 %v4812_v54, %v4811_v33 }
0x1aab   :  { %2107 = vrot.lane.b32.xlu1 %v2105_v58, %s6127_s13  ;;  %v4792_v2 = vmul.f32 -1.442695, %v2098_v1 }
0x1aad   :  { %5919 = vpow2.f32 %v4792_v2  ;;  %v4823_v2 = vld [vmem:[#allocation10 + $0x2] ss:$0 sm:$0xff] }
0x1ab3   :  { %v5918_v3 = vpop.eup %5917 }
0x1ab4   :  { %v2216_v5 = vadd.f32 1.0, %v5918_v3 }
0x1ab6   :  { %5921 = vrcp.f32 %v2216_v5 }
0x1ab7   :  { %v5920_v56 = vpop.eup %5919 }
0x1ab8   :  { %v2102_v17 = vadd.f32 1.0, %v5920_v56 }
0x1aba   :  { %5923 = vrcp.f32 %v2102_v17  ;;  %v2550_v17 = vld [vmem:[#allocation7 + $0x48] sm:$0xff] }
0x1ac0   :  { %v5922_v23 = vpop.eup %5921 }
0x1ac4   :  { %v5924_v8 = vpop.eup %5923 }
0x1b19   :  { %v2222_v7 = vpop.permute.xlu0 %2221 }
0x1b1a   :  { %v2224_v6 = vmul.f32 %v5922_v23, %v2222_v7  ;;  %v2555_v7 = vld [vmem:[#allocation7 + $0x68] sm:$0xff] }
0x1b1c   :  { %2226 = vrot.lane.b32.xlu0 %v2224_v6, %s6127_s13 }
0x1b1d   :  { %v2108_v9 = vpop.permute.xlu1 %2107 }
0x1b1e   :  { %v2110_v12 = vmul.f32 %v5924_v8, %v2108_v9  ;;  %v2551_v9 = vld [vmem:[#allocation7 + $0x50] sm:$0xff] }
0x1b20   :  { %2112 = vrot.lane.b32.xlu1 %v2110_v12, %s6127_s13  ;;  %v2552_v12 = vld [vmem:[#allocation7 + $0x58] sm:$0xff] }
0x1b8e   :  { %v2227_v25 = vpop.permute.xlu0 %2226 }
0x1b8f   :  { %v2229_v14 = vadd.f32 %v2227_v25, %v2211_v61 }
0x1b91   :  { %5925 = vtanh.f32 %v2229_v14 }
0x1b92   :  { %v2113_v15 = vpop.permute.xlu1 %2112 }
0x1b93   :  { %v2115_v16 = vadd.f32 %v2113_v15, %v2097_v10  ;;  %v2556_v15 = vld [vmem:[#allocation7 + $0x70] sm:$0xff] }
0x1b95   :  { %5927 = vtanh.f32 %v2115_v16  ;;  %v2557_v16 = vld [vmem:[#allocation7 + $0x78] sm:$0xff] }
0x1b9b   :  { %v6592_v18 = vpop.eup %5925 }
0x1b9c   :  { %2232 = vrot.lane.b32.xlu0 %v6592_v18, %s6127_s13 }
0x1b9f   :  { %v6596_v19 = vpop.eup %5927 }
0x1ba0   :  { %2118 = vrot.lane.b32.xlu1 %v6596_v19, %s6127_s13 }
0x1c0e   :  { %v2233_v20 = vpop.permute.xlu0 %2232 }
0x1c0f   :  { %v2235_v21 = vsub.f32 %v2137_v32, %v2233_v20  ;;  %v6703_v20 = vpack.c.bf16 %v2557_v16, %v2556_v15 }
0x1c11   :  { %2237 = vrot.lane.b32.xlu0 %v2235_v21, %s6130_s14 }
0x1c12   :  { %v2119_v22 = vpop.permute.xlu1 %2118 }
0x1c13   :  { %v2121_v26 = vsub.f32 %v2023_v52, %v2119_v22  ;;  %v2271_v52 = vld [vmem:[%s7038_s3 + $0x38] sm:$0xff] }
0x1c15   :  { %2123 = vrot.lane.b32.xlu1 %v2121_v26, %s6130_s14  ;;  %v4825_v26 = vld [vmem:[%s7036_s1 + $0x10] sm:$0xff] }
0x1c83   :  { %v2238_v27 = vpop.permute.xlu0 %2237 }
0x1c84   :  { %v2240_v28 = vmul.f32 %v5922_v23, %v2238_v27  ;;  %v2554_v23 = vld [vmem:[#allocation7 + $0x60] sm:$0xff] }
0x1c86   :  { %2242 = vrot.lane.b32.xlu0 %v2240_v28, %s6130_s14 }
0x1c87   :  { %v2124_v29 = vpop.permute.xlu1 %2123 }
0x1c88   :  { %v2126_v30 = vmul.f32 %v5924_v8, %v2124_v29  ;;  %v6690_v8 = vpack.c.bf16 %v2555_v7, %v2554_v23 }
0x1c8a   :  { %2128 = vrot.lane.b32.xlu1 %v2126_v30, %s6130_s14 }
0x1c8e   :  { %2019 = vrot.lane.b32.xlu1 %v6574_v46, %s6131_s23  ;;  %v5693_v46 = vpack.c.bf16 %v4808_v45, %v4807_v44 }
0x1c90   :  { %5694 = vmatprep.subr.bf16.mxu1 %v5693_v46 }
0x1c91   :  { %5696 = vmatpush3.bf16.msra.mxu1 %v5693_v46 }
0x1c92   :  { %1553 = vrot.lane.b32.xlu1 %v6504_v0, %s6131_s23  ;;  %v4809_v0 = vld [vmem:[%s7038_s3 + $0x60] sm:$0xff] }
0x1c96   :  { %1087 = vrot.lane.b32.xlu1 %v6436_v24, %s6131_s23  ;;  %v4810_v24 = vld [vmem:[%s7038_s3 + $0x68] sm:$0xff] }
0x1c97   :  { %v5697_v32 = vpack.c.bf16 %v4810_v24, %v4809_v0 }
0x1c99   :  { %5698 = vmatprep.subr.bf16.mxu1 %v5697_v32 }
0x1c9a   :  { %620 = vrot.lane.b32.xlu1 %v6368_v51, %s6131_s23  ;;  %v2270_v51 = vld [vmem:[%s7038_s3 + $0x30] sm:$0xff]  ;;  %5700 = vmatpush3.bf16.msra.mxu1 %v5697_v32 }
0x1c9b   :  { %v5685_v53 = vpack.c.bf16 %v2271_v52, %v2270_v51  ;;  %5702 = vmatprep.subr.bf16.mxu1 %v5701_v57 }
0x1c9d   :  { %5686 = vmatprep.subr.bf16.mxu0 %v5685_v53 }
0x1c9e   :  { %5688 = vmatpush3.bf16.msra.mxu0 %v5685_v53  ;;  %5704 = vmatpush3.bf16.msra.mxu1 %v5701_v57 }
0x1c9f   :  { %5705 = vmatprep.subr.bf16.mxu0 %v6126_v13  ;;  %5711 = vmatprep.subr.bf16.mxu1 %v6126_v13 }
0x1cf8   :  { %v2243_v58 = vpop.permute.xlu0 %2242 }
0x1cf9   :  { %v2245_v59 = vadd.f32 %v6592_v18, %v2243_v58 }
0x1cfb   :  { %2252 = vrot.lane.b32.xlu0 %v2245_v59, %s6131_s23  ;;  %2247 = vrot.lane.b32.xlu1 %v2245_v59, %s6127_s13 }
0x1cfc   :  { %v2129_v61 = vpop.permute.xlu1 %2128 }
0x1cfd   :  { %v2131_v1 = vadd.f32 %v6596_v19, %v2129_v61  ;;  %v6701_v19 = vpack.c.bf16 %v2552_v12, %v2551_v9 }
0x1cff   :  { %1786 = vrot.lane.b32.xlu0 %v6540_v55, %s6131_s23  ;;  %v4824_v55 = vld [vmem:[#allocation10 + $0x3] ss:$0 sm:$0xff] }
0x1d00   :  { %v2020_v62 = vpop.permute.xlu1 %2019  ;;  %2777 = vrot.lane.b32.xlu1 %v4824_v55, %s6127_s13 }
0x1d01   :  { %2022 = vst.msk [vmem:[#allocation4 + $0x8] sm:$0xff] %vm623_vm4, %v2020_v62 }
0x1d03   :  { %1320 = vrot.lane.b32.xlu0 %v6470_v11, %s6131_s23 }
0x1d04   :  { %v1554_v10 = vpop.permute.xlu1 %1553 }
0x1d05   :  { %1556 = vst.msk [vmem:[#allocation4 + $0x18] sm:$0xff] %vm623_vm4, %v1554_v10 }
0x1d07   :  { %854 = vrot.lane.b32.xlu0 %v6402_v39, %s6131_s23  ;;  %v4826_v39 = vld [vmem:[%s7036_s1 + $0x18] sm:$0xff] }
0x1d08   :  { %v1088_v63 = vpop.permute.xlu1 %1087  ;;  %v2257_v18 = vld [vmem:[#allocation4 + $0x8] sm:$0xff] }
0x1d09   :  { %1090 = vst.msk [vmem:[#allocation4 + $0x28] sm:$0xff] %vm623_vm4, %v1088_v63 }
0x1d0a   :  { %1785 = vst.msk [vmem:[#allocation4 + $0x28] sm:$0xff] %vm380_vm1, %v6546_v60  ;;  %v2549_v60 = vld [vmem:[#allocation7 + $0x40] sm:$0xff] }
0x1d0b   :  { %2133 = vrot.lane.b32.xlu0 %v2131_v1, %s6127_s13  ;;  %v6688_v6 = vpack.c.bf16 %v2550_v17, %v2549_v60 }
0x1d0c   :  { %v621_v11 = vpop.permute.xlu1 %620 }
0x1d0d   :  { %624 = vst.msk [vmem:[#allocation4 + $0x38] sm:$0xff] %vm623_vm4, %v621_v11 }
0x1d0f   :  { %2660 = vrot.lane.b32.xlu0 %v4823_v2, %s6127_s13 }
0x1d11   :  { %v2261_v28 = vld [vmem:[#allocation4 + $0x28] sm:$0xff] }
0x1d6d   :  { %v2253_v3 = vpop.permute.xlu0 %2252  ;;  %v2248_v5 = vpop.permute.xlu1 %2247 }
0x1d6e   :  { %2255 = vst.msk [vmem:[#allocation4] sm:$0xff] %vm623_vm4, %v2253_v3 }
0x1d6f   :  { %2250 = vst.msk [vmem:[#allocation6] sm:$0xff] %vm380_vm1, %v2248_v5 }
0x1d70   :  { %2577 = vst.msk [vmem:[#allocation6] sm:$0xff] %vm380_vm1, %v4826_v39 }
0x1d71   :  { %v1787_v56 = vpop.permute.xlu0 %1786 }
0x1d72   :  { %1789 = vst.msk [vmem:[#allocation4 + $0x10] sm:$0xff] %vm623_vm4, %v1787_v56  ;;  %v6776_v60 = vpop.permute.xlu1 %2777 }
0x1d75   :  { %v1321_v25 = vpop.permute.xlu0 %1320  ;;  %v2256_v14 = vld [vmem:[#allocation4] sm:$0xff] }
0x1d76   :  { %1323 = vst.msk [vmem:[#allocation4 + $0x20] sm:$0xff] %vm623_vm4, %v1321_v25  ;;  %5317 = vmatprep.mubr.msk.f32.mxu0 %vm2280_vm5, %v2256_v14  ;;  %5345 = vmatprep.mubr.msk.f32.mxu1 %vm2280_vm5, %v2256_v14 }
0x1d77   :  { %1552 = vst.msk [vmem:[#allocation4 + $0x20] sm:$0xff] %vm380_vm1, %v6510_v4  ;;  %5318 = vmatmul.mubr.msk.f32.vlgmr.msra.gmra.mrb[24].mxu0 %vm2280_vm5, %v2257_v18  ;;  %5346 = vmatmul.mubr.msk.f32.vlgmr.msra.gmra.mrb[24].mxu1 %vm2280_vm5, %v2257_v18  ;;  %v2259_v4 = vld [vmem:[#allocation4 + $0x18] sm:$0xff]  ;;  %v6738_v35 = vld [vmem:[#allocation6] sm:$0xff] }
0x1d78   :  { %5707 = vmatpush3.bf16.msra.mxu0 %v6688_v6  ;;  %5713 = vmatpush3.bf16.msra.mxu1 %v6690_v8 }
0x1d79   :  { %v855_v21 = vpop.permute.xlu0 %854  ;;  %v2258_v22 = vld [vmem:[#allocation4 + $0x10] sm:$0xff]  ;;  %5708 = vmatprep.subr.bf16.mxu0 %v6126_v13  ;;  %5714 = vmatprep.subr.bf16.mxu1 %v6126_v13 }
0x1d7a   :  { %857 = vst.msk [vmem:[#allocation4 + $0x30] sm:$0xff] %vm623_vm4, %v855_v21  ;;  %5320 = vmatprep.mubr.msk.f32.mxu0 %vm2280_vm5, %v2258_v22  ;;  %5348 = vmatprep.mubr.msk.f32.mxu1 %vm2280_vm5, %v2258_v22 }
0x1d7b   :  { %2018 = vst.msk [vmem:[#allocation4 + $0x30] sm:$0xff] %vm380_vm1, %v6580_v50  ;;  %5321 = vmatmul.mubr.msk.f32.gmra.mrb[26].mxu0 %vm2280_vm5, %v2259_v4  ;;  %5349 = vmatmul.mubr.msk.f32.gmra.mrb[26].mxu1 %vm2280_vm5, %v2259_v4 }
0x1d7c   :  { %5710 = vmatpush3.bf16.msra.mxu0 %v6701_v19  ;;  %5716 = vmatpush3.bf16.msra.mxu1 %v6703_v20 }
0x1d7d   :  { %v2134_v27 = vpop.permute.xlu0 %2133  ;;  %5717 = vmatprep.subr.bf16.mxu0 %v6126_v13  ;;  %5723 = vmatprep.subr.bf16.mxu1 %v6126_v13 }
0x1d7e   :  { %2136 = vst.msk [vmem:[#allocation5] sm:$0xff] %vm380_vm1, %v2134_v27  ;;  %2251 = vst.msk [vmem:[#allocation4 + $0x38] sm:$0xff] %vm380_vm1, %v2134_v27  ;;  %v2260_v50 = vld [vmem:[#allocation4 + $0x20] sm:$0xff] }
0x1d7f   :  { %2574 = vst.msk [vmem:[#allocation5] sm:$0xff] %vm380_vm1, %v4825_v26  ;;  %5323 = vmatprep.mubr.msk.f32.mxu0 %vm2280_vm5, %v2260_v50  ;;  %5351 = vmatprep.mubr.msk.f32.mxu1 %vm2280_vm5, %v2260_v50 }
0x1d80   :  { %5324 = vmatmul.mubr.msk.f32.gmra.mrb[28].mxu0 %vm2280_vm5, %v2261_v28  ;;  %5352 = vmatmul.mubr.msk.f32.gmra.mrb[28].mxu1 %vm2280_vm5, %v2261_v28 }
0x1d81   :  { %v6774_v5 = vpop.permute.xlu0 %2660 }
0x1d82   :  { %v2262_v29 = vld [vmem:[#allocation4 + $0x30] sm:$0xff] }
0x1d83   :  { %5326 = vmatprep.mubr.msk.f32.mxu0 %vm2280_vm5, %v2262_v29  ;;  %5354 = vmatprep.mubr.msk.f32.mxu1 %vm2280_vm5, %v2262_v29 }
0x1d85   :  { %v2263_v30 = vld [vmem:[#allocation4 + $0x38] sm:$0xff] }
0x1d86   :  { %5327 = vmatmul.mubr.msk.f32.gmra.mrb[30].mxu0 %vm2280_vm5, %v2263_v30  ;;  %5355 = vmatmul.mubr.msk.f32.gmra.mrb[30].mxu1 %vm2280_vm5, %v2263_v30  ;;  %v6736_v34 = vld [vmem:[#allocation5] sm:$0xff] }
0x1d87   :  { %5365 = vmatprep.mubr.msk.f32.mxu0 %vm6128_vm2, %v6129_v31  ;;  %5376 = vmatprep.mubr.msk.f32.mxu1 %vm6128_vm2, %v6129_v31 }
0x1d8a   :  { %5366 = vmatmul.mubr.msk.f32.vlgmr.msra.gmra.mrb[32].mxu0 %vm380_vm1, %v6736_v34  ;;  %5377 = vmatmul.mubr.msk.f32.vlgmr.msra.gmra.mrb[32].mxu1 %vm380_vm1, %v6738_v35 }
0x1d8b   :  { %5719 = vmatpush3.bf16.msra.mxu0 %v6688_v6  ;;  %5725 = vmatpush3.bf16.msra.mxu1 %v6690_v8 }
0x1d8c   :  { %5720 = vmatprep.subr.bf16.mxu0 %v6126_v13  ;;  %5726 = vmatprep.subr.bf16.mxu1 %v6126_v13 }
0x1d8d   :  { %5387 = vmatprep.mubr.msk.f32.mxu0 %vm6128_vm2, %v6129_v31  ;;  %5398 = vmatprep.mubr.msk.f32.mxu1 %vm6128_vm2, %v6129_v31 }
0x1d8f   :  { %5722 = vmatpush3.bf16.msra.mxu0 %v6701_v19  ;;  %5728 = vmatpush3.bf16.msra.mxu1 %v6703_v20 }
0x1d90   :  { %5729 = vmatprep.subr.bf16.mxu0 %v6126_v13  ;;  %5735 = vmatprep.subr.bf16.mxu1 %v6126_v13 }
0x1e4a   :  { %v5319_v38 = vpop.f32.mrb[24].mxu0  ;;  %v5347_v40 = vpop.f32.mrb[24].mxu1 }
0x1e4b   :  { %v2377_v41 = vadd.f32 %v5319_v38, %v4796_v36  ;;  %v2507_v42 = vadd.f32 %v5347_v40, %v4814_v37  ;;  %v2371_v43 = vpop.f32.mrb[25].mxu0  ;;  %v2501_v44 = vpop.f32.mrb[25].mxu1 }
0x1e4c   :  { %v2372_v45 = vadd.f32 %v4796_v36, %v2371_v43  ;;  %v2502_v46 = vadd.f32 %v4814_v37, %v2501_v44 }
0x1e4d   :  { %2411 = vst.msk [vmem:[#allocation2 + $0x8] sm:$0xff] %vm224_vm3, %v2377_v41  ;;  %2541 = vst.msk [vmem:[#allocation3 + $0x8] sm:$0xff] %vm224_vm3, %v2507_v42 }
0x1e4e   :  { %2410 = vst.msk [vmem:[#allocation2] sm:$0xff] %vm224_vm3, %v2372_v45  ;;  %2540 = vst.msk [vmem:[#allocation3] sm:$0xff] %vm224_vm3, %v2502_v46  ;;  %v5322_v47 = vpop.f32.mrb[26].mxu0  ;;  %v5350_v48 = vpop.f32.mrb[26].mxu1 }
0x1e4f   :  { %v2387_v0 = vadd.f32 %v5322_v47, %v4796_v36  ;;  %v2517_v49 = vadd.f32 %v5350_v48, %v4814_v37  ;;  %v2381_v24 = vpop.f32.mrb[27].mxu0  ;;  %v2511_v32 = vpop.f32.mrb[27].mxu1 }
0x1e50   :  { %v2382_v51 = vadd.f32 %v4796_v36, %v2381_v24  ;;  %v2512_v52 = vadd.f32 %v4814_v37, %v2511_v32 }
0x1e51   :  { %2413 = vst.msk [vmem:[#allocation2 + $0x18] sm:$0xff] %vm224_vm3, %v2387_v0  ;;  %2543 = vst.msk [vmem:[#allocation3 + $0x18] sm:$0xff] %vm224_vm3, %v2517_v49 }
0x1e52   :  { %2412 = vst.msk [vmem:[#allocation2 + $0x10] sm:$0xff] %vm224_vm3, %v2382_v51  ;;  %2542 = vst.msk [vmem:[#allocation3 + $0x10] sm:$0xff] %vm224_vm3, %v2512_v52 }
0x1e53   :  { %v5325_v33 = vpop.f32.mrb[28].mxu0  ;;  %v5353_v53 = vpop.f32.mrb[28].mxu1 }
0x1e54   :  { %v2397_v54 = vadd.f32 %v5325_v33, %v4796_v36  ;;  %v2527_v57 = vadd.f32 %v5353_v53, %v4814_v37  ;;  %v2391_v58 = vpop.f32.mrb[29].mxu0  ;;  %v2521_v59 = vpop.f32.mrb[29].mxu1 }
0x1e55   :  { %v2392_v61 = vadd.f32 %v4796_v36, %v2391_v58  ;;  %v2522_v62 = vadd.f32 %v4814_v37, %v2521_v59  ;;  %v2652_v14 = vld [vmem:[#allocation2] sm:$0xff] }
0x1e56   :  { %2415 = vst.msk [vmem:[#allocation2 + $0x28] sm:$0xff] %vm224_vm3, %v2397_v54  ;;  %2545 = vst.msk [vmem:[#allocation3 + $0x28] sm:$0xff] %vm224_vm3, %v2527_v57 }
0x1e57   :  { %2414 = vst.msk [vmem:[#allocation2 + $0x20] sm:$0xff] %vm224_vm3, %v2392_v61  ;;  %2544 = vst.msk [vmem:[#allocation3 + $0x20] sm:$0xff] %vm224_vm3, %v2522_v62 }
0x1e59   :  { %v5328_v10 = vpop.f32.mrb[30].mxu0  ;;  %v5356_v63 = vpop.f32.mrb[30].mxu1 }
0x1e5a   :  { %v2407_v1 = vadd.f32 %v5328_v10, %v4796_v36  ;;  %v2537_v55 = vadd.f32 %v5356_v63, %v4814_v37  ;;  %v2401_v11 = vpop.f32.mrb[31].mxu0  ;;  %v2531_v2 = vpop.f32.mrb[31].mxu1 }
0x1e5b   :  { %v2402_v39 = vadd.f32 %v4796_v36, %v2401_v11  ;;  %v2532_v3 = vadd.f32 %v4814_v37, %v2531_v2 }
0x1e5c   :  { %2417 = vst.msk [vmem:[#allocation2 + $0x38] sm:$0xff] %vm224_vm3, %v2407_v1  ;;  %2547 = vst.msk [vmem:[#allocation3 + $0x38] sm:$0xff] %vm224_vm3, %v2537_v55  ;;  %v2886_v55 = vld [vmem:[#allocation2 + $0x8] sm:$0xff] }
0x1e5d   :  { %2416 = vst.msk [vmem:[#allocation2 + $0x30] sm:$0xff] %vm224_vm3, %v2402_v39  ;;  %2546 = vst.msk [vmem:[#allocation3 + $0x30] sm:$0xff] %vm224_vm3, %v2532_v3  ;;  %v2765_v56 = vpop.f32.mrb[32].mxu1  ;;  %v2648_v17 = vpop.f32.mrb[32].mxu0 }
0x1e5e   :  { %v2663_v23 = vadd.f32 %v6774_v5, %v2648_v17  ;;  %v5367_v7 = vpop.f32.mrb[33].mxu0  ;;  %v5378_v9 = vpop.f32.mrb[33].mxu1  ;;  %v2780_v12 = vadd.f32 %v6776_v60, %v2765_v56  ;;  %v2653_v15 = vadd.f32 %v2652_v14, %v2648_v17 }
0x1e60   :  { %2782 = vrot.lane.b32.xlu1 %v2780_v12, %s6127_s13  ;;  %2665 = vrot.lane.b32.xlu0 %v2663_v23, %s6127_s13  ;;  %v4828_v18 = vmul.f32 -1.442695, %v2653_v15 }
0x1e62   :  { %5929 = vpow2.f32 %v4828_v18 }
0x1e63   :  { %v2769_v25 = vld [vmem:[#allocation3 + $0x38] sm:$0xff] }
0x1e64   :  { %v2770_v16 = vadd.f32 %v2769_v25, %v2765_v56  ;;  %v3000_v1 = vld [vmem:[#allocation3 + $0x30] sm:$0xff] }
0x1e66   :  { %v4830_v21 = vmul.f32 -1.442695, %v2770_v16 }
0x1e68   :  { %5931 = vpow2.f32 %v4830_v21 }
0x1e6c   :  { %v5930_v22 = vpop.eup %5929 }
0x1e6d   :  { %v2657_v26 = vadd.f32 1.0, %v5930_v22 }
0x1e6f   :  { %5933 = vrcp.f32 %v2657_v26 }
0x1e72   :  { %v5932_v4 = vpop.eup %5931 }
0x1e73   :  { %v2774_v27 = vadd.f32 1.0, %v5932_v4 }
0x1e75   :  { %5935 = vrcp.f32 %v2774_v27 }
0x1e79   :  { %v5934_v50 = vpop.eup %5933 }
0x1e7f   :  { %v5936_v28 = vpop.eup %5935 }
0x1ed2   :  { %v2783_v29 = vpop.permute.xlu1 %2782  ;;  %v2666_v30 = vpop.permute.xlu0 %2665 }
0x1ed3   :  { %v2785_v36 = vmul.f32 %v5936_v28, %v2783_v29  ;;  %v2668_v37 = vmul.f32 %v5934_v50, %v2666_v30 }
0x1ed5   :  { %2787 = vrot.lane.b32.xlu1 %v2785_v36, %s6127_s13  ;;  %2670 = vrot.lane.b32.xlu0 %v2668_v37, %s6127_s13 }
0x1f47   :  { %v2788_v38 = vpop.permute.xlu1 %2787  ;;  %v2671_v40 = vpop.permute.xlu0 %2670 }
0x1f48   :  { %v2790_v41 = vadd.f32 %v2788_v38, %v2769_v25  ;;  %v2673_v42 = vadd.f32 %v2671_v40, %v2652_v14 }
0x1f4a   :  { %5937 = vtanh.f32 %v2790_v41 }
0x1f4b   :  { %5939 = vtanh.f32 %v2673_v42 }
0x1f54   :  { %v5938_v43 = vpop.eup %5937 }
0x1f55   :  { %v5940_v44 = vpop.eup %5939  ;;  %2793 = vrot.lane.b32.xlu1 %v5938_v43, %s6127_s13 }
0x1f56   :  { %2676 = vrot.lane.b32.xlu0 %v5940_v44, %s6127_s13 }
0x1fc7   :  { %v2794_v45 = vpop.permute.xlu1 %2793 }
0x1fc8   :  { %v2796_v46 = vsub.f32 %v6738_v35, %v2794_v45  ;;  %v2677_v47 = vpop.permute.xlu0 %2676 }
0x1fc9   :  { %v2679_v48 = vsub.f32 %v6736_v34, %v2677_v47 }
0x1fca   :  { %2798 = vrot.lane.b32.xlu1 %v2796_v46, %s6130_s14 }
0x1fcb   :  { %2681 = vrot.lane.b32.xlu0 %v2679_v48, %s6130_s14 }
0x203c   :  { %v2799_v0 = vpop.permute.xlu1 %2798 }
0x203d   :  { %v2801_v49 = vmul.f32 %v5936_v28, %v2799_v0  ;;  %v2682_v24 = vpop.permute.xlu0 %2681 }
0x203e   :  { %v2684_v32 = vmul.f32 %v5934_v50, %v2682_v24 }
0x203f   :  { %2803 = vrot.lane.b32.xlu1 %v2801_v49, %s6130_s14 }
0x2040   :  { %2686 = vrot.lane.b32.xlu0 %v2684_v32, %s6130_s14 }
0x20b1   :  { %v2804_v51 = vpop.permute.xlu1 %2803 }
0x20b2   :  { %v2806_v52 = vadd.f32 %v5938_v43, %v2804_v51  ;;  %v2687_v33 = vpop.permute.xlu0 %2686 }
0x20b3   :  { %v2689_v53 = vadd.f32 %v5940_v44, %v2687_v33  ;;  %v3228_v33 = vld [vmem:[#allocation3 + $0x28] sm:$0xff] }
0x20b4   :  { %2808 = vrot.lane.b32.xlu1 %v2806_v52, %s6127_s13 }
0x20b5   :  { %2691 = vrot.lane.b32.xlu0 %v2689_v53, %s6127_s13  ;;  %v3114_v53 = vld [vmem:[#allocation2 + $0x10] sm:$0xff] }
0x2126   :  { %v2809_v34 = vpop.permute.xlu1 %2808 }
0x2127   :  { %2811 = vst.msk [vmem:[#allocation6] sm:$0xff] %vm380_vm1, %v2809_v34  ;;  %v2692_v35 = vpop.permute.xlu0 %2691 }
0x2128   :  { %2694 = vst.msk [vmem:[#allocation5] sm:$0xff] %vm380_vm1, %v2692_v35 }
0x212e   :  { %v2926_v54 = vld [vmem:[#allocation6] sm:$0xff] }
0x212f   :  { %v2812_v57 = vld [vmem:[#allocation5] sm:$0xff]  ;;  %5399 = vmatmul.mubr.msk.f32.vlgmr.msra.gmra.mrb[34].mxu1 %vm380_vm1, %v2926_v54 }
0x2130   :  { %5388 = vmatmul.mubr.msk.f32.vlgmr.msra.gmra.mrb[34].mxu0 %vm380_vm1, %v2812_v57  ;;  %5737 = vmatpush3.bf16.msra.mxu1 %v6690_v8 }
0x2131   :  { %5731 = vmatpush3.bf16.msra.mxu0 %v6688_v6  ;;  %5738 = vmatprep.subr.bf16.mxu1 %v6126_v13 }
0x2132   :  { %5732 = vmatprep.subr.bf16.mxu0 %v6126_v13  ;;  %5409 = vmatprep.mubr.msk.f32.mxu0 %vm6128_vm2, %v6129_v31 }
0x2133   :  { %5420 = vmatprep.mubr.msk.f32.mxu1 %vm6128_vm2, %v6129_v31 }
0x2134   :  { %5740 = vmatpush3.bf16.msra.mxu1 %v6703_v20 }
0x2135   :  { %5734 = vmatpush3.bf16.msra.mxu0 %v6701_v19  ;;  %5747 = vmatprep.subr.bf16.mxu1 %v6126_v13 }
0x2136   :  { %5741 = vmatprep.subr.bf16.mxu0 %v6126_v13 }
0x2202   :  { %v2996_v58 = vpop.f32.mrb[34].mxu1 }
0x2203   :  { %v2882_v59 = vpop.f32.mrb[34].mxu0  ;;  %v3008_v61 = vadd.f32 %v2996_v58, %v6776_v60  ;;  %v5400_v62 = vpop.f32.mrb[35].mxu1  ;;  %v3001_v11 = vadd.f32 %v3000_v1, %v2996_v58 }
0x2204   :  { %v2894_v10 = vadd.f32 %v2882_v59, %v6774_v5  ;;  %v5389_v63 = vpop.f32.mrb[35].mxu0  ;;  %v2887_v2 = vadd.f32 %v2886_v55, %v2882_v59 }
0x2205   :  { %3010 = vrot.lane.b32.xlu1 %v3008_v61, %s6127_s13  ;;  %v4834_v39 = vmul.f32 -1.442695, %v3001_v11 }
0x2206   :  { %2896 = vrot.lane.b32.xlu0 %v2894_v10, %s6127_s13  ;;  %v4832_v3 = vmul.f32 -1.442695, %v2887_v2 }
0x2207   :  { %5941 = vpow2.f32 %v4834_v39 }
0x2208   :  { %5943 = vpow2.f32 %v4832_v3 }
0x2211   :  { %v5942_v56 = vpop.eup %5941 }
0x2212   :  { %v5944_v17 = vpop.eup %5943  ;;  %v3005_v23 = vadd.f32 1.0, %v5942_v56 }
0x2213   :  { %v2891_v7 = vadd.f32 1.0, %v5944_v17 }
0x2214   :  { %5945 = vrcp.f32 %v3005_v23 }
0x2215   :  { %5947 = vrcp.f32 %v2891_v7 }
0x221e   :  { %v5946_v9 = vpop.eup %5945 }
0x221f   :  { %v5948_v25 = vpop.eup %5947 }
0x2277   :  { %v3011_v12 = vpop.permute.xlu1 %3010 }
0x2278   :  { %v3013_v14 = vmul.f32 %v5946_v9, %v3011_v12  ;;  %v2897_v15 = vpop.permute.xlu0 %2896 }
0x2279   :  { %v2899_v16 = vmul.f32 %v5948_v25, %v2897_v15 }
0x227a   :  { %3015 = vrot.lane.b32.xlu1 %v3013_v14, %s6127_s13 }
0x227b   :  { %2901 = vrot.lane.b32.xlu0 %v2899_v16, %s6127_s13 }
0x22ec   :  { %v3016_v18 = vpop.permute.xlu1 %3015 }
0x22ed   :  { %v3018_v21 = vadd.f32 %v3016_v18, %v3000_v1  ;;  %v2902_v22 = vpop.permute.xlu0 %2901 }
0x22ee   :  { %v2904_v4 = vadd.f32 %v2902_v22, %v2886_v55 }
0x22ef   :  { %5949 = vtanh.f32 %v3018_v21 }
0x22f0   :  { %5951 = vtanh.f32 %v2904_v4 }
0x22f9   :  { %v5950_v26 = vpop.eup %5949 }
0x22fa   :  { %v5952_v27 = vpop.eup %5951  ;;  %3021 = vrot.lane.b32.xlu1 %v5950_v26, %s6127_s13 }
0x22fb   :  { %2907 = vrot.lane.b32.xlu0 %v5952_v27, %s6127_s13 }
0x236c   :  { %v3022_v50 = vpop.permute.xlu1 %3021 }
0x236d   :  { %v3024_v28 = vsub.f32 %v2926_v54, %v3022_v50  ;;  %v2908_v29 = vpop.permute.xlu0 %2907 }
0x236e   :  { %v2910_v30 = vsub.f32 %v2812_v57, %v2908_v29 }
0x236f   :  { %3026 = vrot.lane.b32.xlu1 %v3024_v28, %s6130_s14 }
0x2370   :  { %2912 = vrot.lane.b32.xlu0 %v2910_v30, %s6130_s14 }
0x23e1   :  { %v3027_v36 = vpop.permute.xlu1 %3026 }
0x23e2   :  { %v3029_v37 = vmul.f32 %v5946_v9, %v3027_v36  ;;  %v2913_v38 = vpop.permute.xlu0 %2912 }
0x23e3   :  { %v2915_v40 = vmul.f32 %v5948_v25, %v2913_v38 }
0x23e4   :  { %3031 = vrot.lane.b32.xlu1 %v3029_v37, %s6130_s14 }
0x23e5   :  { %2917 = vrot.lane.b32.xlu0 %v2915_v40, %s6130_s14 }
0x2456   :  { %v3032_v41 = vpop.permute.xlu1 %3031 }
0x2457   :  { %v3034_v42 = vadd.f32 %v5950_v26, %v3032_v41  ;;  %v2918_v43 = vpop.permute.xlu0 %2917 }
0x2458   :  { %v2920_v44 = vadd.f32 %v5952_v27, %v2918_v43  ;;  %v3456_v43 = vld [vmem:[#allocation3 + $0x20] sm:$0xff] }
0x2459   :  { %3036 = vrot.lane.b32.xlu1 %v3034_v42, %s6127_s13 }
0x245a   :  { %2922 = vrot.lane.b32.xlu0 %v2920_v44, %s6127_s13  ;;  %v3342_v44 = vld [vmem:[#allocation2 + $0x18] sm:$0xff] }
0x24cb   :  { %v3037_v45 = vpop.permute.xlu1 %3036 }
0x24cc   :  { %3039 = vst.msk [vmem:[#allocation6] sm:$0xff] %vm380_vm1, %v3037_v45  ;;  %v2923_v46 = vpop.permute.xlu0 %2922 }
0x24cd   :  { %2925 = vst.msk [vmem:[#allocation5] sm:$0xff] %vm380_vm1, %v2923_v46 }
0x24d3   :  { %v3154_v47 = vld [vmem:[#allocation6] sm:$0xff] }
0x24d4   :  { %v3040_v48 = vld [vmem:[#allocation5] sm:$0xff]  ;;  %5421 = vmatmul.mubr.msk.f32.vlgmr.msra.gmra.mrb[36].mxu1 %vm380_vm1, %v3154_v47 }
0x24d5   :  { %5410 = vmatmul.mubr.msk.f32.vlgmr.msra.gmra.mrb[36].mxu0 %vm380_vm1, %v3040_v48  ;;  %5749 = vmatpush3.bf16.msra.mxu1 %v6690_v8 }
0x24d6   :  { %5743 = vmatpush3.bf16.msra.mxu0 %v6688_v6  ;;  %5750 = vmatprep.subr.bf16.mxu1 %v6126_v13 }
0x24d7   :  { %5744 = vmatprep.subr.bf16.mxu0 %v6126_v13  ;;  %5431 = vmatprep.mubr.msk.f32.mxu0 %vm6128_vm2, %v6129_v31 }
0x24d8   :  { %5442 = vmatprep.mubr.msk.f32.mxu1 %vm6128_vm2, %v6129_v31 }
0x24d9   :  { %5752 = vmatpush3.bf16.msra.mxu1 %v6703_v20 }
0x24da   :  { %5746 = vmatpush3.bf16.msra.mxu0 %v6701_v19  ;;  %5759 = vmatprep.subr.bf16.mxu1 %v6126_v13 }
0x24db   :  { %5753 = vmatprep.subr.bf16.mxu0 %v6126_v13 }
0x25a7   :  { %v3224_v0 = vpop.f32.mrb[36].mxu1 }
0x25a8   :  { %v3110_v49 = vpop.f32.mrb[36].mxu0  ;;  %v3236_v24 = vadd.f32 %v3224_v0, %v6776_v60  ;;  %v5422_v32 = vpop.f32.mrb[37].mxu1  ;;  %v3229_v34 = vadd.f32 %v3228_v33, %v3224_v0 }
0x25a9   :  { %v3122_v51 = vadd.f32 %v3110_v49, %v6774_v5  ;;  %v5411_v52 = vpop.f32.mrb[37].mxu0  ;;  %v3115_v35 = vadd.f32 %v3114_v53, %v3110_v49 }
0x25aa   :  { %3238 = vrot.lane.b32.xlu1 %v3236_v24, %s6127_s13  ;;  %v4838_v54 = vmul.f32 -1.442695, %v3229_v34 }
0x25ab   :  { %3124 = vrot.lane.b32.xlu0 %v3122_v51, %s6127_s13  ;;  %v4836_v57 = vmul.f32 -1.442695, %v3115_v35 }
0x25ac   :  { %5953 = vpow2.f32 %v4838_v54 }
0x25ad   :  { %5955 = vpow2.f32 %v4836_v57 }
0x25b6   :  { %v5954_v58 = vpop.eup %5953 }
0x25b7   :  { %v5956_v59 = vpop.eup %5955  ;;  %v3233_v61 = vadd.f32 1.0, %v5954_v58 }
0x25b8   :  { %v3119_v62 = vadd.f32 1.0, %v5956_v59 }
0x25b9   :  { %5957 = vrcp.f32 %v3233_v61 }
0x25ba   :  { %5959 = vrcp.f32 %v3119_v62 }
0x25c3   :  { %v5958_v10 = vpop.eup %5957 }
0x25c4   :  { %v5960_v1 = vpop.eup %5959 }
0x261c   :  { %v3239_v63 = vpop.permute.xlu1 %3238 }
0x261d   :  { %v3241_v55 = vmul.f32 %v5958_v10, %v3239_v63  ;;  %v3125_v11 = vpop.permute.xlu0 %3124 }
0x261e   :  { %v3127_v2 = vmul.f32 %v5960_v1, %v3125_v11 }
0x261f   :  { %3243 = vrot.lane.b32.xlu1 %v3241_v55, %s6127_s13 }
0x2620   :  { %3129 = vrot.lane.b32.xlu0 %v3127_v2, %s6127_s13 }
0x2691   :  { %v3244_v39 = vpop.permute.xlu1 %3243 }
0x2692   :  { %v3246_v3 = vadd.f32 %v3244_v39, %v3228_v33  ;;  %v3130_v56 = vpop.permute.xlu0 %3129 }
0x2693   :  { %v3132_v17 = vadd.f32 %v3130_v56, %v3114_v53 }
0x2694   :  { %5961 = vtanh.f32 %v3246_v3 }
0x2695   :  { %5963 = vtanh.f32 %v3132_v17 }
0x269e   :  { %v5962_v23 = vpop.eup %5961 }
0x269f   :  { %v5964_v7 = vpop.eup %5963  ;;  %3249 = vrot.lane.b32.xlu1 %v5962_v23, %s6127_s13 }
0x26a0   :  { %3135 = vrot.lane.b32.xlu0 %v5964_v7, %s6127_s13 }
0x2711   :  { %v3250_v9 = vpop.permute.xlu1 %3249 }
0x2712   :  { %v3252_v12 = vsub.f32 %v3154_v47, %v3250_v9  ;;  %v3136_v25 = vpop.permute.xlu0 %3135 }
0x2713   :  { %v3138_v14 = vsub.f32 %v3040_v48, %v3136_v25 }
0x2714   :  { %3254 = vrot.lane.b32.xlu1 %v3252_v12, %s6130_s14 }
0x2715   :  { %3140 = vrot.lane.b32.xlu0 %v3138_v14, %s6130_s14 }
0x2786   :  { %v3255_v15 = vpop.permute.xlu1 %3254 }
0x2787   :  { %v3257_v16 = vmul.f32 %v5958_v10, %v3255_v15  ;;  %v3141_v18 = vpop.permute.xlu0 %3140 }
0x2788   :  { %v3143_v21 = vmul.f32 %v5960_v1, %v3141_v18 }
0x2789   :  { %3259 = vrot.lane.b32.xlu1 %v3257_v16, %s6130_s14 }
0x278a   :  { %3145 = vrot.lane.b32.xlu0 %v3143_v21, %s6130_s14 }
0x27fb   :  { %v3260_v22 = vpop.permute.xlu1 %3259 }
0x27fc   :  { %v3262_v4 = vadd.f32 %v5962_v23, %v3260_v22  ;;  %v3146_v26 = vpop.permute.xlu0 %3145 }
0x27fd   :  { %v3148_v27 = vadd.f32 %v5964_v7, %v3146_v26  ;;  %v3684_v26 = vld [vmem:[#allocation3 + $0x18] sm:$0xff] }
0x27fe   :  { %3264 = vrot.lane.b32.xlu1 %v3262_v4, %s6127_s13 }
0x27ff   :  { %3150 = vrot.lane.b32.xlu0 %v3148_v27, %s6127_s13  ;;  %v3570_v27 = vld [vmem:[#allocation2 + $0x20] sm:$0xff] }
0x2870   :  { %v3265_v50 = vpop.permute.xlu1 %3264 }
0x2871   :  { %3267 = vst.msk [vmem:[#allocation6] sm:$0xff] %vm380_vm1, %v3265_v50  ;;  %v3151_v28 = vpop.permute.xlu0 %3150 }
0x2872   :  { %3153 = vst.msk [vmem:[#allocation5] sm:$0xff] %vm380_vm1, %v3151_v28 }
0x2878   :  { %v3382_v29 = vld [vmem:[#allocation6] sm:$0xff] }
0x2879   :  { %v3268_v30 = vld [vmem:[#allocation5] sm:$0xff]  ;;  %5443 = vmatmul.mubr.msk.f32.vlgmr.msra.gmra.mrb[38].mxu1 %vm380_vm1, %v3382_v29 }
0x287a   :  { %5432 = vmatmul.mubr.msk.f32.vlgmr.msra.gmra.mrb[38].mxu0 %vm380_vm1, %v3268_v30  ;;  %5761 = vmatpush3.bf16.msra.mxu1 %v6690_v8 }
0x287b   :  { %5755 = vmatpush3.bf16.msra.mxu0 %v6688_v6  ;;  %5762 = vmatprep.subr.bf16.mxu1 %v6126_v13 }
0x287c   :  { %5756 = vmatprep.subr.bf16.mxu0 %v6126_v13  ;;  %5453 = vmatprep.mubr.msk.f32.mxu0 %vm6128_vm2, %v6129_v31 }
0x287d   :  { %5464 = vmatprep.mubr.msk.f32.mxu1 %vm6128_vm2, %v6129_v31 }
0x287e   :  { %5764 = vmatpush3.bf16.msra.mxu1 %v6703_v20 }
0x287f   :  { %5758 = vmatpush3.bf16.msra.mxu0 %v6701_v19  ;;  %5771 = vmatprep.subr.bf16.mxu1 %v6126_v13 }
0x2880   :  { %5765 = vmatprep.subr.bf16.mxu0 %v6126_v13 }
0x294c   :  { %v3452_v36 = vpop.f32.mrb[38].mxu1 }
0x294d   :  { %v3338_v37 = vpop.f32.mrb[38].mxu0  ;;  %v3464_v38 = vadd.f32 %v3452_v36, %v6776_v60  ;;  %v5444_v40 = vpop.f32.mrb[39].mxu1  ;;  %v3457_v45 = vadd.f32 %v3456_v43, %v3452_v36 }
0x294e   :  { %v3350_v41 = vadd.f32 %v3338_v37, %v6774_v5  ;;  %v5433_v42 = vpop.f32.mrb[39].mxu0  ;;  %v3343_v46 = vadd.f32 %v3342_v44, %v3338_v37 }
0x294f   :  { %3466 = vrot.lane.b32.xlu1 %v3464_v38, %s6127_s13  ;;  %v4842_v47 = vmul.f32 -1.442695, %v3457_v45 }
0x2950   :  { %3352 = vrot.lane.b32.xlu0 %v3350_v41, %s6127_s13  ;;  %v4840_v48 = vmul.f32 -1.442695, %v3343_v46 }
0x2951   :  { %5965 = vpow2.f32 %v4842_v47 }
0x2952   :  { %5967 = vpow2.f32 %v4840_v48 }
0x295b   :  { %v5966_v0 = vpop.eup %5965 }
0x295c   :  { %v5968_v49 = vpop.eup %5967  ;;  %v3461_v24 = vadd.f32 1.0, %v5966_v0 }
0x295d   :  { %v3347_v32 = vadd.f32 1.0, %v5968_v49 }
0x295e   :  { %5969 = vrcp.f32 %v3461_v24 }
0x295f   :  { %5971 = vrcp.f32 %v3347_v32 }
0x2968   :  { %v5970_v51 = vpop.eup %5969 }
0x2969   :  { %v5972_v33 = vpop.eup %5971 }
0x29c1   :  { %v3467_v52 = vpop.permute.xlu1 %3466 }
0x29c2   :  { %v3469_v53 = vmul.f32 %v5970_v51, %v3467_v52  ;;  %v3353_v34 = vpop.permute.xlu0 %3352 }
0x29c3   :  { %v3355_v35 = vmul.f32 %v5972_v33, %v3353_v34 }
0x29c4   :  { %3471 = vrot.lane.b32.xlu1 %v3469_v53, %s6127_s13 }
0x29c5   :  { %3357 = vrot.lane.b32.xlu0 %v3355_v35, %s6127_s13 }
0x2a36   :  { %v3472_v54 = vpop.permute.xlu1 %3471 }
0x2a37   :  { %v3474_v57 = vadd.f32 %v3472_v54, %v3456_v43  ;;  %v3358_v58 = vpop.permute.xlu0 %3357 }
0x2a38   :  { %v3360_v59 = vadd.f32 %v3358_v58, %v3342_v44 }
0x2a39   :  { %5973 = vtanh.f32 %v3474_v57 }
0x2a3a   :  { %5975 = vtanh.f32 %v3360_v59 }
0x2a43   :  { %v5974_v61 = vpop.eup %5973 }
0x2a44   :  { %v5976_v62 = vpop.eup %5975  ;;  %3477 = vrot.lane.b32.xlu1 %v5974_v61, %s6127_s13 }
0x2a45   :  { %3363 = vrot.lane.b32.xlu0 %v5976_v62, %s6127_s13 }
0x2ab6   :  { %v3478_v10 = vpop.permute.xlu1 %3477 }
0x2ab7   :  { %v3480_v63 = vsub.f32 %v3382_v29, %v3478_v10  ;;  %v3364_v1 = vpop.permute.xlu0 %3363 }
0x2ab8   :  { %v3366_v55 = vsub.f32 %v3268_v30, %v3364_v1 }
0x2ab9   :  { %3482 = vrot.lane.b32.xlu1 %v3480_v63, %s6130_s14 }
0x2aba   :  { %3368 = vrot.lane.b32.xlu0 %v3366_v55, %s6130_s14 }
0x2b2b   :  { %v3483_v11 = vpop.permute.xlu1 %3482 }
0x2b2c   :  { %v3485_v2 = vmul.f32 %v5970_v51, %v3483_v11  ;;  %v3369_v39 = vpop.permute.xlu0 %3368 }
0x2b2d   :  { %v3371_v3 = vmul.f32 %v5972_v33, %v3369_v39 }
0x2b2e   :  { %3487 = vrot.lane.b32.xlu1 %v3485_v2, %s6130_s14 }
0x2b2f   :  { %3373 = vrot.lane.b32.xlu0 %v3371_v3, %s6130_s14 }
0x2ba0   :  { %v3488_v56 = vpop.permute.xlu1 %3487 }
0x2ba1   :  { %v3490_v17 = vadd.f32 %v5974_v61, %v3488_v56  ;;  %v3374_v23 = vpop.permute.xlu0 %3373 }
0x2ba2   :  { %v3376_v7 = vadd.f32 %v5976_v62, %v3374_v23  ;;  %v3912_v23 = vld [vmem:[#allocation3 + $0x10] sm:$0xff] }
0x2ba3   :  { %3492 = vrot.lane.b32.xlu1 %v3490_v17, %s6127_s13 }
0x2ba4   :  { %3378 = vrot.lane.b32.xlu0 %v3376_v7, %s6127_s13  ;;  %v3798_v7 = vld [vmem:[#allocation2 + $0x28] sm:$0xff] }
0x2c15   :  { %v3493_v9 = vpop.permute.xlu1 %3492 }
0x2c16   :  { %3495 = vst.msk [vmem:[#allocation6] sm:$0xff] %vm380_vm1, %v3493_v9  ;;  %v3379_v12 = vpop.permute.xlu0 %3378 }
0x2c17   :  { %3381 = vst.msk [vmem:[#allocation5] sm:$0xff] %vm380_vm1, %v3379_v12 }
0x2c1d   :  { %v3610_v25 = vld [vmem:[#allocation6] sm:$0xff] }
0x2c1e   :  { %v3496_v14 = vld [vmem:[#allocation5] sm:$0xff]  ;;  %5465 = vmatmul.mubr.msk.f32.vlgmr.msra.gmra.mrb[40].mxu1 %vm380_vm1, %v3610_v25 }
0x2c1f   :  { %5454 = vmatmul.mubr.msk.f32.vlgmr.msra.gmra.mrb[40].mxu0 %vm380_vm1, %v3496_v14  ;;  %5773 = vmatpush3.bf16.msra.mxu1 %v6690_v8 }
0x2c20   :  { %5767 = vmatpush3.bf16.msra.mxu0 %v6688_v6  ;;  %5774 = vmatprep.subr.bf16.mxu1 %v6126_v13 }
0x2c21   :  { %5768 = vmatprep.subr.bf16.mxu0 %v6126_v13  ;;  %5475 = vmatprep.mubr.msk.f32.mxu0 %vm6128_vm2, %v6129_v31 }
0x2c22   :  { %5486 = vmatprep.mubr.msk.f32.mxu1 %vm6128_vm2, %v6129_v31 }
0x2c23   :  { %5776 = vmatpush3.bf16.msra.mxu1 %v6703_v20 }
0x2c24   :  { %5770 = vmatpush3.bf16.msra.mxu0 %v6701_v19  ;;  %5783 = vmatprep.subr.bf16.mxu1 %v6126_v13 }
0x2c25   :  { %5777 = vmatprep.subr.bf16.mxu0 %v6126_v13 }
0x2cf1   :  { %v3680_v15 = vpop.f32.mrb[40].mxu1 }
0x2cf2   :  { %v3566_v16 = vpop.f32.mrb[40].mxu0  ;;  %v3692_v18 = vadd.f32 %v3680_v15, %v6776_v60  ;;  %v5466_v21 = vpop.f32.mrb[41].mxu1  ;;  %v3685_v50 = vadd.f32 %v3684_v26, %v3680_v15 }
0x2cf3   :  { %v3578_v22 = vadd.f32 %v3566_v16, %v6774_v5  ;;  %v5455_v4 = vpop.f32.mrb[41].mxu0  ;;  %v3571_v28 = vadd.f32 %v3570_v27, %v3566_v16 }
0x2cf4   :  { %3694 = vrot.lane.b32.xlu1 %v3692_v18, %s6127_s13  ;;  %v4846_v29 = vmul.f32 -1.442695, %v3685_v50 }
0x2cf5   :  { %3580 = vrot.lane.b32.xlu0 %v3578_v22, %s6127_s13  ;;  %v4844_v30 = vmul.f32 -1.442695, %v3571_v28 }
0x2cf6   :  { %5977 = vpow2.f32 %v4846_v29 }
0x2cf7   :  { %5979 = vpow2.f32 %v4844_v30 }
0x2d00   :  { %v5978_v36 = vpop.eup %5977 }
0x2d01   :  { %v5980_v37 = vpop.eup %5979  ;;  %v3689_v38 = vadd.f32 1.0, %v5978_v36 }
0x2d02   :  { %v3575_v40 = vadd.f32 1.0, %v5980_v37 }
0x2d03   :  { %5981 = vrcp.f32 %v3689_v38 }
0x2d04   :  { %5983 = vrcp.f32 %v3575_v40 }
0x2d0d   :  { %v5982_v41 = vpop.eup %5981 }
0x2d0e   :  { %v5984_v43 = vpop.eup %5983 }
0x2d66   :  { %v3695_v42 = vpop.permute.xlu1 %3694 }
0x2d67   :  { %v3697_v44 = vmul.f32 %v5982_v41, %v3695_v42  ;;  %v3581_v45 = vpop.permute.xlu0 %3580 }
0x2d68   :  { %v3583_v46 = vmul.f32 %v5984_v43, %v3581_v45 }
0x2d69   :  { %3699 = vrot.lane.b32.xlu1 %v3697_v44, %s6127_s13 }
0x2d6a   :  { %3585 = vrot.lane.b32.xlu0 %v3583_v46, %s6127_s13 }
0x2ddb   :  { %v3700_v47 = vpop.permute.xlu1 %3699 }
0x2ddc   :  { %v3702_v48 = vadd.f32 %v3700_v47, %v3684_v26  ;;  %v3586_v0 = vpop.permute.xlu0 %3585 }
0x2ddd   :  { %v3588_v49 = vadd.f32 %v3586_v0, %v3570_v27 }
0x2dde   :  { %5985 = vtanh.f32 %v3702_v48 }
0x2ddf   :  { %5987 = vtanh.f32 %v3588_v49 }
0x2de8   :  { %v5986_v24 = vpop.eup %5985 }
0x2de9   :  { %v5988_v32 = vpop.eup %5987  ;;  %3705 = vrot.lane.b32.xlu1 %v5986_v24, %s6127_s13 }
0x2dea   :  { %3591 = vrot.lane.b32.xlu0 %v5988_v32, %s6127_s13 }
0x2e5b   :  { %v3706_v51 = vpop.permute.xlu1 %3705 }
0x2e5c   :  { %v3708_v52 = vsub.f32 %v3610_v25, %v3706_v51  ;;  %v3592_v33 = vpop.permute.xlu0 %3591 }
0x2e5d   :  { %v3594_v53 = vsub.f32 %v3496_v14, %v3592_v33 }
0x2e5e   :  { %3710 = vrot.lane.b32.xlu1 %v3708_v52, %s6130_s14 }
0x2e5f   :  { %3596 = vrot.lane.b32.xlu0 %v3594_v53, %s6130_s14 }
0x2ed0   :  { %v3711_v34 = vpop.permute.xlu1 %3710 }
0x2ed1   :  { %v3713_v35 = vmul.f32 %v5982_v41, %v3711_v34  ;;  %v3597_v54 = vpop.permute.xlu0 %3596 }
0x2ed2   :  { %v3599_v57 = vmul.f32 %v5984_v43, %v3597_v54 }
0x2ed3   :  { %3715 = vrot.lane.b32.xlu1 %v3713_v35, %s6130_s14 }
0x2ed4   :  { %3601 = vrot.lane.b32.xlu0 %v3599_v57, %s6130_s14 }
0x2f45   :  { %v3716_v58 = vpop.permute.xlu1 %3715 }
0x2f46   :  { %v3718_v59 = vadd.f32 %v5986_v24, %v3716_v58  ;;  %v3602_v61 = vpop.permute.xlu0 %3601  ;;  %v4140_v58 = vld [vmem:[#allocation3 + $0x8] sm:$0xff] }
0x2f47   :  { %v3604_v62 = vadd.f32 %v5988_v32, %v3602_v61 }
0x2f48   :  { %3720 = vrot.lane.b32.xlu1 %v3718_v59, %s6127_s13 }
0x2f49   :  { %3606 = vrot.lane.b32.xlu0 %v3604_v62, %s6127_s13 }
0x2fba   :  { %v3721_v10 = vpop.permute.xlu1 %3720 }
0x2fbb   :  { %3723 = vst.msk [vmem:[#allocation6] sm:$0xff] %vm380_vm1, %v3721_v10  ;;  %v3607_v63 = vpop.permute.xlu0 %3606 }
0x2fbc   :  { %3609 = vst.msk [vmem:[#allocation5] sm:$0xff] %vm380_vm1, %v3607_v63 }
0x2fc2   :  { %v3838_v1 = vld [vmem:[#allocation6] sm:$0xff] }
0x2fc3   :  { %v3724_v55 = vld [vmem:[#allocation5] sm:$0xff]  ;;  %5487 = vmatmul.mubr.msk.f32.vlgmr.msra.gmra.mrb[42].mxu1 %vm380_vm1, %v3838_v1 }
0x2fc4   :  { %5476 = vmatmul.mubr.msk.f32.vlgmr.msra.gmra.mrb[42].mxu0 %vm380_vm1, %v3724_v55  ;;  %5785 = vmatpush3.bf16.msra.mxu1 %v6690_v8 }
0x2fc5   :  { %5779 = vmatpush3.bf16.msra.mxu0 %v6688_v6  ;;  %5786 = vmatprep.subr.bf16.mxu1 %v6126_v13 }
0x2fc6   :  { %5780 = vmatprep.subr.bf16.mxu0 %v6126_v13  ;;  %5497 = vmatprep.mubr.msk.f32.mxu0 %vm6128_vm2, %v6129_v31 }
0x2fc7   :  { %5508 = vmatprep.mubr.msk.f32.mxu1 %vm6128_vm2, %v6129_v31 }
0x2fc8   :  { %5788 = vmatpush3.bf16.msra.mxu1 %v6703_v20 }
0x2fc9   :  { %5782 = vmatpush3.bf16.msra.mxu0 %v6701_v19  ;;  %5795 = vmatprep.subr.bf16.mxu1 %v6126_v13 }
0x2fca   :  { %5789 = vmatprep.subr.bf16.mxu0 %v6126_v13 }
0x3096   :  { %v3908_v11 = vpop.f32.mrb[42].mxu1 }
0x3097   :  { %v3794_v2 = vpop.f32.mrb[42].mxu0  ;;  %v3920_v39 = vadd.f32 %v3908_v11, %v6776_v60  ;;  %v5488_v3 = vpop.f32.mrb[43].mxu1  ;;  %v3913_v9 = vadd.f32 %v3912_v23, %v3908_v11 }
0x3098   :  { %v3806_v56 = vadd.f32 %v3794_v2, %v6774_v5  ;;  %v5477_v17 = vpop.f32.mrb[43].mxu0  ;;  %v3799_v12 = vadd.f32 %v3798_v7, %v3794_v2 }
0x3099   :  { %3922 = vrot.lane.b32.xlu1 %v3920_v39, %s6127_s13  ;;  %v4850_v25 = vmul.f32 -1.442695, %v3913_v9 }
0x309a   :  { %3808 = vrot.lane.b32.xlu0 %v3806_v56, %s6127_s13  ;;  %v4848_v14 = vmul.f32 -1.442695, %v3799_v12 }
0x309b   :  { %5989 = vpow2.f32 %v4850_v25 }
0x309c   :  { %5991 = vpow2.f32 %v4848_v14 }
0x30a5   :  { %v5990_v15 = vpop.eup %5989 }
0x30a6   :  { %v5992_v16 = vpop.eup %5991  ;;  %v3917_v18 = vadd.f32 1.0, %v5990_v15 }
0x30a7   :  { %v3803_v21 = vadd.f32 1.0, %v5992_v16 }
0x30a8   :  { %5993 = vrcp.f32 %v3917_v18 }
0x30a9   :  { %5995 = vrcp.f32 %v3803_v21 }
0x30b2   :  { %v5994_v22 = vpop.eup %5993 }
0x30b3   :  { %v5996_v26 = vpop.eup %5995 }
0x310b   :  { %v3923_v4 = vpop.permute.xlu1 %3922 }
0x310c   :  { %v3925_v27 = vmul.f32 %v5994_v22, %v3923_v4  ;;  %v3809_v50 = vpop.permute.xlu0 %3808 }
0x310d   :  { %v3811_v28 = vmul.f32 %v5996_v26, %v3809_v50 }
0x310e   :  { %3927 = vrot.lane.b32.xlu1 %v3925_v27, %s6127_s13 }
0x310f   :  { %3813 = vrot.lane.b32.xlu0 %v3811_v28, %s6127_s13 }
0x3180   :  { %v3928_v29 = vpop.permute.xlu1 %3927 }
0x3181   :  { %v3930_v30 = vadd.f32 %v3928_v29, %v3912_v23  ;;  %v3814_v36 = vpop.permute.xlu0 %3813 }
0x3182   :  { %v3816_v37 = vadd.f32 %v3814_v36, %v3798_v7 }
0x3183   :  { %5997 = vtanh.f32 %v3930_v30 }
0x3184   :  { %5999 = vtanh.f32 %v3816_v37 }
0x318d   :  { %v5998_v38 = vpop.eup %5997 }
0x318e   :  { %v6000_v40 = vpop.eup %5999  ;;  %3933 = vrot.lane.b32.xlu1 %v5998_v38, %s6127_s13 }
0x318f   :  { %3819 = vrot.lane.b32.xlu0 %v6000_v40, %s6127_s13 }
0x3200   :  { %v3934_v41 = vpop.permute.xlu1 %3933 }
0x3201   :  { %v3936_v42 = vsub.f32 %v3838_v1, %v3934_v41  ;;  %v3820_v43 = vpop.permute.xlu0 %3819 }
0x3202   :  { %v3822_v44 = vsub.f32 %v3724_v55, %v3820_v43 }
0x3203   :  { %3938 = vrot.lane.b32.xlu1 %v3936_v42, %s6130_s14 }
0x3204   :  { %3824 = vrot.lane.b32.xlu0 %v3822_v44, %s6130_s14 }
0x3275   :  { %v3939_v45 = vpop.permute.xlu1 %3938 }
0x3276   :  { %v3941_v46 = vmul.f32 %v5994_v22, %v3939_v45  ;;  %v3825_v47 = vpop.permute.xlu0 %3824 }
0x3277   :  { %v3827_v48 = vmul.f32 %v5996_v26, %v3825_v47  ;;  %v4368_v47 = vld [vmem:[#allocation3] sm:$0xff] }
0x3278   :  { %3943 = vrot.lane.b32.xlu1 %v3941_v46, %s6130_s14 }
0x3279   :  { %3829 = vrot.lane.b32.xlu0 %v3827_v48, %s6130_s14  ;;  %v4254_v48 = vld [vmem:[#allocation2 + $0x38] sm:$0xff] }
0x32ea   :  { %v3944_v0 = vpop.permute.xlu1 %3943 }
0x32eb   :  { %v3946_v49 = vadd.f32 %v5998_v38, %v3944_v0  ;;  %v3830_v24 = vpop.permute.xlu0 %3829 }
0x32ec   :  { %v3832_v32 = vadd.f32 %v6000_v40, %v3830_v24 }
0x32ed   :  { %3948 = vrot.lane.b32.xlu1 %v3946_v49, %s6127_s13 }
0x32ee   :  { %3834 = vrot.lane.b32.xlu0 %v3832_v32, %s6127_s13 }
0x335f   :  { %v3949_v51 = vpop.permute.xlu1 %3948 }
0x3360   :  { %3951 = vst.msk [vmem:[#allocation6] sm:$0xff] %vm380_vm1, %v3949_v51  ;;  %v3835_v52 = vpop.permute.xlu0 %3834 }
0x3361   :  { %3837 = vst.msk [vmem:[#allocation5] sm:$0xff] %vm380_vm1, %v3835_v52 }
0x3367   :  { %v4066_v33 = vld [vmem:[#allocation6] sm:$0xff] }
0x3368   :  { %v3952_v53 = vld [vmem:[#allocation5] sm:$0xff]  ;;  %5509 = vmatmul.mubr.msk.f32.vlgmr.msra.gmra.mrb[44].mxu1 %vm380_vm1, %v4066_v33 }
0x3369   :  { %5498 = vmatmul.mubr.msk.f32.vlgmr.msra.gmra.mrb[44].mxu0 %vm380_vm1, %v3952_v53  ;;  %5797 = vmatpush3.bf16.msra.mxu1 %v6690_v8 }
0x336a   :  { %5791 = vmatpush3.bf16.msra.mxu0 %v6688_v6  ;;  %5798 = vmatprep.subr.bf16.mxu1 %v6126_v13 }
0x336b   :  { %5792 = vmatprep.subr.bf16.mxu0 %v6126_v13  ;;  %5519 = vmatprep.mubr.msk.f32.mxu0 %vm6128_vm2, %v6129_v31 }
0x336c   :  { %5530 = vmatprep.mubr.msk.f32.mxu1 %vm6128_vm2, %v6129_v31 }
0x336d   :  { %5800 = vmatpush3.bf16.msra.mxu1 %v6703_v20  ;;  %v4026_v20 = vld [vmem:[#allocation2 + $0x30] sm:$0xff] }
0x336e   :  { %5794 = vmatpush3.bf16.msra.mxu0 %v6701_v19  ;;  %5804 = vmatprep.subr.bf16.mxu1 %v6126_v13 }
0x336f   :  { %5801 = vmatprep.subr.bf16.mxu0 %v6126_v13 }
0x343b   :  { %v4136_v8 = vpop.f32.mrb[44].mxu1 }
0x343c   :  { %v4022_v6 = vpop.f32.mrb[44].mxu0  ;;  %v4148_v34 = vadd.f32 %v4136_v8, %v6776_v60  ;;  %v5510_v35 = vpop.f32.mrb[45].mxu1  ;;  %v4141_v59 = vadd.f32 %v4140_v58, %v4136_v8 }
0x343d   :  { %v4034_v54 = vadd.f32 %v4022_v6, %v6774_v5  ;;  %v5499_v57 = vpop.f32.mrb[45].mxu0  ;;  %v4027_v19 = vadd.f32 %v4026_v20, %v4022_v6 }
0x343e   :  { %4150 = vrot.lane.b32.xlu1 %v4148_v34, %s6127_s13  ;;  %v4854_v61 = vmul.f32 -1.442695, %v4141_v59 }
0x343f   :  { %4036 = vrot.lane.b32.xlu0 %v4034_v54, %s6127_s13  ;;  %v4852_v62 = vmul.f32 -1.442695, %v4027_v19 }
0x3440   :  { %6001 = vpow2.f32 %v4854_v61 }
0x3441   :  { %6003 = vpow2.f32 %v4852_v62 }
0x344a   :  { %v6002_v10 = vpop.eup %6001 }
0x344b   :  { %v6004_v63 = vpop.eup %6003  ;;  %v4145_v1 = vadd.f32 1.0, %v6002_v10 }
0x344c   :  { %v4031_v55 = vadd.f32 1.0, %v6004_v63 }
0x344d   :  { %6005 = vrcp.f32 %v4145_v1 }
0x344e   :  { %6007 = vrcp.f32 %v4031_v55 }
0x3457   :  { %v6006_v11 = vpop.eup %6005 }
0x3458   :  { %v6008_v39 = vpop.eup %6007 }
0x34b0   :  { %v4151_v2 = vpop.permute.xlu1 %4150 }
0x34b1   :  { %v4153_v3 = vmul.f32 %v6006_v11, %v4151_v2  ;;  %v4037_v56 = vpop.permute.xlu0 %4036 }
0x34b2   :  { %v4039_v17 = vmul.f32 %v6008_v39, %v4037_v56 }
0x34b3   :  { %4155 = vrot.lane.b32.xlu1 %v4153_v3, %s6127_s13 }
0x34b4   :  { %4041 = vrot.lane.b32.xlu0 %v4039_v17, %s6127_s13 }
0x3525   :  { %v4156_v23 = vpop.permute.xlu1 %4155 }
0x3526   :  { %v4158_v7 = vadd.f32 %v4156_v23, %v4140_v58  ;;  %v4042_v9 = vpop.permute.xlu0 %4041 }
0x3527   :  { %v4044_v12 = vadd.f32 %v4042_v9, %v4026_v20 }
0x3528   :  { %6009 = vtanh.f32 %v4158_v7 }
0x3529   :  { %6011 = vtanh.f32 %v4044_v12  ;;  %v4563_v12 = vld [vmem:[#allocation12 + $0x20] sm:$0xff] }
0x3532   :  { %v6010_v25 = vpop.eup %6009 }
0x3533   :  { %v6012_v14 = vpop.eup %6011  ;;  %4161 = vrot.lane.b32.xlu1 %v6010_v25, %s6127_s13 }
0x3534   :  { %4047 = vrot.lane.b32.xlu0 %v6012_v14, %s6127_s13 }
0x35a5   :  { %v4162_v15 = vpop.permute.xlu1 %4161 }
0x35a6   :  { %v4164_v16 = vsub.f32 %v4066_v33, %v4162_v15  ;;  %v4048_v18 = vpop.permute.xlu0 %4047  ;;  %v4559_v15 = vld [vmem:[#allocation12] sm:$0xff] }
0x35a7   :  { %v4050_v21 = vsub.f32 %v3952_v53, %v4048_v18 }
0x35a8   :  { %4166 = vrot.lane.b32.xlu1 %v4164_v16, %s6130_s14  ;;  %v4560_v16 = vld [vmem:[#allocation12 + $0x8] sm:$0xff] }
0x35a9   :  { %4052 = vrot.lane.b32.xlu0 %v4050_v21, %s6130_s14  ;;  %v4410_v21 = vld [vmem:[%s7042_s7] sm:$0xf] }
0x361a   :  { %v4167_v22 = vpop.permute.xlu1 %4166 }
0x361b   :  { %v4169_v4 = vmul.f32 %v6006_v11, %v4167_v22  ;;  %v4053_v26 = vpop.permute.xlu0 %4052  ;;  %v4860_v22 = vld [vmem:[%s7042_s7 + $0x4] sm:$0xf] }
0x361c   :  { %v4055_v27 = vmul.f32 %v6008_v39, %v4053_v26  ;;  %v5814_v26 = vpack.c.bf16 %v4560_v16, %v4559_v15 }
0x361d   :  { %4171 = vrot.lane.b32.xlu1 %v4169_v4, %s6130_s14 }
0x361e   :  { %4057 = vrot.lane.b32.xlu0 %v4055_v27, %s6130_s14  ;;  %v4565_v27 = vld [vmem:[#allocation12 + $0x30] sm:$0xff] }
0x368f   :  { %v4172_v50 = vpop.permute.xlu1 %4171 }
0x3690   :  { %v4174_v28 = vadd.f32 %v6010_v25, %v4172_v50  ;;  %v4058_v29 = vpop.permute.xlu0 %4057  ;;  %v4564_v25 = vld [vmem:[#allocation12 + $0x28] sm:$0xff]  ;;  %v4566_v50 = vld [vmem:[#allocation12 + $0x38] sm:$0xff] }
0x3691   :  { %v4060_v30 = vadd.f32 %v6012_v14, %v4058_v29  ;;  %v5808_v4 = vpack.c.bf16 %v4564_v25, %v4563_v12  ;;  %v4562_v29 = vld [vmem:[#allocation12 + $0x18] sm:$0xff] }
0x3692   :  { %4176 = vrot.lane.b32.xlu1 %v4174_v28, %s6127_s13  ;;  %v4561_v28 = vld [vmem:[#allocation12 + $0x10] sm:$0xff] }
0x3693   :  { %4062 = vrot.lane.b32.xlu0 %v4060_v30, %s6127_s13  ;;  %v5811_v30 = vpack.c.bf16 %v4566_v50, %v4565_v27 }
0x3704   :  { %v4177_v36 = vpop.permute.xlu1 %4176 }
0x3705   :  { %4179 = vst.msk [vmem:[#allocation6] sm:$0xff] %vm380_vm1, %v4177_v36  ;;  %v4063_v37 = vpop.permute.xlu0 %4062  ;;  %v5817_v36 = vpack.c.bf16 %v4562_v29, %v4561_v28 }
0x3706   :  { %4065 = vst.msk [vmem:[#allocation5] sm:$0xff] %vm380_vm1, %v4063_v37 }
0x370c   :  { %v4294_v38 = vld [vmem:[#allocation6] sm:$0xff] }
0x370d   :  { %v4180_v40 = vld [vmem:[#allocation5] sm:$0xff]  ;;  %5531 = vmatmul.mubr.msk.f32.vlgmr.msra.gmra.mrb[46].mxu1 %vm380_vm1, %v4294_v38 }
0x370e   :  { %5520 = vmatmul.mubr.msk.f32.vlgmr.msra.gmra.mrb[46].mxu0 %vm380_vm1, %v4180_v40  ;;  %5544 = vmatprep.mubr.msk.f32.mxu1 %vm6128_vm2, %v6129_v31 }
0x370f   :  { %5537 = vmatprep.mubr.msk.f32.mxu0 %vm6128_vm2, %v6129_v31 }
0x37e0   :  { %v4364_v41 = vpop.f32.mrb[46].mxu1 }
0x37e1   :  { %v4250_v42 = vpop.f32.mrb[46].mxu0  ;;  %v4376_v43 = vadd.f32 %v4364_v41, %v6776_v60  ;;  %v5532_v44 = vpop.f32.mrb[47].mxu1  ;;  %v4369_v0 = vadd.f32 %v4368_v47, %v4364_v41 }
0x37e2   :  { %v4262_v45 = vadd.f32 %v4250_v42, %v6774_v5  ;;  %v5521_v46 = vpop.f32.mrb[47].mxu0  ;;  %v4255_v49 = vadd.f32 %v4254_v48, %v4250_v42 }
0x37e3   :  { %4378 = vrot.lane.b32.xlu1 %v4376_v43, %s6127_s13  ;;  %v4858_v24 = vmul.f32 -1.442695, %v4369_v0 }
0x37e4   :  { %4264 = vrot.lane.b32.xlu0 %v4262_v45, %s6127_s13  ;;  %v4856_v32 = vmul.f32 -1.442695, %v4255_v49 }
0x37e5   :  { %6013 = vpow2.f32 %v4858_v24 }
0x37e6   :  { %6015 = vpow2.f32 %v4856_v32 }
0x37ef   :  { %v6014_v51 = vpop.eup %6013 }
0x37f0   :  { %v6016_v52 = vpop.eup %6015  ;;  %v4373_v33 = vadd.f32 1.0, %v6014_v51 }
0x37f1   :  { %v4259_v60 = vadd.f32 1.0, %v6016_v52 }
0x37f2   :  { %6017 = vrcp.f32 %v4373_v33 }
0x37f3   :  { %6019 = vrcp.f32 %v4259_v60 }
0x37fc   :  { %v6018_v5 = vpop.eup %6017 }
0x37fd   :  { %v6020_v8 = vpop.eup %6019 }
0x3855   :  { %v4379_v53 = vpop.permute.xlu1 %4378 }
0x3856   :  { %v4381_v6 = vmul.f32 %v6018_v5, %v4379_v53  ;;  %v4265_v34 = vpop.permute.xlu0 %4264 }
0x3857   :  { %v4267_v35 = vmul.f32 %v6020_v8, %v4265_v34 }
0x3858   :  { %4383 = vrot.lane.b32.xlu1 %v4381_v6, %s6127_s13 }
0x3859   :  { %4269 = vrot.lane.b32.xlu0 %v4267_v35, %s6127_s13 }
0x38ca   :  { %v4384_v54 = vpop.permute.xlu1 %4383 }
0x38cb   :  { %v4386_v57 = vadd.f32 %v4384_v54, %v4368_v47  ;;  %v4270_v58 = vpop.permute.xlu0 %4269 }
0x38cc   :  { %v4272_v20 = vadd.f32 %v4270_v58, %v4254_v48 }
0x38cd   :  { %6021 = vtanh.f32 %v4386_v57 }
0x38ce   :  { %6023 = vtanh.f32 %v4272_v20 }
0x38d7   :  { %v6022_v59 = vpop.eup %6021 }
0x38d8   :  { %v6024_v19 = vpop.eup %6023  ;;  %4389 = vrot.lane.b32.xlu1 %v6022_v59, %s6127_s13 }
0x38d9   :  { %4275 = vrot.lane.b32.xlu0 %v6024_v19, %s6127_s13 }
0x394a   :  { %v4390_v61 = vpop.permute.xlu1 %4389 }
0x394b   :  { %v4392_v62 = vsub.f32 %v4294_v38, %v4390_v61  ;;  %v4276_v10 = vpop.permute.xlu0 %4275 }
0x394c   :  { %v4278_v63 = vsub.f32 %v4180_v40, %v4276_v10 }
0x394d   :  { %4394 = vrot.lane.b32.xlu1 %v4392_v62, %s6130_s14 }
0x394e   :  { %4280 = vrot.lane.b32.xlu0 %v4278_v63, %s6130_s14 }
0x39bf   :  { %v4395_v1 = vpop.permute.xlu1 %4394 }
0x39c0   :  { %v4397_v55 = vmul.f32 %v6018_v5, %v4395_v1  ;;  %v4281_v11 = vpop.permute.xlu0 %4280 }
0x39c1   :  { %v4283_v2 = vmul.f32 %v6020_v8, %v4281_v11 }
0x39c2   :  { %4399 = vrot.lane.b32.xlu1 %v4397_v55, %s6130_s14 }
0x39c3   :  { %4285 = vrot.lane.b32.xlu0 %v4283_v2, %s6130_s14 }
0x3a34   :  { %v4400_v39 = vpop.permute.xlu1 %4399 }
0x3a35   :  { %v4402_v3 = vadd.f32 %v6022_v59, %v4400_v39  ;;  %v4286_v56 = vpop.permute.xlu0 %4285 }
0x3a36   :  { %v4288_v17 = vadd.f32 %v6024_v19, %v4286_v56 }
0x3a37   :  { %4404 = vrot.lane.b32.xlu1 %v4402_v3, %s6127_s13 }
0x3a38   :  { %4290 = vrot.lane.b32.xlu0 %v4288_v17, %s6127_s13 }
0x3aa9   :  { %v4405_v23 = vpop.permute.xlu1 %4404 }
0x3aaa   :  { %4407 = vst.msk [vmem:[#allocation6] sm:$0xff] %vm380_vm1, %v4405_v23  ;;  %v4291_v7 = vpop.permute.xlu0 %4290 }
0x3aab   :  { %4293 = vst.msk [vmem:[#allocation5] sm:$0xff] %vm380_vm1, %v4291_v7 }
0x3ab1   :  { %v4409_v9 = vld [vmem:[#allocation6] sm:$0xff] }
0x3ab2   :  { %v4408_v14 = vld [vmem:[#allocation5] sm:$0xff] }
0x3ab3   :  { %v5802_v18 = vpack.c.bf16 %v4409_v9, %v4408_v14 }
0x3ab5   :  { %5803 = vmatpush3.bf16.msra.mxu0 %v5802_v18  ;;  %5806 = vmatpush3.bf16.msra.mxu1 %v5802_v18 }
0x3ab6   :  { %5807 = vmatprep.subr.bf16.mxu0 %v6126_v13  ;;  %5813 = vmatprep.subr.bf16.mxu1 %v6126_v13 }
0x3ab8   :  { %5538 = vmatmul.mubr.msk.f32.vlgmr.msra.gmra.mrb[48].mxu0 %vm94_vm0, %v4410_v21  ;;  %5545 = vmatmul.mubr.msk.f32.vlgmr.msra.gmra.mrb[48].mxu1 %vm94_vm0, %v4860_v22 }
0x3ab9   :  { %5809 = vmatpush3.bf16.msra.mxu0 %v5808_v4  ;;  %5815 = vmatpush3.bf16.msra.mxu1 %v5814_v26 }
0x3aba   :  { %5810 = vmatprep.subr.bf16.mxu0 %v6126_v13  ;;  %5816 = vmatprep.subr.bf16.mxu1 %v6126_v13  ;;  %v4864_v13 = vld [vmem:[%s7044_s9] ss:$0 sm:$0xff] }
0x3abb   :  { %5555 = vmatprep.mubr.msk.f32.mxu0 %vm6128_vm2, %v6129_v31  ;;  %5566 = vmatprep.mubr.msk.f32.mxu1 %vm6128_vm2, %v6129_v31 }
0x3abd   :  { %5812 = vmatpush3.bf16.msra.mxu0 %v5811_v30  ;;  %5818 = vmatpush3.bf16.msra.mxu1 %v5817_v36 }
0x3b8b   :  { %v4480_v37 = vpop.f32.mrb[48].mxu0  ;;  %v4555_v38 = vpop.f32.mrb[48].mxu1 }
0x3b8c   :  { %v5539_v40 = vpop.f32.mrb[49].mxu0  ;;  %v5546_v41 = vpop.f32.mrb[49].mxu1  ;;  %5556 = vmatmul.mubr.msk.f32.vlgmr.msra.gmra.mrb[50].mxu0 %vm380_vm1, %v4555_v38  ;;  %5567 = vmatmul.mubr.msk.f32.vlgmr.msra.gmra.mrb[50].mxu1 %vm380_vm1, %v4480_v37 }
0x3c5f   :  { %v4636_v42 = vpop.f32.mrb[50].mxu0  ;;  %v4709_v43 = vpop.f32.mrb[50].mxu1 }
0x3c60   :  { %v4710_v44 = vadd.f32 %v4709_v43, %v4636_v42  ;;  %v5557_v31 = vpop.f32.mrb[51].mxu0  ;;  %v5568_v45 = vpop.f32.mrb[51].mxu1 }
0x3c62   :  { %v4720_v46 = vadd.f32 %v4864_v13, %v4710_v44 }
0x3c64   :  { %4722 = vst.msk [vmem:[#allocation13] sm:$0xf] %vm4721_vm6, %v4720_v46 }
0x3c65   :  { %6102 = shalt.err (!%p6099_p0)
}
0x3c66   :  { %s6103_s9 = scalar_lea.hbm %s7045_s10, 64 }
0x3c67   :  { %p6104_p1 = scmp.ne.s32.totalorder %s7045_s10, %s6103_s9  ;;  %p6107_p2 = scmp.lt.u32.totalorder %s6103_s9, %s7045_s10 }
0x3c69   :  { %p6109_p3 = pnand %p6107_p2, %p6104_p1 }
0x3c6b   :  { %6112 = shalt.err (!%p6109_p3)
}
0x3c6c   :  { %4732 = dma.vmem_to_hbm [thread:$0]  %s4730_s0, 64, %s7045_s10, [#allocation9]  }
0x3c6d   :  { %6117 = dma.done.wait [#allocation9], 64  }
0x3c6e   :  { %6118 = vsyncadd [#allocation9], 4294967232 }
0x3c6f   :  { %4736 = vsyncpa [#allocation8], 1 }
0x3c70   :  { %4737 = vsyncpa [#allocation11], 1 }
0x3c71   :  { %4738 = vsyncpa [#allocation9], 1 }

</bundles_post_ra>
